<compile_context>
chip_gen: v6e
topology: v6e:2x2x1
jax: 0.10.0
libtpu: 0.0.40
codegen_flags: <defaults>
</compile_context>

<pallas_src>
import functools
import math

import jax
import jax.numpy as jnp
from jax.experimental import pallas as pl
from jax.experimental.pallas import tpu as pltpu

NUM_CLASSES = 10
IN_FEATURES = 3 * 32 * 32                       # 3072
LAYER_SIZES = [IN_FEATURES, 500, 200, 200, 200, 200, NUM_CLASSES]

LANE = 128
SUBLANE_BF16 = 16                               # bf16 packs 16 rows per vreg sublane group
DEFAULT_TILE_B = 256


def _round_up(x, m):
    return ((x + m - 1) // m) * m


# Lane/MXU friendly padded widths: [3072, 512, 256, 256, 256, 256, 128]
PADDED_SIZES = [_round_up(s, LANE) for s in LAYER_SIZES]


def _mlp_kernel(x_ref,
                w1_ref, b1_ref, w2_ref, b2_ref, w3_ref, b3_ref,
                w4_ref, b4_ref, w5_ref, b5_ref, w6_ref, b6_ref,
                o_ref):
    """Fused padded 6-layer MLP on one batch tile: relu(x @ W + b), chained in VMEM."""

    def layer(h_bf16, w_ref, b_ref):
        # bf16 x bf16 on the MXU with f32 accumulation; bias + ReLU in f32 on the VPU.
        y = jnp.dot(h_bf16, w_ref[...], preferred_element_type=jnp.float32)
        return jnp.maximum(y + b_ref[...], 0.0)

    h = x_ref[...]                                             # already bf16
    h = layer(h, w1_ref, b1_ref).astype(jnp.bfloat16)
    h = layer(h, w2_ref, b2_ref).astype(jnp.bfloat16)
    h = layer(h, w3_ref, b3_ref).astype(jnp.bfloat16)
    h = layer(h, w4_ref, b4_ref).astype(jnp.bfloat16)
    h = layer(h, w5_ref, b5_ref).astype(jnp.bfloat16)
    h = layer(h, w6_ref, b6_ref)                               # final ReLU output kept in f32
    o_ref[...] = h


def _cost_estimate(padded_batch):
    flops = 2 * padded_batch * sum(
        PADDED_SIZES[i] * PADDED_SIZES[i + 1] for i in range(6))
    weight_bytes = sum(PADDED_SIZES[i] * PADDED_SIZES[i + 1] * 2 for i in range(6))
    bias_bytes = sum(PADDED_SIZES[i + 1] * 4 for i in range(6))
    bytes_accessed = (weight_bytes + bias_bytes
                      + padded_batch * IN_FEATURES * 2          # bf16 input
                      + padded_batch * PADDED_SIZES[-1] * 4)    # f32 output
    return pl.CostEstimate(flops=flops, transcendentals=0,
                           bytes_accessed=bytes_accessed)


@functools.partial(jax.jit, static_argnames=("tile_b",))
def _forward_padded(x_pad, flat_args, *, tile_b):
    """x_pad: (padded_batch, 3072) bf16; flat_args: (w1,b1,...,w6,b6) padded params."""
    padded_batch = x_pad.shape[0]
    num_tiles = padded_batch // tile_b

    x_spec = pl.BlockSpec((tile_b, IN_FEATURES), lambda i: (i, 0))
    # Weights/biases: full-array blocks with a constant index_map -> DMA'd once at the
    # start of the call and kept VMEM-resident across all batch tiles.
    param_specs = [pl.BlockSpec(a.shape, lambda i: (0, 0)) for a in flat_args]
    out_spec = pl.BlockSpec((tile_b, PADDED_SIZES[-1]), lambda i: (i, 0))

    return pl.pallas_call(
        _mlp_kernel,
        out_shape=jax.ShapeDtypeStruct((padded_batch, PADDED_SIZES[-1]), jnp.float32),
        grid=(num_tiles,),
        in_specs=[x_spec] + param_specs,
        out_specs=out_spec,
        compiler_params=pltpu.CompilerParams(
            dimension_semantics=("parallel",),      # v7x: split batch tiles across 2 TCs
            vmem_limit_bytes=32 << 20,              # ~4 MB weights + double-buffered act tiles
        ),
        cost_estimate=_cost_estimate(padded_batch),
    )(x_pad, *flat_args)


def linear_net_forward(x, params, tile_b=DEFAULT_TILE_B):
    """x: anything reshapeable to (-1, 3072). Returns (B, NUM_CLASSES) float32."""
    x2d = jnp.asarray(x).reshape(-1, IN_FEATURES).astype(jnp.bfloat16)
    batch = x2d.shape[0]

    # Batch tile: multiple of 16 rows (bf16 sublane packing), capped at tile_b; small
    # batches get one small tile instead of padding all the way to 256 rows.
    tb = int(min(tile_b, _round_up(batch, SUBLANE_BF16)))
    padded_batch = _round_up(batch, tb)
    if padded_batch != batch:
        x2d = jnp.pad(x2d, ((0, padded_batch - batch), (0, 0)))

    flat_args = []
    for w, b in params:
        flat_args.append(w)                         # (in_p, out_p) bf16
        flat_args.append(b)                         # (1, out_p) f32, pre-reshaped at init
    flat_args = tuple(flat_args)

    out = _forward_padded(x2d, flat_args, tile_b=tb)
    return out[:batch, :NUM_CLASSES]


def init_params(key):
    """nn.Linear-style init U(-1/sqrt(fan_in), 1/sqrt(fan_in)), stored padded & transposed.

    Weights are created (out, in) like PyTorch, transposed to (in, out) for x @ W, then
    zero-padded to (in_p, out_p) and cast to bf16.  Biases are zero-padded to (1, out_p) f32.
    """
    params = []
    for i in range(6):
        fan_in, fan_out = LAYER_SIZES[i], LAYER_SIZES[i + 1]
        in_p, out_p = PADDED_SIZES[i], PADDED_SIZES[i + 1]
        key, kw, kb = jax.random.split(key, 3)
        bound = 1.0 / math.sqrt(fan_in)
        w = jax.random.uniform(kw, (fan_out, fan_in), jnp.float32, -bound, bound)
        b = jax.random.uniform(kb, (fan_out,), jnp.float32, -bound, bound)
        w_pad = jnp.zeros((in_p, out_p), jnp.float32).at[:fan_in, :fan_out].set(w.T)
        b_pad = jnp.zeros((1, out_p), jnp.float32).at[0, :fan_out].set(b)
        params.append((w_pad.astype(jnp.bfloat16), b_pad))
    return params


def _reference_forward(x, params):
    """Pure-JAX reference reproducing the kernel's bf16-operand / f32-accumulate math."""
    h = jnp.asarray(x).reshape(-1, IN_FEATURES).astype(jnp.bfloat16)
    n = len(params)
    for i, (w, b) in enumerate(params):
        y = jnp.dot(h.astype(jnp.float32), w.astype(jnp.float32)) + b
        y = jnp.maximum(y, 0.0)
        h = y.astype(jnp.bfloat16) if i < n - 1 else y
    return h[:, :NUM_CLASSES]


if __name__ == "__main__":
    key = jax.random.PRNGKey(0)
    key, kx = jax.random.split(key)

    # Input consistent with the module's x.view(-1, 3*32*32): NCHW (2, 3, 32, 32).
    x = jax.random.normal(kx, (2, 3, 32, 32), jnp.float32)
    params = init_params(key)

    y = linear_net_forward(x, params)
    jax.block_until_ready(y)

    # Sanity checks: shape, dtype, ReLU non-negativity, numerical agreement.
    assert y.shape == (2, NUM_CLASSES), y.shape
    assert y.dtype == jnp.float32
    assert bool(jnp.all(y >= 0.0))

    ref = _reference_forward(x, params)
    assert bool(jnp.allclose(y, ref, atol=1e-2, rtol=1e-2)), (y, ref)

    print("KERNEL_OK")
</pallas_src>

<mosaic_0001>
module attributes {stable_mosaic.version = 11 : i64} {
  func.func @_mlp_kernel(%arg0: i32, %arg1: memref<16x3072xbf16, #tpu.memory_space<vmem>>, %arg2: memref<3072x512xbf16, #tpu.memory_space<vmem>>, %arg3: memref<1x512xf32, #tpu.memory_space<vmem>>, %arg4: memref<512x256xbf16, #tpu.memory_space<vmem>>, %arg5: memref<1x256xf32, #tpu.memory_space<vmem>>, %arg6: memref<256x256xbf16, #tpu.memory_space<vmem>>, %arg7: memref<1x256xf32, #tpu.memory_space<vmem>>, %arg8: memref<256x256xbf16, #tpu.memory_space<vmem>>, %arg9: memref<1x256xf32, #tpu.memory_space<vmem>>, %arg10: memref<256x256xbf16, #tpu.memory_space<vmem>>, %arg11: memref<1x256xf32, #tpu.memory_space<vmem>>, %arg12: memref<256x128xbf16, #tpu.memory_space<vmem>>, %arg13: memref<1x128xf32, #tpu.memory_space<vmem>>, %arg14: memref<16x128xf32, #tpu.memory_space<vmem>>) attributes {dimension_semantics = [#tpu.dimension_semantics<parallel>], iteration_bounds = array<i64: 1>, scalar_prefetch = 0 : i64, scratch_operands = 0 : i64, tpu.core_type = #tpu.core_type<tc>, window_params = [{transform_indices = @transform_0, window_bounds = array<i64: 16, 3072>}, {pipeline_mode = #tpu.pipeline_mode<synchronous>, transform_indices = @transform_1, window_bounds = array<i64: 3072, 512>}, {pipeline_mode = #tpu.pipeline_mode<synchronous>, transform_indices = @transform_2, window_bounds = array<i64: 1, 512>}, {pipeline_mode = #tpu.pipeline_mode<synchronous>, transform_indices = @transform_3, window_bounds = array<i64: 512, 256>}, {pipeline_mode = #tpu.pipeline_mode<synchronous>, transform_indices = @transform_4, window_bounds = array<i64: 1, 256>}, {pipeline_mode = #tpu.pipeline_mode<synchronous>, transform_indices = @transform_5, window_bounds = array<i64: 256, 256>}, {pipeline_mode = #tpu.pipeline_mode<synchronous>, transform_indices = @transform_6, window_bounds = array<i64: 1, 256>}, {pipeline_mode = #tpu.pipeline_mode<synchronous>, transform_indices = @transform_7, window_bounds = array<i64: 256, 256>}, {pipeline_mode = #tpu.pipeline_mode<synchronous>, transform_indices = @transform_8, window_bounds = array<i64: 1, 256>}, {pipeline_mode = #tpu.pipeline_mode<synchronous>, transform_indices = @transform_9, window_bounds = array<i64: 256, 256>}, {pipeline_mode = #tpu.pipeline_mode<synchronous>, transform_indices = @transform_10, window_bounds = array<i64: 1, 256>}, {pipeline_mode = #tpu.pipeline_mode<synchronous>, transform_indices = @transform_11, window_bounds = array<i64: 256, 128>}, {pipeline_mode = #tpu.pipeline_mode<synchronous>, transform_indices = @transform_12, window_bounds = array<i64: 1, 128>}, {transform_indices = @transform_13, window_bounds = array<i64: 16, 128>}]} {
    %c0 = arith.constant 0 : index
    %c0_0 = arith.constant 0 : index
    %0 = vector.load %arg1[%c0, %c0_0] : memref<16x3072xbf16, #tpu.memory_space<vmem>>, vector<16x3072xbf16>
    %c0_1 = arith.constant 0 : index
    %c0_2 = arith.constant 0 : index
    %1 = vector.load %arg2[%c0_1, %c0_2] : memref<3072x512xbf16, #tpu.memory_space<vmem>>, vector<3072x512xbf16>
    %cst = arith.constant dense<0.000000e+00> : vector<16x512xf32>
    %2 = tpu.matmul %0, %1, %cst {dimension_numbers = #tpu.dot_dimension_numbers<[1], [0], [0], [1], [0, 0, 1, 1], [], []>} : vector<16x3072xbf16>, vector<3072x512xbf16>, vector<16x512xf32> -> vector<16x512xf32>
    %c0_3 = arith.constant 0 : index
    %c0_4 = arith.constant 0 : index
    %3 = vector.load %arg3[%c0_3, %c0_4] : memref<1x512xf32, #tpu.memory_space<vmem>>, vector<1x512xf32>
    %4 = vector.broadcast %3 : vector<1x512xf32> to vector<16x512xf32>
    %5 = arith.addf %2, %4 : vector<16x512xf32>
    %cst_5 = arith.constant 0.000000e+00 : f32
    %6 = vector.broadcast %cst_5 : f32 to vector<16x512xf32>
    %7 = arith.maximumf %5, %6 : vector<16x512xf32>
    %8 = arith.truncf %7 : vector<16x512xf32> to vector<16x512xbf16>
    %c0_6 = arith.constant 0 : index
    %c0_7 = arith.constant 0 : index
    %9 = vector.load %arg4[%c0_6, %c0_7] : memref<512x256xbf16, #tpu.memory_space<vmem>>, vector<512x256xbf16>
    %cst_8 = arith.constant dense<0.000000e+00> : vector<16x256xf32>
    %10 = tpu.matmul %8, %9, %cst_8 {dimension_numbers = #tpu.dot_dimension_numbers<[1], [0], [0], [1], [0, 0, 1, 1], [], []>} : vector<16x512xbf16>, vector<512x256xbf16>, vector<16x256xf32> -> vector<16x256xf32>
    %c0_9 = arith.constant 0 : index
    %c0_10 = arith.constant 0 : index
    %11 = vector.load %arg5[%c0_9, %c0_10] : memref<1x256xf32, #tpu.memory_space<vmem>>, vector<1x256xf32>
    %12 = vector.broadcast %11 : vector<1x256xf32> to vector<16x256xf32>
    %13 = arith.addf %10, %12 : vector<16x256xf32>
    %cst_11 = arith.constant 0.000000e+00 : f32
    %14 = vector.broadcast %cst_11 : f32 to vector<16x256xf32>
    %15 = arith.maximumf %13, %14 : vector<16x256xf32>
    %16 = arith.truncf %15 : vector<16x256xf32> to vector<16x256xbf16>
    %c0_12 = arith.constant 0 : index
    %c0_13 = arith.constant 0 : index
    %17 = vector.load %arg6[%c0_12, %c0_13] : memref<256x256xbf16, #tpu.memory_space<vmem>>, vector<256x256xbf16>
    %cst_14 = arith.constant dense<0.000000e+00> : vector<16x256xf32>
    %18 = tpu.matmul %16, %17, %cst_14 {dimension_numbers = #tpu.dot_dimension_numbers<[1], [0], [0], [1], [0, 0, 1, 1], [], []>} : vector<16x256xbf16>, vector<256x256xbf16>, vector<16x256xf32> -> vector<16x256xf32>
    %c0_15 = arith.constant 0 : index
    %c0_16 = arith.constant 0 : index
    %19 = vector.load %arg7[%c0_15, %c0_16] : memref<1x256xf32, #tpu.memory_space<vmem>>, vector<1x256xf32>
    %20 = vector.broadcast %19 : vector<1x256xf32> to vector<16x256xf32>
    %21 = arith.addf %18, %20 : vector<16x256xf32>
    %cst_17 = arith.constant 0.000000e+00 : f32
    %22 = vector.broadcast %cst_17 : f32 to vector<16x256xf32>
    %23 = arith.maximumf %21, %22 : vector<16x256xf32>
    %24 = arith.truncf %23 : vector<16x256xf32> to vector<16x256xbf16>
    %c0_18 = arith.constant 0 : index
    %c0_19 = arith.constant 0 : index
    %25 = vector.load %arg8[%c0_18, %c0_19] : memref<256x256xbf16, #tpu.memory_space<vmem>>, vector<256x256xbf16>
    %cst_20 = arith.constant dense<0.000000e+00> : vector<16x256xf32>
    %26 = tpu.matmul %24, %25, %cst_20 {dimension_numbers = #tpu.dot_dimension_numbers<[1], [0], [0], [1], [0, 0, 1, 1], [], []>} : vector<16x256xbf16>, vector<256x256xbf16>, vector<16x256xf32> -> vector<16x256xf32>
    %c0_21 = arith.constant 0 : index
    %c0_22 = arith.constant 0 : index
    %27 = vector.load %arg9[%c0_21, %c0_22] : memref<1x256xf32, #tpu.memory_space<vmem>>, vector<1x256xf32>
    %28 = vector.broadcast %27 : vector<1x256xf32> to vector<16x256xf32>
    %29 = arith.addf %26, %28 : vector<16x256xf32>
    %cst_23 = arith.constant 0.000000e+00 : f32
    %30 = vector.broadcast %cst_23 : f32 to vector<16x256xf32>
    %31 = arith.maximumf %29, %30 : vector<16x256xf32>
    %32 = arith.truncf %31 : vector<16x256xf32> to vector<16x256xbf16>
    %c0_24 = arith.constant 0 : index
    %c0_25 = arith.constant 0 : index
    %33 = vector.load %arg10[%c0_24, %c0_25] : memref<256x256xbf16, #tpu.memory_space<vmem>>, vector<256x256xbf16>
    %cst_26 = arith.constant dense<0.000000e+00> : vector<16x256xf32>
    %34 = tpu.matmul %32, %33, %cst_26 {dimension_numbers = #tpu.dot_dimension_numbers<[1], [0], [0], [1], [0, 0, 1, 1], [], []>} : vector<16x256xbf16>, vector<256x256xbf16>, vector<16x256xf32> -> vector<16x256xf32>
    %c0_27 = arith.constant 0 : index
    %c0_28 = arith.constant 0 : index
    %35 = vector.load %arg11[%c0_27, %c0_28] : memref<1x256xf32, #tpu.memory_space<vmem>>, vector<1x256xf32>
    %36 = vector.broadcast %35 : vector<1x256xf32> to vector<16x256xf32>
    %37 = arith.addf %34, %36 : vector<16x256xf32>
    %cst_29 = arith.constant 0.000000e+00 : f32
    %38 = vector.broadcast %cst_29 : f32 to vector<16x256xf32>
    %39 = arith.maximumf %37, %38 : vector<16x256xf32>
    %40 = arith.truncf %39 : vector<16x256xf32> to vector<16x256xbf16>
    %c0_30 = arith.constant 0 : index
    %c0_31 = arith.constant 0 : index
    %41 = vector.load %arg12[%c0_30, %c0_31] : memref<256x128xbf16, #tpu.memory_space<vmem>>, vector<256x128xbf16>
    %cst_32 = arith.constant dense<0.000000e+00> : vector<16x128xf32>
    %42 = tpu.matmul %40, %41, %cst_32 {dimension_numbers = #tpu.dot_dimension_numbers<[1], [0], [0], [1], [0, 0, 1, 1], [], []>} : vector<16x256xbf16>, vector<256x128xbf16>, vector<16x128xf32> -> vector<16x128xf32>
    %c0_33 = arith.constant 0 : index
    %c0_34 = arith.constant 0 : index
    %43 = vector.load %arg13[%c0_33, %c0_34] : memref<1x128xf32, #tpu.memory_space<vmem>>, vector<1x128xf32>
    %44 = vector.broadcast %43 : vector<1x128xf32> to vector<16x128xf32>
    %45 = arith.addf %42, %44 : vector<16x128xf32>
    %cst_35 = arith.constant 0.000000e+00 : f32
    %46 = vector.broadcast %cst_35 : f32 to vector<16x128xf32>
    %47 = arith.maximumf %45, %46 : vector<16x128xf32>
    %c0_36 = arith.constant 0 : index
    %c0_37 = arith.constant 0 : index
    %48 = vector.load %arg14[%c0_36, %c0_37] : memref<16x128xf32, #tpu.memory_space<vmem>>, vector<16x128xf32>
    tpu.vector_store %arg14[%c0_36, %c0_37], %47 {strides = array<i32>} : memref<16x128xf32, #tpu.memory_space<vmem>>, vector<16x128xf32>,
    return
  }
  func.func @transform_0(%arg0: i32) -> (i32, i32) {
    %c0_i32 = arith.constant 0 : i32
    %c0_i32_0 = arith.constant 0 : i32
    return %arg0, %c0_i32 : i32, i32
  }
  func.func @transform_1(%arg0: i32) -> (i32, i32) {
    %c0_i32 = arith.constant 0 : i32
    %c0_i32_0 = arith.constant 0 : i32
    %c0_i32_1 = arith.constant 0 : i32
    return %c0_i32, %c0_i32_0 : i32, i32
  }
  func.func @transform_2(%arg0: i32) -> (i32, i32) {
    %c0_i32 = arith.constant 0 : i32
    %c0_i32_0 = arith.constant 0 : i32
    %c0_i32_1 = arith.constant 0 : i32
    return %c0_i32, %c0_i32_0 : i32, i32
  }
  func.func @transform_3(%arg0: i32) -> (i32, i32) {
    %c0_i32 = arith.constant 0 : i32
    %c0_i32_0 = arith.constant 0 : i32
    %c0_i32_1 = arith.constant 0 : i32
    return %c0_i32, %c0_i32_0 : i32, i32
  }
  func.func @transform_4(%arg0: i32) -> (i32, i32) {
    %c0_i32 = arith.constant 0 : i32
    %c0_i32_0 = arith.constant 0 : i32
    %c0_i32_1 = arith.constant 0 : i32
    return %c0_i32, %c0_i32_0 : i32, i32
  }
  func.func @transform_5(%arg0: i32) -> (i32, i32) {
    %c0_i32 = arith.constant 0 : i32
    %c0_i32_0 = arith.constant 0 : i32
    %c0_i32_1 = arith.constant 0 : i32
    return %c0_i32, %c0_i32_0 : i32, i32
  }
  func.func @transform_6(%arg0: i32) -> (i32, i32) {
    %c0_i32 = arith.constant 0 : i32
    %c0_i32_0 = arith.constant 0 : i32
    %c0_i32_1 = arith.constant 0 : i32
    return %c0_i32, %c0_i32_0 : i32, i32
  }
  func.func @transform_7(%arg0: i32) -> (i32, i32) {
    %c0_i32 = arith.constant 0 : i32
    %c0_i32_0 = arith.constant 0 : i32
    %c0_i32_1 = arith.constant 0 : i32
    return %c0_i32, %c0_i32_0 : i32, i32
  }
  func.func @transform_8(%arg0: i32) -> (i32, i32) {
    %c0_i32 = arith.constant 0 : i32
    %c0_i32_0 = arith.constant 0 : i32
    %c0_i32_1 = arith.constant 0 : i32
    return %c0_i32, %c0_i32_0 : i32, i32
  }
  func.func @transform_9(%arg0: i32) -> (i32, i32) {
    %c0_i32 = arith.constant 0 : i32
    %c0_i32_0 = arith.constant 0 : i32
    %c0_i32_1 = arith.constant 0 : i32
    return %c0_i32, %c0_i32_0 : i32, i32
  }
  func.func @transform_10(%arg0: i32) -> (i32, i32) {
    %c0_i32 = arith.constant 0 : i32
    %c0_i32_0 = arith.constant 0 : i32
    %c0_i32_1 = arith.constant 0 : i32
    return %c0_i32, %c0_i32_0 : i32, i32
  }
  func.func @transform_11(%arg0: i32) -> (i32, i32) {
    %c0_i32 = arith.constant 0 : i32
    %c0_i32_0 = arith.constant 0 : i32
    %c0_i32_1 = arith.constant 0 : i32
    return %c0_i32, %c0_i32_0 : i32, i32
  }
  func.func @transform_12(%arg0: i32) -> (i32, i32) {
    %c0_i32 = arith.constant 0 : i32
    %c0_i32_0 = arith.constant 0 : i32
    %c0_i32_1 = arith.constant 0 : i32
    return %c0_i32, %c0_i32_0 : i32, i32
  }
  func.func @transform_13(%arg0: i32) -> (i32, i32) {
    %c0_i32 = arith.constant 0 : i32
    %c0_i32_0 = arith.constant 0 : i32
    return %arg0, %c0_i32 : i32, i32
  }
}

</mosaic_0001>

<bundles_post_ra>
// kernel: _forward_padded.1
= control target key start
LH: loop header
LB: loop body
LE: loop exit
PB: predicated region body
PF: predicated region fallthrough
CT: control target
= control target key end

     0   :  { %18 = vsyncpa [#allocation3], 0  ;;  %s10690_s0 = inlined_call_operand.hbm [shape: bf16[16,3072], index: 0, kind: input, shape index: {}]   ;;  %s10691_s1 = inlined_call_operand.hbm [shape: bf16[3072,512], index: 1, kind: input, shape index: {}]   ;;  %s10692_s2 = inlined_call_operand.hbm [shape: f32[1,512], index: 2, kind: input, shape index: {}]   ;;  %s10693_s3 = inlined_call_operand.hbm [shape: bf16[512,256], index: 3, kind: input, shape index: {}]   ;;  %s10694_s4 = inlined_call_operand.hbm [shape: f32[1,256], index: 4, kind: input, shape index: {}]   ;;  %s10695_s5 = inlined_call_operand.hbm [shape: bf16[256,256], index: 5, kind: input, shape index: {}]   ;;  %s10696_s6 = inlined_call_operand.hbm [shape: f32[1,256], index: 6, kind: input, shape index: {}]   ;;  %s10697_s7 = inlined_call_operand.hbm [shape: bf16[256,256], index: 7, kind: input, shape index: {}]   ;;  %s10698_s8 = inlined_call_operand.hbm [shape: f32[1,256], index: 8, kind: input, shape index: {}]   ;;  %s10699_s9 = inlined_call_operand.hbm [shape: bf16[256,256], index: 9, kind: input, shape index: {}]   ;;  %s10700_s10 = inlined_call_operand.hbm [shape: f32[1,256], index: 10, kind: input, shape index: {}]   ;;  %s10701_s11 = inlined_call_operand.hbm [shape: bf16[256,128], index: 11, kind: input, shape index: {}]   ;;  %s10702_s12 = inlined_call_operand.hbm [shape: f32[1,128], index: 12, kind: input, shape index: {}]   ;;  %s10703_s13 = inlined_call_operand.hbm [shape: f32[16,128], index: 13, kind: output, shape index: {}]  }
   0x1   :  { %19 = vsyncpa [#allocation6], 0 }
   0x2   :  { %20 = vsyncpa [#allocation9], 0 }
   0x3   :  { %21 = vsyncpa [#allocation12], 0 }
   0x4   :  { %22 = vsyncpa [#allocation15], 0 }
   0x5   :  { %23 = vsyncpa [#allocation18], 0 }
   0x6   :  { %24 = vsyncpa [#allocation21], 0 }
   0x7   :  { %25 = vsyncpa [#allocation4], 0  ;;  %s10196_s25 = smov [#allocation5]  }
   0x8   :  { %s43_s26 = sshll.u32 %s10196_s25, 4  ;;  %s44_s26 = int_to_ptr.vmem [resolvable:$true] %s43_s26 }
   0x9   :  { %s9908_s27 = scalar_lea.vmem %s44_s26, 98304  ;;  %p9913_p1 = scmp.lt.s32.totalorder %s44_s26, %s44_s26 }
   0xa   :  { %p9909_p0 = scmp.ne.s32.totalorder %s44_s26, %s9908_s27  ;;  %p9914_p2 = scmp.lt.s32.totalorder %s9908_s27, %s9908_s27 }
   0xc   :  { %p9915_p3 = por %p9914_p2, %p9913_p1 }
   0xe   :  { %p9916_p4 = pnand %p9915_p3, %p9909_p0 }
  0x10   :  { %9919 = shalt.err (!%p9916_p4)
}
  0x11   :  { %s10197_s28 = smov 256   ;;  %s10198_s29 = smov 16  }
  0x12   :  { %49 = dma.hbm_to_vmem [thread:$0]  %s10691_s1, 98304, %s44_s26, [#allocation6], %s10197_s28, %s10197_s28, %s10198_s29  }
  0x13   :  { %s10199_s15 = smov [#allocation8]  }
  0x14   :  { %s65_s16 = sshll.u32 %s10199_s15, 4  ;;  %s66_s16 = int_to_ptr.vmem [resolvable:$true] %s65_s16 }
  0x15   :  { %s9928_s17 = scalar_lea.vmem %s66_s16, 8192  ;;  %p9933_p6 = scmp.lt.s32.totalorder %s66_s16, %s66_s16 }
  0x16   :  { %p9929_p5 = scmp.ne.s32.totalorder %s66_s16, %s9928_s17  ;;  %p9934_p7 = scmp.lt.s32.totalorder %s9928_s17, %s9928_s17 }
  0x18   :  { %p9935_p8 = por %p9934_p7, %p9933_p6 }
  0x1a   :  { %p9936_p9 = pnand %p9935_p8, %p9929_p5 }
  0x1c   :  { %9939 = shalt.err (!%p9936_p9)
}
  0x1d   :  { %s10200_s18 = smov 128   ;;  %s10201_s19 = smov 8  }
  0x1e   :  { %71 = dma.hbm_to_vmem [thread:$0]  %s10693_s3, 8192, %s66_s16, [#allocation9], %s10200_s18, %s10200_s18, %s10201_s19  }
  0x1f   :  { %s10202_s1 = smov [#allocation11]   ;;  %s10203_s23 = smov [#allocation14]  }
  0x20   :  { %s87_s22 = sshll.u32 %s10202_s1, 4  ;;  %s109_s24 = sshll.u32 %s10203_s23, 4  ;;  %s88_s22 = int_to_ptr.vmem [resolvable:$true] %s87_s22  ;;  %s110_s24 = int_to_ptr.vmem [resolvable:$true] %s109_s24 }
  0x21   :  { %s9948_s25 = scalar_lea.vmem %s88_s22, 4096  ;;  %p9953_p11 = scmp.lt.s32.totalorder %s88_s22, %s88_s22 }
  0x22   :  { %p9949_p10 = scmp.ne.s32.totalorder %s88_s22, %s9948_s25  ;;  %p9954_p12 = scmp.lt.s32.totalorder %s9948_s25, %s9948_s25 }
  0x24   :  { %p9955_p13 = por %p9954_p12, %p9953_p11 }
  0x26   :  { %p9956_p0 = pnand %p9955_p13, %p9949_p10 }
  0x28   :  { %9959 = shalt.err (!%p9956_p0)
}
  0x29   :  { %93 = dma.hbm_to_vmem [thread:$0]  %s10695_s5, 4096, %s88_s22, [#allocation12], %s10200_s18, %s10200_s18, %s10201_s19  }
  0x2a   :  { %s9968_s3 = scalar_lea.vmem %s110_s24, 4096  ;;  %p9973_p2 = scmp.lt.s32.totalorder %s110_s24, %s110_s24 }
  0x2b   :  { %p9969_p1 = scmp.ne.s32.totalorder %s110_s24, %s9968_s3  ;;  %p9974_p3 = scmp.lt.s32.totalorder %s9968_s3, %s9968_s3 }
  0x2d   :  { %p9975_p4 = por %p9974_p3, %p9973_p2 }
  0x2f   :  { %p9976_p5 = pnand %p9975_p4, %p9969_p1 }
  0x31   :  { %9979 = shalt.err (!%p9976_p5)
}
  0x32   :  { %115 = dma.hbm_to_vmem [thread:$0]  %s10697_s7, 4096, %s110_s24, [#allocation15], %s10200_s18, %s10200_s18, %s10201_s19  }
  0x33   :  { %s10204_s30 = smov [#allocation17]   ;;  %s10205_s15 = smov [#allocation20]  }
  0x34   :  { %s131_s14 = sshll.u32 %s10204_s30, 4  ;;  %s153_s16 = sshll.u32 %s10205_s15, 4  ;;  %s132_s14 = int_to_ptr.vmem [resolvable:$true] %s131_s14  ;;  %s154_s16 = int_to_ptr.vmem [resolvable:$true] %s153_s16 }
  0x35   :  { %s9988_s5 = scalar_lea.vmem %s132_s14, 4096  ;;  %p9993_p7 = scmp.lt.s32.totalorder %s132_s14, %s132_s14 }
  0x36   :  { %p9989_p6 = scmp.ne.s32.totalorder %s132_s14, %s9988_s5  ;;  %p9994_p8 = scmp.lt.s32.totalorder %s9988_s5, %s9988_s5 }
  0x38   :  { %p9995_p9 = por %p9994_p8, %p9993_p7 }
  0x3a   :  { %p9996_p10 = pnand %p9995_p9, %p9989_p6 }
  0x3c   :  { %9999 = shalt.err (!%p9996_p10)
}
  0x3d   :  { %137 = dma.hbm_to_vmem [thread:$0]  %s10699_s9, 4096, %s132_s14, [#allocation18], %s10200_s18, %s10200_s18, %s10201_s19  }
  0x3e   :  { %s10008_s7 = scalar_lea.vmem %s154_s16, 2048  ;;  %p10013_p12 = scmp.lt.s32.totalorder %s154_s16, %s154_s16 }
  0x3f   :  { %p10009_p11 = scmp.ne.s32.totalorder %s154_s16, %s10008_s7  ;;  %p10014_p13 = scmp.lt.s32.totalorder %s10008_s7, %s10008_s7 }
  0x41   :  { %p10015_p0 = por %p10014_p13, %p10013_p12 }
  0x43   :  { %p10016_p1 = pnand %p10015_p0, %p10009_p11 }
  0x45   :  { %10019 = shalt.err (!%p10016_p1)
}
  0x46   :  { %s10206_s21 = smov 64   ;;  %s10207_s1 = smov 4  }
  0x47   :  { %159 = dma.hbm_to_vmem [thread:$0]  %s10701_s11, 2048, %s154_s16, [#allocation21], %s10206_s21, %s10206_s21, %s10207_s1  }
  0x48   :  { %s10208_s24 = smov [#allocation2]  }
  0x49   :  { %s31_s25 = sshll.u32 %s10208_s24, 4  ;;  %s32_s25 = int_to_ptr.vmem [resolvable:$true] %s31_s25 }
  0x4a   :  { %s10028_s26 = scalar_lea.vmem %s32_s25, 3072  ;;  %p10033_p3 = scmp.lt.s32.totalorder %s32_s25, %s32_s25 }
  0x4b   :  { %p10029_p2 = scmp.ne.s32.totalorder %s32_s25, %s10028_s26  ;;  %p10034_p4 = scmp.lt.s32.totalorder %s10028_s26, %s10028_s26 }
  0x4d   :  { %p10035_p5 = por %p10034_p4, %p10033_p3 }
  0x4f   :  { %p10036_p6 = pnand %p10035_p5, %p10029_p2 }
  0x51   :  { %10039 = shalt.err (!%p10036_p6)
}
  0x52   :  { %s10209_s9 = smov 1536   ;;  %s10210_s27 = smov 96  }
  0x53   :  { %37 = dma.hbm_to_vmem [thread:$0]  %s10690_s0, 3072, %s32_s25, [#allocation3], %s10209_s9, %s10209_s9, %s10210_s27  }
  0x54   :  { %s10211_s29 = smov [#allocation7]   ;;  %s10212_s11 = smov [#allocation10]  }
  0x55   :  { %s56_s30 = sshll.u32 %s10211_s29, 4  ;;  %s78_s14 = sshll.u32 %s10212_s11, 4  ;;  %s57_s30 = int_to_ptr.vmem [resolvable:$true] %s56_s30  ;;  %s79_s14 = int_to_ptr.vmem [resolvable:$true] %s78_s14 }
  0x56   :  { %s10048_s15 = scalar_lea.vmem %s57_s30, 64  ;;  %p10053_p8 = scmp.lt.s32.totalorder %s57_s30, %s57_s30 }
  0x57   :  { %p10049_p7 = scmp.ne.s32.totalorder %s57_s30, %s10048_s15  ;;  %p10054_p9 = scmp.lt.s32.totalorder %s10048_s15, %s10048_s15 }
  0x59   :  { %p10055_p10 = por %p10054_p9, %p10053_p8 }
  0x5b   :  { %p10056_p11 = pnand %p10055_p10, %p10049_p7 }
  0x5d   :  { %10059 = shalt.err (!%p10056_p11)
}
  0x5e   :  { %59 = dma.hbm_to_vmem [thread:$0]  %s10692_s2, 64, %s57_s30, [#allocation6]  }
  0x5f   :  { %s10068_s17 = scalar_lea.vmem %s79_s14, 32  ;;  %p10073_p13 = scmp.lt.s32.totalorder %s79_s14, %s79_s14 }
  0x60   :  { %p10069_p12 = scmp.ne.s32.totalorder %s79_s14, %s10068_s17  ;;  %p10074_p0 = scmp.lt.s32.totalorder %s10068_s17, %s10068_s17 }
  0x62   :  { %p10075_p1 = por %p10074_p0, %p10073_p13 }
  0x64   :  { %p10076_p2 = pnand %p10075_p1, %p10069_p12 }
  0x66   :  { %10079 = shalt.err (!%p10076_p2)
}
  0x67   :  { %81 = dma.hbm_to_vmem [thread:$0]  %s10694_s4, 32, %s79_s14, [#allocation9]  }
  0x68   :  { %s10213_s7 = smov [#allocation13]   ;;  %s10214_s1 = smov [#allocation16]  }
  0x69   :  { %s100_s21 = sshll.u32 %s10213_s7, 4  ;;  %s122_s22 = sshll.u32 %s10214_s1, 4  ;;  %s101_s21 = int_to_ptr.vmem [resolvable:$true] %s100_s21  ;;  %s123_s22 = int_to_ptr.vmem [resolvable:$true] %s122_s22 }
  0x6a   :  { %s10088_s23 = scalar_lea.vmem %s101_s21, 32  ;;  %p10093_p4 = scmp.lt.s32.totalorder %s101_s21, %s101_s21 }
  0x6b   :  { %p10089_p3 = scmp.ne.s32.totalorder %s101_s21, %s10088_s23  ;;  %p10094_p5 = scmp.lt.s32.totalorder %s10088_s23, %s10088_s23 }
  0x6d   :  { %p10095_p6 = por %p10094_p5, %p10093_p4 }
  0x6f   :  { %p10096_p7 = pnand %p10095_p6, %p10089_p3 }
  0x71   :  { %10099 = shalt.err (!%p10096_p7)
}
  0x72   :  { %103 = dma.hbm_to_vmem [thread:$0]  %s10696_s6, 32, %s101_s21, [#allocation12]  }
  0x73   :  { %s10108_s25 = scalar_lea.vmem %s123_s22, 32  ;;  %p10113_p9 = scmp.lt.s32.totalorder %s123_s22, %s123_s22 }
  0x74   :  { %p10109_p8 = scmp.ne.s32.totalorder %s123_s22, %s10108_s25  ;;  %p10114_p10 = scmp.lt.s32.totalorder %s10108_s25, %s10108_s25 }
  0x76   :  { %p10115_p11 = por %p10114_p10, %p10113_p9 }
  0x78   :  { %p10116_p12 = pnand %p10115_p11, %p10109_p8 }
  0x7a   :  { %10119 = shalt.err (!%p10116_p12)
}
  0x7b   :  { %125 = dma.hbm_to_vmem [thread:$0]  %s10698_s8, 32, %s123_s22, [#allocation15]  }
  0x7c   :  { %s10215_s9 = smov [#allocation19]   ;;  %s10216_s3 = smov [#allocation22]  }
  0x7d   :  { %s144_s27 = sshll.u32 %s10215_s9, 4  ;;  %s166_s28 = sshll.u32 %s10216_s3, 4  ;;  %s145_s27 = int_to_ptr.vmem [resolvable:$true] %s144_s27  ;;  %s167_s28 = int_to_ptr.vmem [resolvable:$true] %s166_s28 }
  0x7e   :  { %s10128_s29 = scalar_lea.vmem %s145_s27, 32  ;;  %p10133_p0 = scmp.lt.s32.totalorder %s145_s27, %s145_s27 }
  0x7f   :  { %p10129_p13 = scmp.ne.s32.totalorder %s145_s27, %s10128_s29  ;;  %p10134_p1 = scmp.lt.s32.totalorder %s10128_s29, %s10128_s29 }
  0x81   :  { %p10135_p2 = por %p10134_p1, %p10133_p0 }
  0x83   :  { %p10136_p3 = pnand %p10135_p2, %p10129_p13 }
  0x85   :  { %10139 = shalt.err (!%p10136_p3)
}
  0x86   :  { %147 = dma.hbm_to_vmem [thread:$0]  %s10700_s10, 32, %s145_s27, [#allocation18]  }
  0x87   :  { %s10148_s11 = scalar_lea.vmem %s167_s28, 16  ;;  %s10152_s8 = scalar_lea.vmem %s167_s28, 32 }
  0x88   :  { %p10149_p4 = scmp.ne.s32.totalorder %s167_s28, %s10148_s11  ;;  %p10153_p5 = scmp.lt.s32.totalorder %s167_s28, %s167_s28 }
  0x89   :  { %p10154_p6 = scmp.lt.s32.totalorder %s10152_s8, %s10148_s11 }
  0x8b   :  { %p10155_p7 = por %p10154_p6, %p10153_p5 }
  0x8d   :  { %p10156_p8 = pnand %p10155_p7, %p10149_p4 }
  0x8f   :  { %10159 = shalt.err (!%p10156_p8)
}
  0x90   :  { %169 = dma.hbm_to_vmem [thread:$0]  %s10702_s12, 16, %s167_s28, [#allocation21]  }
  0x91   :  { %10180 = dma.done.wait [#allocation3], 3072  }
  0x92   :  { %10181 = vsyncadd [#allocation3], 4294964224 }
  0x93   :  { %10182 = dma.done.wait [#allocation6], 98368  }
  0x94   :  { %10183 = vsyncadd [#allocation6], 4294868928 }
  0x95   :  { %10184 = dma.done.wait [#allocation9], 8224  }
  0x96   :  { %10185 = vsyncadd [#allocation9], 4294959072 }
  0x97   :  { %10186 = dma.done.wait [#allocation12], 4128  }
  0x98   :  { %10187 = vsyncadd [#allocation12], 4294963168 }
  0x99   :  { %10188 = dma.done.wait [#allocation15], 4128  }
  0x9a   :  { %10189 = vsyncadd [#allocation15], 4294963168 }
  0x9b   :  { %10190 = dma.done.wait [#allocation18], 4128  }
  0x9c   :  { %10191 = vsyncadd [#allocation18], 4294963168 }
  0x9d   :  { %10192 = dma.done.wait [#allocation21], 2064  }
  0x9e   :  { %10193 = vsyncadd [#allocation21], 4294965232  ;;  %v8491_v0 = vld [vmem:[#allocation5 + $0xe4] ss:$16 sps:$4 sm:$0xff]   ;;  %v8495_v2 = vld [vmem:[#allocation5 + $0xe0] ss:$16 sps:$4 sm:$0xff]  }
  0x9f   :  { %v8493_v1 = vld [vmem:[#allocation5 + $0x2e4] ss:$16 sps:$4 sm:$0xff]   ;;  %4984 = vmatprep.subr.bf16.mxu0 %v8491_v0  ;;  %v8496_v3 = vld [vmem:[#allocation5 + $0x2e0] ss:$16 sps:$4 sm:$0xff]   ;;  %v211_v50 = vld [vmem:[#allocation2 + $0x8] sm:$0xff]  ;;  %s10217_s10 = smov [#allocation23]  }
  0xa0   :  { %5027 = vmatprep.subr.bf16.mxu1 %v8493_v1  ;;  %v8497_v4 = vld [vmem:[#allocation5 + $0xc4] ss:$16 sps:$4 sm:$0xff]   ;;  %4985 = vmatpush1.bf16.msra.mxu0 %v8495_v2  ;;  %v8501_v6 = vld [vmem:[#allocation5 + $0xc0] ss:$16 sps:$4 sm:$0xff]   ;;  %v223_v51 = vld [vmem:[#allocation2 + $0x68] sm:$0xff]  ;;  %s7460_s12 = sshll.u32 %s10217_s10, 4  ;;  %s7461_s12 = int_to_ptr.vmem [resolvable:$true] %s7460_s12 }
  0xa1   :  { %5028 = vmatpush1.bf16.msra.mxu1 %v8496_v3  ;;  %v8499_v5 = vld [vmem:[#allocation5 + $0x2c4] ss:$16 sps:$4 sm:$0xff]   ;;  %4986 = vmatprep.subr.bf16.mxu0 %v8497_v4  ;;  %v8502_v7 = vld [vmem:[#allocation5 + $0x2c0] ss:$16 sps:$4 sm:$0xff]   ;;  %v10341_v55 = vcombine.high %v211_v50, %v223_v51  ;;  %s10160_s16 = scalar_lea.vmem %s7461_s12, 256  ;;  %p10165_p10 = scmp.lt.s32.totalorder %s7461_s12, %s7461_s12 }
  0xa2   :  { %5029 = vmatprep.subr.bf16.mxu1 %v8499_v5  ;;  %v8503_v8 = vld [vmem:[#allocation5 + $0xa4] ss:$16 sps:$4 sm:$0xff]   ;;  %v8507_v10 = vld [vmem:[#allocation5 + $0xa0] ss:$16 sps:$4 sm:$0xff]   ;;  %p10161_p9 = scmp.ne.s32.totalorder %s7461_s12, %s10160_s16  ;;  %p10166_p11 = scmp.lt.s32.totalorder %s10160_s16, %s10160_s16 }
  0xa3   :  { %v8505_v9 = vld [vmem:[#allocation5 + $0x2a4] ss:$16 sps:$4 sm:$0xff]   ;;  %v8508_v11 = vld [vmem:[#allocation5 + $0x2a0] ss:$16 sps:$4 sm:$0xff]   ;;  %5059 = vmatprep.mubr.bf16.mxu1 %v10341_v55 }
  0xa4   :  { %4987 = vmatpush1.bf16.msra.mxu0 %v8501_v6  ;;  %v8509_v12 = vld [vmem:[#allocation5 + $0x84] ss:$16 sps:$4 sm:$0xff]   ;;  %v8513_v14 = vld [vmem:[#allocation5 + $0x80] ss:$16 sps:$4 sm:$0xff]   ;;  %p10167_p12 = por %p10166_p11, %p10165_p10 }
  0xa5   :  { %5030 = vmatpush1.bf16.msra.mxu1 %v8502_v7  ;;  %4988 = vmatprep.subr.bf16.mxu0 %v8503_v8  ;;  %v8511_v13 = vld [vmem:[#allocation5 + $0x284] ss:$16 sps:$4 sm:$0xff]   ;;  %v8514_v15 = vld [vmem:[#allocation5 + $0x280] ss:$16 sps:$4 sm:$0xff]  }
  0xa6   :  { %5031 = vmatprep.subr.bf16.mxu1 %v8505_v9  ;;  %v8515_v16 = vld [vmem:[#allocation5 + $0x64] ss:$16 sps:$4 sm:$0xff]   ;;  %v8519_v18 = vld [vmem:[#allocation5 + $0x60] ss:$16 sps:$4 sm:$0xff]   ;;  %v10347_v9 = vcombine.low %v211_v50, %v223_v51  ;;  %p10168_p13 = pnand %p10167_p12, %p10161_p9 }
  0xa7   :  { %v8517_v17 = vld [vmem:[#allocation5 + $0x264] ss:$16 sps:$4 sm:$0xff]   ;;  %v8520_v19 = vld [vmem:[#allocation5 + $0x260] ss:$16 sps:$4 sm:$0xff]  }
  0xa8   :  { %4989 = vmatpush1.bf16.msra.mxu0 %v8507_v10  ;;  %v8521_v20 = vld [vmem:[#allocation5 + $0x44] ss:$16 sps:$4 sm:$0xff]   ;;  %v8525_v22 = vld [vmem:[#allocation5 + $0x40] ss:$16 sps:$4 sm:$0xff]  }
  0xa9   :  { %5032 = vmatpush1.bf16.msra.mxu1 %v8508_v11  ;;  %4990 = vmatprep.subr.bf16.mxu0 %v8509_v12  ;;  %v8523_v21 = vld [vmem:[#allocation5 + $0x244] ss:$16 sps:$4 sm:$0xff]   ;;  %v8526_v23 = vld [vmem:[#allocation5 + $0x240] ss:$16 sps:$4 sm:$0xff]  }
  0xaa   :  { %5033 = vmatprep.subr.bf16.mxu1 %v8511_v13  ;;  %v8527_v24 = vld [vmem:[#allocation5 + $0x24] ss:$16 sps:$4 sm:$0xff]   ;;  %v8531_v26 = vld [vmem:[#allocation5 + $0x20] ss:$16 sps:$4 sm:$0xff]  }
  0xab   :  { %v8529_v25 = vld [vmem:[#allocation5 + $0x224] ss:$16 sps:$4 sm:$0xff]   ;;  %v8532_v27 = vld [vmem:[#allocation5 + $0x220] ss:$16 sps:$4 sm:$0xff]  }
  0xac   :  { %4991 = vmatpush1.bf16.msra.mxu0 %v8513_v14  ;;  %v8533_v28 = vld [vmem:[#allocation5 + $0x4] ss:$16 sps:$4 sm:$0xff]   ;;  %v8537_v30 = vld [vmem:[#allocation5] ss:$16 sps:$4 sm:$0xff]  }
  0xad   :  { %5034 = vmatpush1.bf16.msra.mxu1 %v8514_v15  ;;  %4992 = vmatprep.subr.bf16.mxu0 %v8515_v16  ;;  %v8535_v29 = vld [vmem:[#allocation5 + $0x204] ss:$16 sps:$4 sm:$0xff]   ;;  %v8538_v31 = vld [vmem:[#allocation5 + $0x200] ss:$16 sps:$4 sm:$0xff]  }
  0xae   :  { %5035 = vmatprep.subr.bf16.mxu1 %v8517_v17  ;;  %v8539_v32 = vld [vmem:[#allocation5 + $0x1e4] ss:$16 sps:$4 sm:$0xff]   ;;  %v8543_v34 = vld [vmem:[#allocation5 + $0x1e0] ss:$16 sps:$4 sm:$0xff]  }
  0xaf   :  { %v8541_v33 = vld [vmem:[#allocation5 + $0x3e4] ss:$16 sps:$4 sm:$0xff]   ;;  %v8544_v35 = vld [vmem:[#allocation5 + $0x3e0] ss:$16 sps:$4 sm:$0xff]  }
  0xb0   :  { %4993 = vmatpush1.bf16.msra.mxu0 %v8519_v18  ;;  %v8545_v36 = vld [vmem:[#allocation5 + $0x1c4] ss:$16 sps:$4 sm:$0xff]   ;;  %v8549_v38 = vld [vmem:[#allocation5 + $0x1c0] ss:$16 sps:$4 sm:$0xff]  }
  0xb1   :  { %5036 = vmatpush1.bf16.msra.mxu1 %v8520_v19  ;;  %4994 = vmatprep.subr.bf16.mxu0 %v8521_v20  ;;  %v8547_v37 = vld [vmem:[#allocation5 + $0x3c4] ss:$16 sps:$4 sm:$0xff]   ;;  %v8550_v39 = vld [vmem:[#allocation5 + $0x3c0] ss:$16 sps:$4 sm:$0xff]  }
  0xb2   :  { %5037 = vmatprep.subr.bf16.mxu1 %v8523_v21  ;;  %v8551_v40 = vld [vmem:[#allocation5 + $0x1a4] ss:$16 sps:$4 sm:$0xff]   ;;  %v8555_v42 = vld [vmem:[#allocation5 + $0x1a0] ss:$16 sps:$4 sm:$0xff]  }
  0xb3   :  { %v8553_v41 = vld [vmem:[#allocation5 + $0x3a4] ss:$16 sps:$4 sm:$0xff]   ;;  %v8556_v43 = vld [vmem:[#allocation5 + $0x3a0] ss:$16 sps:$4 sm:$0xff]  }
  0xb4   :  { %4995 = vmatpush1.bf16.msra.mxu0 %v8525_v22  ;;  %v8557_v44 = vld [vmem:[#allocation5 + $0x184] ss:$16 sps:$4 sm:$0xff]   ;;  %v8561_v46 = vld [vmem:[#allocation5 + $0x180] ss:$16 sps:$4 sm:$0xff]  }
  0xb5   :  { %5038 = vmatpush1.bf16.msra.mxu1 %v8526_v23  ;;  %4996 = vmatprep.subr.bf16.mxu0 %v8527_v24  ;;  %v8559_v45 = vld [vmem:[#allocation5 + $0x384] ss:$16 sps:$4 sm:$0xff]   ;;  %v8562_v47 = vld [vmem:[#allocation5 + $0x380] ss:$16 sps:$4 sm:$0xff]  }
  0xb6   :  { %5039 = vmatprep.subr.bf16.mxu1 %v8529_v25  ;;  %v210_v48 = vld [vmem:[#allocation2] sm:$0xff] }
  0xb7   :  { %v222_v49 = vld [vmem:[#allocation2 + $0x60] sm:$0xff] }
  0xb8   :  { %4997 = vmatpush1.bf16.msra.mxu0 %v8531_v26  ;;  %v8563_v52 = vld [vmem:[#allocation5 + $0x164] ss:$16 sps:$4 sm:$0xff]   ;;  %v10339_v53 = vcombine.high %v210_v48, %v222_v49  ;;  %v8567_v56 = vld [vmem:[#allocation5 + $0x160] ss:$16 sps:$4 sm:$0xff]   ;;  %v10345_v8 = vcombine.low %v210_v48, %v222_v49 }
  0xb9   :  { %5040 = vmatpush1.bf16.msra.mxu1 %v8532_v27  ;;  %4998 = vmatprep.subr.bf16.mxu0 %v8533_v28  ;;  %v8565_v54 = vld [vmem:[#allocation5 + $0x364] ss:$16 sps:$4 sm:$0xff]   ;;  %v8568_v57 = vld [vmem:[#allocation5 + $0x360] ss:$16 sps:$4 sm:$0xff]  }
  0xba   :  { %5041 = vmatprep.subr.bf16.mxu1 %v8535_v29  ;;  %5016 = vmatprep.mubr.bf16.mxu0 %v10339_v53  ;;  %v8569_v58 = vld [vmem:[#allocation5 + $0x144] ss:$16 sps:$4 sm:$0xff]   ;;  %v8573_v60 = vld [vmem:[#allocation5 + $0x140] ss:$16 sps:$4 sm:$0xff]  }
  0xbb   :  { %v8571_v59 = vld [vmem:[#allocation5 + $0x344] ss:$16 sps:$4 sm:$0xff]   ;;  %v8574_v61 = vld [vmem:[#allocation5 + $0x340] ss:$16 sps:$4 sm:$0xff]  }
  0xbc   :  { %4999 = vmatpush1.bf16.msra.mxu0 %v8537_v30  ;;  %v8575_v62 = vld [vmem:[#allocation5 + $0x124] ss:$16 sps:$4 sm:$0xff]   ;;  %v8579_v0 = vld [vmem:[#allocation5 + $0x120] ss:$16 sps:$4 sm:$0xff]  }
  0xbd   :  { %5042 = vmatpush1.bf16.msra.mxu1 %v8538_v31  ;;  %5000 = vmatprep.subr.bf16.mxu0 %v8539_v32  ;;  %v8577_v63 = vld [vmem:[#allocation5 + $0x324] ss:$16 sps:$4 sm:$0xff]   ;;  %v8580_v1 = vld [vmem:[#allocation5 + $0x320] ss:$16 sps:$4 sm:$0xff]  }
  0xbe   :  { %5043 = vmatprep.subr.bf16.mxu1 %v8541_v33  ;;  %v8581_v2 = vld [vmem:[#allocation5 + $0x104] ss:$16 sps:$4 sm:$0xff]   ;;  %v8585_v4 = vld [vmem:[#allocation5 + $0x100] ss:$16 sps:$4 sm:$0xff]  }
  0xbf   :  { %v8583_v3 = vld [vmem:[#allocation5 + $0x304] ss:$16 sps:$4 sm:$0xff]   ;;  %v8586_v5 = vld [vmem:[#allocation5 + $0x300] ss:$16 sps:$4 sm:$0xff]  }
  0xc0   :  { %5001 = vmatpush2.bf16.msra.mxu0 %v8543_v34  ;;  %v8589_v6 = vld [vmem:[#allocation5 + $0x4e4] ss:$16 sps:$4 sm:$0xff]   ;;  %v8587_v10 = vld [vmem:[#allocation5 + $0x4e0] ss:$16 sps:$4 sm:$0xff]  }
  0xc1   :  { %5044 = vmatpush2.bf16.msra.mxu1 %v8544_v35  ;;  %5002 = vmatprep.subr.bf16.mxu0 %v8545_v36  ;;  %v8592_v7 = vld [vmem:[#allocation5 + $0x6e4] ss:$16 sps:$4 sm:$0xff]   ;;  %v8590_v11 = vld [vmem:[#allocation5 + $0x6e0] ss:$16 sps:$4 sm:$0xff]  }
  0xc2   :  { %5045 = vmatprep.subr.bf16.mxu1 %v8547_v37  ;;  %v8595_v12 = vld [vmem:[#allocation5 + $0x4c4] ss:$16 sps:$4 sm:$0xff]   ;;  %v8593_v14 = vld [vmem:[#allocation5 + $0x4c0] ss:$16 sps:$4 sm:$0xff]  }
  0xc3   :  { %v8598_v13 = vld [vmem:[#allocation5 + $0x6c4] ss:$16 sps:$4 sm:$0xff]   ;;  %v8596_v15 = vld [vmem:[#allocation5 + $0x6c0] ss:$16 sps:$4 sm:$0xff]  }
  0xc4   :  { %5003 = vmatpush2.bf16.msra.mxu0 %v8549_v38  ;;  %v8601_v16 = vld [vmem:[#allocation5 + $0x4a4] ss:$16 sps:$4 sm:$0xff]   ;;  %v8599_v18 = vld [vmem:[#allocation5 + $0x4a0] ss:$16 sps:$4 sm:$0xff]   ;;  %v10355_v38 = vld [vmem:[#allocation2 + $0x18] sm:$0xff] }
  0xc5   :  { %5046 = vmatpush2.bf16.msra.mxu1 %v8550_v39  ;;  %5004 = vmatprep.subr.bf16.mxu0 %v8551_v40  ;;  %v8604_v17 = vld [vmem:[#allocation5 + $0x6a4] ss:$16 sps:$4 sm:$0xff]   ;;  %v8602_v19 = vld [vmem:[#allocation5 + $0x6a0] ss:$16 sps:$4 sm:$0xff]   ;;  %v10357_v39 = vld [vmem:[#allocation2 + $0x78] sm:$0xff] }
  0xc6   :  { %5047 = vmatprep.subr.bf16.mxu1 %v8553_v41  ;;  %v8607_v20 = vld [vmem:[#allocation5 + $0x484] ss:$16 sps:$4 sm:$0xff]   ;;  %v8605_v22 = vld [vmem:[#allocation5 + $0x480] ss:$16 sps:$4 sm:$0xff]  }
  0xc7   :  { %v8610_v21 = vld [vmem:[#allocation5 + $0x684] ss:$16 sps:$4 sm:$0xff]   ;;  %v8608_v23 = vld [vmem:[#allocation5 + $0x680] ss:$16 sps:$4 sm:$0xff]  }
  0xc8   :  { %5005 = vmatpush2.bf16.msra.mxu0 %v8555_v42  ;;  %v8613_v24 = vld [vmem:[#allocation5 + $0x464] ss:$16 sps:$4 sm:$0xff]   ;;  %v8611_v26 = vld [vmem:[#allocation5 + $0x460] ss:$16 sps:$4 sm:$0xff]  }
  0xc9   :  { %5048 = vmatpush2.bf16.msra.mxu1 %v8556_v43  ;;  %5006 = vmatprep.subr.bf16.mxu0 %v8557_v44  ;;  %v8616_v25 = vld [vmem:[#allocation5 + $0x664] ss:$16 sps:$4 sm:$0xff]   ;;  %v8614_v27 = vld [vmem:[#allocation5 + $0x660] ss:$16 sps:$4 sm:$0xff]   ;;  %v10365_v43 = vcombine.high %v10355_v38, %v10357_v39 }
  0xca   :  { %5049 = vmatprep.subr.bf16.mxu1 %v8559_v45  ;;  %v8619_v28 = vld [vmem:[#allocation5 + $0x444] ss:$16 sps:$4 sm:$0xff]   ;;  %v8617_v30 = vld [vmem:[#allocation5 + $0x440] ss:$16 sps:$4 sm:$0xff]  }
  0xcb   :  { %v8622_v29 = vld [vmem:[#allocation5 + $0x644] ss:$16 sps:$4 sm:$0xff]   ;;  %v8620_v31 = vld [vmem:[#allocation5 + $0x640] ss:$16 sps:$4 sm:$0xff]  }
  0xcc   :  { %5007 = vmatpush2.bf16.msra.mxu0 %v8561_v46  ;;  %v8625_v32 = vld [vmem:[#allocation5 + $0x424] ss:$16 sps:$4 sm:$0xff]   ;;  %v8623_v34 = vld [vmem:[#allocation5 + $0x420] ss:$16 sps:$4 sm:$0xff]  }
  0xcd   :  { %5050 = vmatpush2.bf16.msra.mxu1 %v8562_v47  ;;  %5008 = vmatprep.subr.bf16.mxu0 %v8563_v52  ;;  %v8628_v33 = vld [vmem:[#allocation5 + $0x624] ss:$16 sps:$4 sm:$0xff]   ;;  %v8626_v35 = vld [vmem:[#allocation5 + $0x620] ss:$16 sps:$4 sm:$0xff]  }
  0xce   :  { %5051 = vmatprep.subr.bf16.mxu1 %v8565_v54  ;;  %v10351_v36 = vld [vmem:[#allocation2 + $0x10] sm:$0xff] }
  0xcf   :  { %v10353_v37 = vld [vmem:[#allocation2 + $0x70] sm:$0xff] }
  0xd0   :  { %5009 = vmatpush2.bf16.msra.mxu0 %v8567_v56  ;;  %v8631_v40 = vld [vmem:[#allocation5 + $0x404] ss:$16 sps:$4 sm:$0xff]   ;;  %v10361_v41 = vcombine.high %v10351_v36, %v10353_v37  ;;  %v8629_v44 = vld [vmem:[#allocation5 + $0x400] ss:$16 sps:$4 sm:$0xff]  }
  0xd1   :  { %5052 = vmatpush2.bf16.msra.mxu1 %v8568_v57  ;;  %5010 = vmatprep.subr.bf16.mxu0 %v8569_v58  ;;  %v8634_v42 = vld [vmem:[#allocation5 + $0x604] ss:$16 sps:$4 sm:$0xff]   ;;  %v8632_v45 = vld [vmem:[#allocation5 + $0x600] ss:$16 sps:$4 sm:$0xff]  }
  0xd2   :  { %5053 = vmatprep.subr.bf16.mxu1 %v8571_v59  ;;  %v8637_v46 = vld [vmem:[#allocation5 + $0x5e4] ss:$16 sps:$4 sm:$0xff]   ;;  %v8635_v48 = vld [vmem:[#allocation5 + $0x5e0] ss:$16 sps:$4 sm:$0xff]  }
  0xd3   :  { %v8640_v47 = vld [vmem:[#allocation5 + $0x7e4] ss:$16 sps:$4 sm:$0xff]   ;;  %v8638_v49 = vld [vmem:[#allocation5 + $0x7e0] ss:$16 sps:$4 sm:$0xff]  }
  0xd4   :  { %5011 = vmatpush2.bf16.msra.mxu0 %v8573_v60  ;;  %v8643_v50 = vld [vmem:[#allocation5 + $0x5c4] ss:$16 sps:$4 sm:$0xff]   ;;  %v8641_v52 = vld [vmem:[#allocation5 + $0x5c0] ss:$16 sps:$4 sm:$0xff]  }
  0xd5   :  { %5054 = vmatpush2.bf16.msra.mxu1 %v8574_v61  ;;  %5012 = vmatprep.subr.bf16.mxu0 %v8575_v62  ;;  %v8646_v51 = vld [vmem:[#allocation5 + $0x7c4] ss:$16 sps:$4 sm:$0xff]   ;;  %v8644_v54 = vld [vmem:[#allocation5 + $0x7c0] ss:$16 sps:$4 sm:$0xff]  }
  0xd6   :  { %5055 = vmatprep.subr.bf16.mxu1 %v8577_v63  ;;  %v8649_v56 = vld [vmem:[#allocation5 + $0x5a4] ss:$16 sps:$4 sm:$0xff]   ;;  %v8647_v58 = vld [vmem:[#allocation5 + $0x5a0] ss:$16 sps:$4 sm:$0xff]  }
  0xd7   :  { %v8652_v57 = vld [vmem:[#allocation5 + $0x7a4] ss:$16 sps:$4 sm:$0xff]   ;;  %v8650_v59 = vld [vmem:[#allocation5 + $0x7a0] ss:$16 sps:$4 sm:$0xff]  }
  0xd8   :  { %5013 = vmatpush2.bf16.msra.mxu0 %v8579_v0  ;;  %v8655_v60 = vld [vmem:[#allocation5 + $0x584] ss:$16 sps:$4 sm:$0xff]   ;;  %v8653_v62 = vld [vmem:[#allocation5 + $0x580] ss:$16 sps:$4 sm:$0xff]  }
  0xd9   :  { %5056 = vmatpush2.bf16.msra.mxu1 %v8580_v1  ;;  %5014 = vmatprep.subr.bf16.mxu0 %v8581_v2  ;;  %v8658_v61 = vld [vmem:[#allocation5 + $0x784] ss:$16 sps:$4 sm:$0xff]   ;;  %v8656_v63 = vld [vmem:[#allocation5 + $0x780] ss:$16 sps:$4 sm:$0xff]  }
  0xda   :  { %5057 = vmatprep.subr.bf16.mxu1 %v8583_v3  ;;  %v8661_v0 = vld [vmem:[#allocation5 + $0x564] ss:$16 sps:$4 sm:$0xff]   ;;  %v8659_v2 = vld [vmem:[#allocation5 + $0x560] ss:$16 sps:$4 sm:$0xff]  }
  0xdb   :  { %v8664_v1 = vld [vmem:[#allocation5 + $0x764] ss:$16 sps:$4 sm:$0xff]   ;;  %v8662_v3 = vld [vmem:[#allocation5 + $0x760] ss:$16 sps:$4 sm:$0xff]  }
  0xdc   :  { %5015 = vmatpush2.bf16.msra.mxu0 %v8585_v4  ;;  %v8667_v4 = vld [vmem:[#allocation5 + $0x544] ss:$16 sps:$4 sm:$0xff]  }
  0xdd   :  { %5058 = vmatpush2.bf16.msra.mxu1 %v8586_v5  ;;  %5070 = vmatprep.subr.bf16.mxu0 %v8589_v6  ;;  %v8670_v5 = vld [vmem:[#allocation5 + $0x744] ss:$16 sps:$4 sm:$0xff]   ;;  %v8665_v6 = vld [vmem:[#allocation5 + $0x540] ss:$16 sps:$4 sm:$0xff]  }
  0xde   :  { %5113 = vmatprep.subr.bf16.mxu1 %v8592_v7  ;;  %v8668_v7 = vld [vmem:[#allocation5 + $0x740] ss:$16 sps:$4 sm:$0xff]  }
  0xdf   :  { %5017 = vmatmul.mubr.bf16.vlgmr.msra.gmra.mxu0 %v10345_v8 }
  0xe0   :  { %5060 = vmatmul.mubr.bf16.vlgmr.msra.gmra.mxu1 %v10347_v9  ;;  %5071 = vmatpush1.bf16.msra.mxu0 %v8587_v10  ;;  %v8673_v10 = vld [vmem:[#allocation5 + $0x524] ss:$16 sps:$4 sm:$0xff]  }
  0xe1   :  { %5114 = vmatpush1.bf16.msra.mxu1 %v8590_v11  ;;  %5072 = vmatprep.subr.bf16.mxu0 %v8595_v12  ;;  %v8676_v11 = vld [vmem:[#allocation5 + $0x724] ss:$16 sps:$4 sm:$0xff]   ;;  %v8671_v12 = vld [vmem:[#allocation5 + $0x520] ss:$16 sps:$4 sm:$0xff]  }
  0xe2   :  { %5115 = vmatprep.subr.bf16.mxu1 %v8598_v13  ;;  %5102 = vmatprep.mubr.bf16.mxu0 %v10361_v41  ;;  %v8674_v13 = vld [vmem:[#allocation5 + $0x720] ss:$16 sps:$4 sm:$0xff]  }
  0xe3   :  { %5145 = vmatprep.mubr.bf16.mxu1 %v10365_v43 }
  0xe4   :  { %5073 = vmatpush1.bf16.msra.mxu0 %v8593_v14  ;;  %v8679_v14 = vld [vmem:[#allocation5 + $0x504] ss:$16 sps:$4 sm:$0xff]  }
  0xe5   :  { %5116 = vmatpush1.bf16.msra.mxu1 %v8596_v15  ;;  %5074 = vmatprep.subr.bf16.mxu0 %v8601_v16  ;;  %v8682_v15 = vld [vmem:[#allocation5 + $0x704] ss:$16 sps:$4 sm:$0xff]   ;;  %v8677_v16 = vld [vmem:[#allocation5 + $0x500] ss:$16 sps:$4 sm:$0xff]  }
  0xe6   :  { %5117 = vmatprep.subr.bf16.mxu1 %v8604_v17  ;;  %v8680_v17 = vld [vmem:[#allocation5 + $0x700] ss:$16 sps:$4 sm:$0xff]  }
  0xe8   :  { %5075 = vmatpush1.bf16.msra.mxu0 %v8599_v18  ;;  %v8685_v18 = vld [vmem:[#allocation5 + $0x8e4] ss:$16 sps:$4 sm:$0xff]  }
  0xe9   :  { %5118 = vmatpush1.bf16.msra.mxu1 %v8602_v19  ;;  %5076 = vmatprep.subr.bf16.mxu0 %v8607_v20  ;;  %v8688_v19 = vld [vmem:[#allocation5 + $0xae4] ss:$16 sps:$4 sm:$0xff]   ;;  %v10371_v20 = vcombine.low %v10351_v36, %v10353_v37  ;;  %v8695_v36 = vld [vmem:[#allocation5 + $0x8a0] ss:$16 sps:$4 sm:$0xff]  }
  0xea   :  { %5119 = vmatprep.subr.bf16.mxu1 %v8610_v21  ;;  %v10375_v21 = vcombine.low %v10355_v38, %v10357_v39  ;;  %v8698_v37 = vld [vmem:[#allocation5 + $0xaa0] ss:$16 sps:$4 sm:$0xff]   ;;  %v8703_v38 = vld [vmem:[#allocation5 + $0x884] ss:$16 sps:$4 sm:$0xff]  }
  0xeb   :  { %v8706_v39 = vld [vmem:[#allocation5 + $0xa84] ss:$16 sps:$4 sm:$0xff]  }
  0xec   :  { %5077 = vmatpush1.bf16.msra.mxu0 %v8605_v22  ;;  %v8683_v22 = vld [vmem:[#allocation5 + $0x8e0] ss:$16 sps:$4 sm:$0xff]  }
  0xed   :  { %5120 = vmatpush1.bf16.msra.mxu1 %v8608_v23  ;;  %5078 = vmatprep.subr.bf16.mxu0 %v8613_v24  ;;  %v8686_v23 = vld [vmem:[#allocation5 + $0xae0] ss:$16 sps:$4 sm:$0xff]   ;;  %v8691_v24 = vld [vmem:[#allocation5 + $0x8c4] ss:$16 sps:$4 sm:$0xff]  }
  0xee   :  { %5121 = vmatprep.subr.bf16.mxu1 %v8616_v25  ;;  %v8694_v25 = vld [vmem:[#allocation5 + $0xac4] ss:$16 sps:$4 sm:$0xff]  }
  0xf0   :  { %5079 = vmatpush1.bf16.msra.mxu0 %v8611_v26  ;;  %v8689_v26 = vld [vmem:[#allocation5 + $0x8c0] ss:$16 sps:$4 sm:$0xff]  }
  0xf1   :  { %5122 = vmatpush1.bf16.msra.mxu1 %v8614_v27  ;;  %5080 = vmatprep.subr.bf16.mxu0 %v8619_v28  ;;  %v8692_v27 = vld [vmem:[#allocation5 + $0xac0] ss:$16 sps:$4 sm:$0xff]  }
  0xf2   :  { %5123 = vmatprep.subr.bf16.mxu1 %v8622_v29  ;;  %v10377_v28 = vld [vmem:[#allocation2 + $0x20] sm:$0xff] }
  0xf3   :  { %v10381_v29 = vld [vmem:[#allocation2 + $0x80] sm:$0xff] }
  0xf4   :  { %5081 = vmatpush1.bf16.msra.mxu0 %v8617_v30  ;;  %v10383_v30 = vld [vmem:[#allocation2 + $0x28] sm:$0xff] }
  0xf5   :  { %5124 = vmatpush1.bf16.msra.mxu1 %v8620_v31  ;;  %5082 = vmatprep.subr.bf16.mxu0 %v8625_v32  ;;  %v10385_v31 = vld [vmem:[#allocation2 + $0x88] sm:$0xff]  ;;  %v8697_v32 = vld [vmem:[#allocation5 + $0x8a4] ss:$16 sps:$4 sm:$0xff]  }
  0xf6   :  { %5125 = vmatprep.subr.bf16.mxu1 %v8628_v33  ;;  %v10389_v33 = vcombine.high %v10377_v28, %v10381_v29 }
  0xf8   :  { %5083 = vmatpush1.bf16.msra.mxu0 %v8623_v34  ;;  %v8700_v34 = vld [vmem:[#allocation5 + $0xaa4] ss:$16 sps:$4 sm:$0xff]  }
  0xf9   :  { %5126 = vmatpush1.bf16.msra.mxu1 %v8626_v35  ;;  %5084 = vmatprep.subr.bf16.mxu0 %v8631_v40  ;;  %v10393_v35 = vcombine.high %v10383_v30, %v10385_v31  ;;  %v8701_v40 = vld [vmem:[#allocation5 + $0x880] ss:$16 sps:$4 sm:$0xff]  }
  0xfa   :  { %5127 = vmatprep.subr.bf16.mxu1 %v8634_v42  ;;  %v8704_v42 = vld [vmem:[#allocation5 + $0xa80] ss:$16 sps:$4 sm:$0xff]  }
  0xfc   :  { %5085 = vmatpush1.bf16.msra.mxu0 %v8629_v44  ;;  %v8709_v44 = vld [vmem:[#allocation5 + $0x864] ss:$16 sps:$4 sm:$0xff]  }
  0xfd   :  { %5128 = vmatpush1.bf16.msra.mxu1 %v8632_v45  ;;  %5086 = vmatprep.subr.bf16.mxu0 %v8637_v46  ;;  %v8712_v45 = vld [vmem:[#allocation5 + $0xa64] ss:$16 sps:$4 sm:$0xff]   ;;  %v8707_v46 = vld [vmem:[#allocation5 + $0x860] ss:$16 sps:$4 sm:$0xff]  }
  0xfe   :  { %5129 = vmatprep.subr.bf16.mxu1 %v8640_v47  ;;  %v8710_v47 = vld [vmem:[#allocation5 + $0xa60] ss:$16 sps:$4 sm:$0xff]  }
 0x100   :  { %5087 = vmatpush2.bf16.msra.mxu0 %v8635_v48  ;;  %v8715_v48 = vld [vmem:[#allocation5 + $0x844] ss:$16 sps:$4 sm:$0xff]  }
 0x101   :  { %5130 = vmatpush2.bf16.msra.mxu1 %v8638_v49  ;;  %5088 = vmatprep.subr.bf16.mxu0 %v8643_v50  ;;  %v8718_v49 = vld [vmem:[#allocation5 + $0xa44] ss:$16 sps:$4 sm:$0xff]   ;;  %v8713_v50 = vld [vmem:[#allocation5 + $0x840] ss:$16 sps:$4 sm:$0xff]  }
 0x102   :  { %5131 = vmatprep.subr.bf16.mxu1 %v8646_v51  ;;  %v8716_v51 = vld [vmem:[#allocation5 + $0xa40] ss:$16 sps:$4 sm:$0xff]  }
 0x104   :  { %5089 = vmatpush2.bf16.msra.mxu0 %v8641_v52  ;;  %v8721_v52 = vld [vmem:[#allocation5 + $0x824] ss:$16 sps:$4 sm:$0xff]  }
 0x105   :  { %5132 = vmatpush2.bf16.msra.mxu1 %v8644_v54  ;;  %5090 = vmatprep.subr.bf16.mxu0 %v8649_v56  ;;  %v8724_v54 = vld [vmem:[#allocation5 + $0xa24] ss:$16 sps:$4 sm:$0xff]   ;;  %v8719_v56 = vld [vmem:[#allocation5 + $0x820] ss:$16 sps:$4 sm:$0xff]  }
 0x106   :  { %5133 = vmatprep.subr.bf16.mxu1 %v8652_v57  ;;  %v8722_v57 = vld [vmem:[#allocation5 + $0xa20] ss:$16 sps:$4 sm:$0xff]  }
 0x108   :  { %5091 = vmatpush2.bf16.msra.mxu0 %v8647_v58  ;;  %v8727_v58 = vld [vmem:[#allocation5 + $0x804] ss:$16 sps:$4 sm:$0xff]  }
 0x109   :  { %5134 = vmatpush2.bf16.msra.mxu1 %v8650_v59  ;;  %5092 = vmatprep.subr.bf16.mxu0 %v8655_v60  ;;  %v8730_v59 = vld [vmem:[#allocation5 + $0xa04] ss:$16 sps:$4 sm:$0xff]   ;;  %v8725_v60 = vld [vmem:[#allocation5 + $0x800] ss:$16 sps:$4 sm:$0xff]  }
 0x10a   :  { %5135 = vmatprep.subr.bf16.mxu1 %v8658_v61  ;;  %v8728_v61 = vld [vmem:[#allocation5 + $0xa00] ss:$16 sps:$4 sm:$0xff]  }
 0x10c   :  { %5093 = vmatpush2.bf16.msra.mxu0 %v8653_v62  ;;  %v8733_v62 = vld [vmem:[#allocation5 + $0x9e4] ss:$16 sps:$4 sm:$0xff]  }
 0x10d   :  { %5136 = vmatpush2.bf16.msra.mxu1 %v8656_v63  ;;  %5094 = vmatprep.subr.bf16.mxu0 %v8661_v0  ;;  %v8736_v63 = vld [vmem:[#allocation5 + $0xbe4] ss:$16 sps:$4 sm:$0xff]   ;;  %v8731_v0 = vld [vmem:[#allocation5 + $0x9e0] ss:$16 sps:$4 sm:$0xff]  }
 0x10e   :  { %5137 = vmatprep.subr.bf16.mxu1 %v8664_v1  ;;  %v8734_v1 = vld [vmem:[#allocation5 + $0xbe0] ss:$16 sps:$4 sm:$0xff]  }
 0x110   :  { %5095 = vmatpush2.bf16.msra.mxu0 %v8659_v2  ;;  %v8739_v2 = vld [vmem:[#allocation5 + $0x9c4] ss:$16 sps:$4 sm:$0xff]  }
 0x111   :  { %5138 = vmatpush2.bf16.msra.mxu1 %v8662_v3  ;;  %5096 = vmatprep.subr.bf16.mxu0 %v8667_v4  ;;  %v8742_v3 = vld [vmem:[#allocation5 + $0xbc4] ss:$16 sps:$4 sm:$0xff]   ;;  %v8737_v4 = vld [vmem:[#allocation5 + $0x9c0] ss:$16 sps:$4 sm:$0xff]  }
 0x112   :  { %5139 = vmatprep.subr.bf16.mxu1 %v8670_v5  ;;  %v8740_v5 = vld [vmem:[#allocation5 + $0xbc0] ss:$16 sps:$4 sm:$0xff]  }
 0x114   :  { %5097 = vmatpush2.bf16.msra.mxu0 %v8665_v6  ;;  %v8745_v6 = vld [vmem:[#allocation5 + $0x9a4] ss:$16 sps:$4 sm:$0xff]  }
 0x115   :  { %5140 = vmatpush2.bf16.msra.mxu1 %v8668_v7  ;;  %5098 = vmatprep.subr.bf16.mxu0 %v8673_v10  ;;  %v8748_v7 = vld [vmem:[#allocation5 + $0xba4] ss:$16 sps:$4 sm:$0xff]   ;;  %v8743_v10 = vld [vmem:[#allocation5 + $0x9a0] ss:$16 sps:$4 sm:$0xff]  }
 0x116   :  { %5141 = vmatprep.subr.bf16.mxu1 %v8676_v11  ;;  %v8746_v11 = vld [vmem:[#allocation5 + $0xba0] ss:$16 sps:$4 sm:$0xff]  }
 0x118   :  { %5099 = vmatpush2.bf16.msra.mxu0 %v8671_v12  ;;  %v8751_v12 = vld [vmem:[#allocation5 + $0x984] ss:$16 sps:$4 sm:$0xff]  }
 0x119   :  { %5142 = vmatpush2.bf16.msra.mxu1 %v8674_v13  ;;  %5100 = vmatprep.subr.bf16.mxu0 %v8679_v14  ;;  %v8754_v13 = vld [vmem:[#allocation5 + $0xb84] ss:$16 sps:$4 sm:$0xff]   ;;  %v8749_v14 = vld [vmem:[#allocation5 + $0x980] ss:$16 sps:$4 sm:$0xff]  }
 0x11a   :  { %5143 = vmatprep.subr.bf16.mxu1 %v8682_v15  ;;  %v8752_v15 = vld [vmem:[#allocation5 + $0xb80] ss:$16 sps:$4 sm:$0xff]  }
 0x11c   :  { %5101 = vmatpush2.bf16.msra.mxu0 %v8677_v16  ;;  %v8757_v16 = vld [vmem:[#allocation5 + $0x964] ss:$16 sps:$4 sm:$0xff]  }
 0x11d   :  { %5144 = vmatpush2.bf16.msra.mxu1 %v8680_v17  ;;  %5156 = vmatprep.subr.bf16.mxu0 %v8685_v18  ;;  %v8760_v17 = vld [vmem:[#allocation5 + $0xb64] ss:$16 sps:$4 sm:$0xff]   ;;  %v8755_v18 = vld [vmem:[#allocation5 + $0x960] ss:$16 sps:$4 sm:$0xff]  }
 0x11e   :  { %5199 = vmatprep.subr.bf16.mxu1 %v8688_v19  ;;  %v8758_v19 = vld [vmem:[#allocation5 + $0xb60] ss:$16 sps:$4 sm:$0xff]  }
 0x11f   :  { %5103 = vmatmul.mubr.bf16.vlgmr.msra.gmra.mxu0 %v10371_v20 }
 0x120   :  { %5146 = vmatmul.mubr.bf16.vlgmr.msra.gmra.mxu1 %v10375_v21  ;;  %5157 = vmatpush1.bf16.msra.mxu0 %v8683_v22  ;;  %v8763_v22 = vld [vmem:[#allocation5 + $0x944] ss:$16 sps:$4 sm:$0xff]  }
 0x121   :  { %5200 = vmatpush1.bf16.msra.mxu1 %v8686_v23  ;;  %5158 = vmatprep.subr.bf16.mxu0 %v8691_v24  ;;  %v8766_v23 = vld [vmem:[#allocation5 + $0xb44] ss:$16 sps:$4 sm:$0xff]   ;;  %v8761_v24 = vld [vmem:[#allocation5 + $0x940] ss:$16 sps:$4 sm:$0xff]  }
 0x122   :  { %5201 = vmatprep.subr.bf16.mxu1 %v8694_v25  ;;  %5188 = vmatprep.mubr.bf16.mxu0 %v10389_v33  ;;  %v8764_v25 = vld [vmem:[#allocation5 + $0xb40] ss:$16 sps:$4 sm:$0xff]  }
 0x123   :  { %5231 = vmatprep.mubr.bf16.mxu1 %v10393_v35 }
 0x124   :  { %5159 = vmatpush1.bf16.msra.mxu0 %v8689_v26  ;;  %v8769_v26 = vld [vmem:[#allocation5 + $0x924] ss:$16 sps:$4 sm:$0xff]  }
 0x125   :  { %5202 = vmatpush1.bf16.msra.mxu1 %v8692_v27  ;;  %5160 = vmatprep.subr.bf16.mxu0 %v8697_v32  ;;  %v8772_v27 = vld [vmem:[#allocation5 + $0xb24] ss:$16 sps:$4 sm:$0xff]   ;;  %v8767_v32 = vld [vmem:[#allocation5 + $0x920] ss:$16 sps:$4 sm:$0xff]  }
 0x126   :  { %5203 = vmatprep.subr.bf16.mxu1 %v8700_v34  ;;  %v8770_v34 = vld [vmem:[#allocation5 + $0xb20] ss:$16 sps:$4 sm:$0xff]  }
 0x128   :  { %5161 = vmatpush1.bf16.msra.mxu0 %v8695_v36  ;;  %v8775_v36 = vld [vmem:[#allocation5 + $0x904] ss:$16 sps:$4 sm:$0xff]  }
 0x129   :  { %5204 = vmatpush1.bf16.msra.mxu1 %v8698_v37  ;;  %5162 = vmatprep.subr.bf16.mxu0 %v8703_v38  ;;  %v8778_v37 = vld [vmem:[#allocation5 + $0xb04] ss:$16 sps:$4 sm:$0xff]   ;;  %v8773_v38 = vld [vmem:[#allocation5 + $0x900] ss:$16 sps:$4 sm:$0xff]  }
 0x12a   :  { %5205 = vmatprep.subr.bf16.mxu1 %v8706_v39  ;;  %v8776_v39 = vld [vmem:[#allocation5 + $0xb00] ss:$16 sps:$4 sm:$0xff]  }
 0x12c   :  { %5163 = vmatpush1.bf16.msra.mxu0 %v8701_v40  ;;  %v8781_v40 = vld [vmem:[#allocation5 + $0xce4] ss:$16 sps:$4 sm:$0xff]  }
 0x12d   :  { %5206 = vmatpush1.bf16.msra.mxu1 %v8704_v42  ;;  %5164 = vmatprep.subr.bf16.mxu0 %v8709_v44  ;;  %v8784_v42 = vld [vmem:[#allocation5 + $0xee4] ss:$16 sps:$4 sm:$0xff]  }
 0x12e   :  { %5207 = vmatprep.subr.bf16.mxu1 %v8712_v45  ;;  %v10397_v44 = vld [vmem:[#allocation2 + $0x30] sm:$0xff] }
 0x12f   :  { %v8779_v45 = vld [vmem:[#allocation5 + $0xce0] ss:$16 sps:$4 sm:$0xff]  }
 0x130   :  { %5165 = vmatpush1.bf16.msra.mxu0 %v8707_v46  ;;  %v10399_v46 = vld [vmem:[#allocation2 + $0x90] sm:$0xff] }
 0x131   :  { %5208 = vmatpush1.bf16.msra.mxu1 %v8710_v47  ;;  %5166 = vmatprep.subr.bf16.mxu0 %v8715_v48  ;;  %v10401_v47 = vld [vmem:[#allocation2 + $0x38] sm:$0xff]  ;;  %v10405_v48 = vcombine.low %v10377_v28, %v10381_v29  ;;  %v8785_v29 = vld [vmem:[#allocation5 + $0xcc0] ss:$16 sps:$4 sm:$0xff]  }
 0x132   :  { %5209 = vmatprep.subr.bf16.mxu1 %v8718_v49  ;;  %v10409_v49 = vcombine.low %v10383_v30, %v10385_v31  ;;  %v8788_v30 = vld [vmem:[#allocation5 + $0xec0] ss:$16 sps:$4 sm:$0xff]   ;;  %v8793_v31 = vld [vmem:[#allocation5 + $0xca4] ss:$16 sps:$4 sm:$0xff]  }
 0x134   :  { %5167 = vmatpush1.bf16.msra.mxu0 %v8713_v50  ;;  %v10411_v50 = vld [vmem:[#allocation2 + $0x98] sm:$0xff] }
 0x135   :  { %5210 = vmatpush1.bf16.msra.mxu1 %v8716_v51  ;;  %5168 = vmatprep.subr.bf16.mxu0 %v8721_v52  ;;  %v8782_v51 = vld [vmem:[#allocation5 + $0xee0] ss:$16 sps:$4 sm:$0xff]   ;;  %v8787_v52 = vld [vmem:[#allocation5 + $0xcc4] ss:$16 sps:$4 sm:$0xff]   ;;  %v10419_v28 = vcombine.high %v10401_v47, %v10411_v50 }
 0x136   :  { %5211 = vmatprep.subr.bf16.mxu1 %v8724_v54  ;;  %v8790_v54 = vld [vmem:[#allocation5 + $0xec4] ss:$16 sps:$4 sm:$0xff]  }
 0x138   :  { %5169 = vmatpush1.bf16.msra.mxu0 %v8719_v56  ;;  %v10415_v56 = vcombine.high %v10397_v44, %v10399_v46 }
 0x139   :  { %5212 = vmatpush1.bf16.msra.mxu1 %v8722_v57  ;;  %5170 = vmatprep.subr.bf16.mxu0 %v8727_v58  ;;  %v8796_v57 = vld [vmem:[#allocation5 + $0xea4] ss:$16 sps:$4 sm:$0xff]   ;;  %v8791_v58 = vld [vmem:[#allocation5 + $0xca0] ss:$16 sps:$4 sm:$0xff]  }
 0x13a   :  { %5213 = vmatprep.subr.bf16.mxu1 %v8730_v59  ;;  %v8794_v59 = vld [vmem:[#allocation5 + $0xea0] ss:$16 sps:$4 sm:$0xff]  }
 0x13c   :  { %5171 = vmatpush1.bf16.msra.mxu0 %v8725_v60  ;;  %v8799_v60 = vld [vmem:[#allocation5 + $0xc84] ss:$16 sps:$4 sm:$0xff]  }
 0x13d   :  { %5214 = vmatpush1.bf16.msra.mxu1 %v8728_v61  ;;  %5172 = vmatprep.subr.bf16.mxu0 %v8733_v62  ;;  %v8802_v61 = vld [vmem:[#allocation5 + $0xe84] ss:$16 sps:$4 sm:$0xff]   ;;  %v8797_v62 = vld [vmem:[#allocation5 + $0xc80] ss:$16 sps:$4 sm:$0xff]  }
 0x13e   :  { %5215 = vmatprep.subr.bf16.mxu1 %v8736_v63  ;;  %v8800_v63 = vld [vmem:[#allocation5 + $0xe80] ss:$16 sps:$4 sm:$0xff]  }
 0x140   :  { %5173 = vmatpush2.bf16.msra.mxu0 %v8731_v0  ;;  %v8805_v0 = vld [vmem:[#allocation5 + $0xc64] ss:$16 sps:$4 sm:$0xff]  }
 0x141   :  { %5216 = vmatpush2.bf16.msra.mxu1 %v8734_v1  ;;  %5174 = vmatprep.subr.bf16.mxu0 %v8739_v2  ;;  %v8808_v1 = vld [vmem:[#allocation5 + $0xe64] ss:$16 sps:$4 sm:$0xff]   ;;  %v8803_v2 = vld [vmem:[#allocation5 + $0xc60] ss:$16 sps:$4 sm:$0xff]  }
 0x142   :  { %5217 = vmatprep.subr.bf16.mxu1 %v8742_v3  ;;  %v8806_v3 = vld [vmem:[#allocation5 + $0xe60] ss:$16 sps:$4 sm:$0xff]  }
 0x144   :  { %5175 = vmatpush2.bf16.msra.mxu0 %v8737_v4  ;;  %v8811_v4 = vld [vmem:[#allocation5 + $0xc44] ss:$16 sps:$4 sm:$0xff]  }
 0x145   :  { %5218 = vmatpush2.bf16.msra.mxu1 %v8740_v5  ;;  %5176 = vmatprep.subr.bf16.mxu0 %v8745_v6  ;;  %v8814_v5 = vld [vmem:[#allocation5 + $0xe44] ss:$16 sps:$4 sm:$0xff]   ;;  %v8809_v6 = vld [vmem:[#allocation5 + $0xc40] ss:$16 sps:$4 sm:$0xff]  }
 0x146   :  { %5219 = vmatprep.subr.bf16.mxu1 %v8748_v7  ;;  %v8812_v7 = vld [vmem:[#allocation5 + $0xe40] ss:$16 sps:$4 sm:$0xff]  }
 0x148   :  { %5177 = vmatpush2.bf16.msra.mxu0 %v8743_v10  ;;  %v8817_v10 = vld [vmem:[#allocation5 + $0xc24] ss:$16 sps:$4 sm:$0xff]  }
 0x149   :  { %5220 = vmatpush2.bf16.msra.mxu1 %v8746_v11  ;;  %5178 = vmatprep.subr.bf16.mxu0 %v8751_v12  ;;  %v8820_v11 = vld [vmem:[#allocation5 + $0xe24] ss:$16 sps:$4 sm:$0xff]   ;;  %v8815_v12 = vld [vmem:[#allocation5 + $0xc20] ss:$16 sps:$4 sm:$0xff]  }
 0x14a   :  { %5221 = vmatprep.subr.bf16.mxu1 %v8754_v13  ;;  %v8818_v13 = vld [vmem:[#allocation5 + $0xe20] ss:$16 sps:$4 sm:$0xff]  }
 0x14c   :  { %5179 = vmatpush2.bf16.msra.mxu0 %v8749_v14  ;;  %v8823_v14 = vld [vmem:[#allocation5 + $0xc04] ss:$16 sps:$4 sm:$0xff]  }
 0x14d   :  { %5222 = vmatpush2.bf16.msra.mxu1 %v8752_v15  ;;  %5180 = vmatprep.subr.bf16.mxu0 %v8757_v16  ;;  %v8826_v15 = vld [vmem:[#allocation5 + $0xe04] ss:$16 sps:$4 sm:$0xff]   ;;  %v8821_v16 = vld [vmem:[#allocation5 + $0xc00] ss:$16 sps:$4 sm:$0xff]  }
 0x14e   :  { %5223 = vmatprep.subr.bf16.mxu1 %v8760_v17  ;;  %v8824_v17 = vld [vmem:[#allocation5 + $0xe00] ss:$16 sps:$4 sm:$0xff]  }
 0x150   :  { %5181 = vmatpush2.bf16.msra.mxu0 %v8755_v18  ;;  %v8829_v18 = vld [vmem:[#allocation5 + $0xde4] ss:$16 sps:$4 sm:$0xff]  }
 0x151   :  { %5224 = vmatpush2.bf16.msra.mxu1 %v8758_v19  ;;  %5182 = vmatprep.subr.bf16.mxu0 %v8763_v22  ;;  %v8832_v19 = vld [vmem:[#allocation5 + $0xfe4] ss:$16 sps:$4 sm:$0xff]   ;;  %v8827_v22 = vld [vmem:[#allocation5 + $0xde0] ss:$16 sps:$4 sm:$0xff]  }
 0x152   :  { %5225 = vmatprep.subr.bf16.mxu1 %v8766_v23  ;;  %v8830_v23 = vld [vmem:[#allocation5 + $0xfe0] ss:$16 sps:$4 sm:$0xff]  }
 0x154   :  { %5183 = vmatpush2.bf16.msra.mxu0 %v8761_v24  ;;  %v8835_v24 = vld [vmem:[#allocation5 + $0xdc4] ss:$16 sps:$4 sm:$0xff]  }
 0x155   :  { %5226 = vmatpush2.bf16.msra.mxu1 %v8764_v25  ;;  %5184 = vmatprep.subr.bf16.mxu0 %v8769_v26  ;;  %v8838_v25 = vld [vmem:[#allocation5 + $0xfc4] ss:$16 sps:$4 sm:$0xff]   ;;  %v8833_v26 = vld [vmem:[#allocation5 + $0xdc0] ss:$16 sps:$4 sm:$0xff]  }
 0x156   :  { %5227 = vmatprep.subr.bf16.mxu1 %v8772_v27  ;;  %v8836_v27 = vld [vmem:[#allocation5 + $0xfc0] ss:$16 sps:$4 sm:$0xff]  }
 0x158   :  { %5185 = vmatpush2.bf16.msra.mxu0 %v8767_v32  ;;  %v8841_v32 = vld [vmem:[#allocation5 + $0xda4] ss:$16 sps:$4 sm:$0xff]  }
 0x159   :  { %5228 = vmatpush2.bf16.msra.mxu1 %v8770_v34  ;;  %5186 = vmatprep.subr.bf16.mxu0 %v8775_v36  ;;  %v8844_v34 = vld [vmem:[#allocation5 + $0xfa4] ss:$16 sps:$4 sm:$0xff]   ;;  %v8839_v36 = vld [vmem:[#allocation5 + $0xda0] ss:$16 sps:$4 sm:$0xff]  }
 0x15a   :  { %5229 = vmatprep.subr.bf16.mxu1 %v8778_v37  ;;  %v8842_v37 = vld [vmem:[#allocation5 + $0xfa0] ss:$16 sps:$4 sm:$0xff]  }
 0x15c   :  { %5187 = vmatpush2.bf16.msra.mxu0 %v8773_v38  ;;  %v8847_v38 = vld [vmem:[#allocation5 + $0xd84] ss:$16 sps:$4 sm:$0xff]  }
 0x15d   :  { %5230 = vmatpush2.bf16.msra.mxu1 %v8776_v39  ;;  %5242 = vmatprep.subr.bf16.mxu0 %v8781_v40  ;;  %v8850_v39 = vld [vmem:[#allocation5 + $0xf84] ss:$16 sps:$4 sm:$0xff]   ;;  %v8845_v40 = vld [vmem:[#allocation5 + $0xd80] ss:$16 sps:$4 sm:$0xff]  }
 0x15e   :  { %5285 = vmatprep.subr.bf16.mxu1 %v8784_v42  ;;  %v8848_v42 = vld [vmem:[#allocation5 + $0xf80] ss:$16 sps:$4 sm:$0xff]  }
 0x15f   :  { %5189 = vmatmul.mubr.bf16.vlgmr.msra.gmra.mxu0 %v10405_v48 }
 0x160   :  { %5232 = vmatmul.mubr.bf16.vlgmr.msra.gmra.mxu1 %v10409_v49  ;;  %5243 = vmatpush1.bf16.msra.mxu0 %v8779_v45  ;;  %v8853_v45 = vld [vmem:[#allocation5 + $0xd64] ss:$16 sps:$4 sm:$0xff]  }
 0x161   :  { %5286 = vmatpush1.bf16.msra.mxu1 %v8782_v51  ;;  %5244 = vmatprep.subr.bf16.mxu0 %v8787_v52  ;;  %v8856_v51 = vld [vmem:[#allocation5 + $0xf64] ss:$16 sps:$4 sm:$0xff]   ;;  %v8851_v52 = vld [vmem:[#allocation5 + $0xd60] ss:$16 sps:$4 sm:$0xff]  }
 0x162   :  { %5287 = vmatprep.subr.bf16.mxu1 %v8790_v54  ;;  %5274 = vmatprep.mubr.bf16.mxu0 %v10415_v56  ;;  %v8854_v54 = vld [vmem:[#allocation5 + $0xf60] ss:$16 sps:$4 sm:$0xff]  }
 0x163   :  { %5317 = vmatprep.mubr.bf16.mxu1 %v10419_v28 }
 0x164   :  { %5245 = vmatpush1.bf16.msra.mxu0 %v8785_v29  ;;  %v8859_v29 = vld [vmem:[#allocation5 + $0xd44] ss:$16 sps:$4 sm:$0xff]  }
 0x165   :  { %5288 = vmatpush1.bf16.msra.mxu1 %v8788_v30  ;;  %5246 = vmatprep.subr.bf16.mxu0 %v8793_v31  ;;  %v8862_v30 = vld [vmem:[#allocation5 + $0xf44] ss:$16 sps:$4 sm:$0xff]   ;;  %v8857_v31 = vld [vmem:[#allocation5 + $0xd40] ss:$16 sps:$4 sm:$0xff]  }
 0x166   :  { %5289 = vmatprep.subr.bf16.mxu1 %v8796_v57  ;;  %v8860_v57 = vld [vmem:[#allocation5 + $0xf40] ss:$16 sps:$4 sm:$0xff]  }
 0x168   :  { %5247 = vmatpush1.bf16.msra.mxu0 %v8791_v58  ;;  %v1004_v58 = vlaneseq }
 0x169   :  { %5290 = vmatpush1.bf16.msra.mxu1 %v8794_v59  ;;  %5248 = vmatprep.subr.bf16.mxu0 %v8799_v60  ;;  %v8865_v59 = vld [vmem:[#allocation5 + $0xd24] ss:$16 sps:$4 sm:$0xff]  }
 0x16a   :  { %5291 = vmatprep.subr.bf16.mxu1 %v8802_v61  ;;  %v8868_v60 = vld [vmem:[#allocation5 + $0xf24] ss:$16 sps:$4 sm:$0xff]   ;;  %v8863_v61 = vld [vmem:[#allocation5 + $0xd20] ss:$16 sps:$4 sm:$0xff]  }
 0x16c   :  { %5249 = vmatpush1.bf16.msra.mxu0 %v8797_v62  ;;  %v8866_v62 = vld [vmem:[#allocation5 + $0xf20] ss:$16 sps:$4 sm:$0xff]  }
 0x16d   :  { %5292 = vmatpush1.bf16.msra.mxu1 %v8800_v63  ;;  %5250 = vmatprep.subr.bf16.mxu0 %v8805_v0  ;;  %v10425_v63 = vshrl.u32 %v1004_v58, 7  ;;  %v8871_v0 = vld [vmem:[#allocation5 + $0xd04] ss:$16 sps:$4 sm:$0xff]   ;;  %v8902_v58 = vld [vmem:[#allocation5 + $0x1260] ss:$16 sps:$4 sm:$0xff]  }
 0x16e   :  { %5293 = vmatprep.subr.bf16.mxu1 %v8808_v1  ;;  %v8874_v1 = vld [vmem:[#allocation5 + $0xf04] ss:$16 sps:$4 sm:$0xff]  }
 0x170   :  { %5251 = vmatpush1.bf16.msra.mxu0 %v8803_v2  ;;  %v8869_v2 = vld [vmem:[#allocation5 + $0xd00] ss:$16 sps:$4 sm:$0xff]  }
 0x171   :  { %5294 = vmatpush1.bf16.msra.mxu1 %v8806_v3  ;;  %5252 = vmatprep.subr.bf16.mxu0 %v8811_v4  ;;  %v8872_v3 = vld [vmem:[#allocation5 + $0xf00] ss:$16 sps:$4 sm:$0xff]  }
 0x172   :  { %5295 = vmatprep.subr.bf16.mxu1 %v8814_v5  ;;  %v1002_v4 = vld [vmem:[#allocation7] sm:$0xf]  ;;  %v10428_v5 = vsub.s32 0, %v10425_v63 }
 0x174   :  { %5253 = vmatpush1.bf16.msra.mxu0 %v8809_v6  ;;  %v8877_v6 = vld [vmem:[#allocation5 + $0x10e4] ss:$16 sps:$4 sm:$0xff]  }
 0x175   :  { %5296 = vmatpush1.bf16.msra.mxu1 %v8812_v7  ;;  %5254 = vmatprep.subr.bf16.mxu0 %v8817_v10  ;;  %v8880_v7 = vld [vmem:[#allocation5 + $0x12e4] ss:$16 sps:$4 sm:$0xff]  }
 0x176   :  { %5297 = vmatprep.subr.bf16.mxu1 %v8820_v11  ;;  %v10430_v10 = vld [vmem:[#allocation2 + $0x40] sm:$0xff] }
 0x177   :  { %v8875_v11 = vld [vmem:[#allocation5 + $0x10e0] ss:$16 sps:$4 sm:$0xff]  }
 0x178   :  { %5255 = vmatpush1.bf16.msra.mxu0 %v8815_v12  ;;  %v10432_v12 = vld [vmem:[#allocation2 + $0xa0] sm:$0xff] }
 0x179   :  { %5298 = vmatpush1.bf16.msra.mxu1 %v8818_v13  ;;  %5256 = vmatprep.subr.bf16.mxu0 %v8823_v14  ;;  %v10434_v13 = vld [vmem:[#allocation2 + $0x48] sm:$0xff]  ;;  %v10438_v14 = vcombine.low %v10397_v44, %v10399_v46 }
 0x17a   :  { %5299 = vmatprep.subr.bf16.mxu1 %v8826_v15  ;;  %v10442_v15 = vcombine.low %v10401_v47, %v10411_v50  ;;  %v8881_v50 = vld [vmem:[#allocation5 + $0x10c0] ss:$16 sps:$4 sm:$0xff]  }
 0x17c   :  { %5257 = vmatpush1.bf16.msra.mxu0 %v8821_v16  ;;  %v10444_v16 = vld [vmem:[#allocation2 + $0xa8] sm:$0xff] }
 0x17d   :  { %5300 = vmatpush1.bf16.msra.mxu1 %v8824_v17  ;;  %5258 = vmatprep.subr.bf16.mxu0 %v8829_v18  ;;  %v1007_v17 = vrot.slane %v1002_v4, %v10428_v5  ;;  %v8878_v18 = vld [vmem:[#allocation5 + $0x12e0] ss:$16 sps:$4 sm:$0xff]   ;;  %v10453_v44 = vcombine.high %v10434_v13, %v10444_v16  ;;  %v8919_v4 = vld [vmem:[#allocation5 + $0x1004] ss:$16 sps:$4 sm:$0xff]  }
 0x17e   :  { %5301 = vmatprep.subr.bf16.mxu1 %v8832_v19  ;;  %v8883_v19 = vld [vmem:[#allocation5 + $0x10c4] ss:$16 sps:$4 sm:$0xff]  }
 0x180   :  { %5259 = vmatpush2.bf16.msra.mxu0 %v8827_v22  ;;  %v8886_v22 = vld [vmem:[#allocation5 + $0x12c4] ss:$16 sps:$4 sm:$0xff]  }
 0x181   :  { %5302 = vmatpush2.bf16.msra.mxu1 %v8830_v23  ;;  %5260 = vmatprep.subr.bf16.mxu0 %v8835_v24  ;;  %v10449_v23 = vcombine.high %v10430_v10, %v10432_v12 }
 0x182   :  { %5303 = vmatprep.subr.bf16.mxu1 %v8838_v25  ;;  %v8884_v25 = vld [vmem:[#allocation5 + $0x12c0] ss:$16 sps:$4 sm:$0xff]  }
 0x184   :  { %5261 = vmatpush2.bf16.msra.mxu0 %v8833_v26 }
 0x185   :  { %5304 = vmatpush2.bf16.msra.mxu1 %v8836_v27  ;;  %5262 = vmatprep.subr.bf16.mxu0 %v8841_v32  ;;  %v8889_v32 = vld [vmem:[#allocation5 + $0x10a4] ss:$16 sps:$4 sm:$0xff]  }
 0x186   :  { %5305 = vmatprep.subr.bf16.mxu1 %v8844_v34  ;;  %v8892_v34 = vld [vmem:[#allocation5 + $0x12a4] ss:$16 sps:$4 sm:$0xff]  }
 0x188   :  { %5263 = vmatpush2.bf16.msra.mxu0 %v8839_v36 }
 0x189   :  { %5306 = vmatpush2.bf16.msra.mxu1 %v8842_v37  ;;  %5264 = vmatprep.subr.bf16.mxu0 %v8847_v38  ;;  %v8887_v38 = vld [vmem:[#allocation5 + $0x10a0] ss:$16 sps:$4 sm:$0xff]  }
 0x18a   :  { %5307 = vmatprep.subr.bf16.mxu1 %v8850_v39 }
 0x18c   :  { %5265 = vmatpush2.bf16.msra.mxu0 %v8845_v40  ;;  %v8890_v40 = vld [vmem:[#allocation5 + $0x12a0] ss:$16 sps:$4 sm:$0xff]  }
 0x18d   :  { %5308 = vmatpush2.bf16.msra.mxu1 %v8848_v42  ;;  %5266 = vmatprep.subr.bf16.mxu0 %v8853_v45  ;;  %v8895_v45 = vld [vmem:[#allocation5 + $0x1084] ss:$16 sps:$4 sm:$0xff]  }
 0x18e   :  { %5309 = vmatprep.subr.bf16.mxu1 %v8856_v51  ;;  %v8898_v51 = vld [vmem:[#allocation5 + $0x1284] ss:$16 sps:$4 sm:$0xff]  }
 0x190   :  { %5267 = vmatpush2.bf16.msra.mxu0 %v8851_v52 }
 0x191   :  { %5310 = vmatpush2.bf16.msra.mxu1 %v8854_v54  ;;  %5268 = vmatprep.subr.bf16.mxu0 %v8859_v29  ;;  %v8893_v54 = vld [vmem:[#allocation5 + $0x1080] ss:$16 sps:$4 sm:$0xff]  }
 0x192   :  { %5311 = vmatprep.subr.bf16.mxu1 %v8862_v30  ;;  %v8896_v29 = vld [vmem:[#allocation5 + $0x1280] ss:$16 sps:$4 sm:$0xff]   ;;  %v8901_v30 = vld [vmem:[#allocation5 + $0x1064] ss:$16 sps:$4 sm:$0xff]  }
 0x194   :  { %5269 = vmatpush2.bf16.msra.mxu0 %v8857_v31  ;;  %v8904_v31 = vld [vmem:[#allocation5 + $0x1264] ss:$16 sps:$4 sm:$0xff]  }
 0x195   :  { %5312 = vmatpush2.bf16.msra.mxu1 %v8860_v57  ;;  %5270 = vmatprep.subr.bf16.mxu0 %v8865_v59  ;;  %v8899_v57 = vld [vmem:[#allocation5 + $0x1060] ss:$16 sps:$4 sm:$0xff]   ;;  %v8907_v59 = vld [vmem:[#allocation5 + $0x1044] ss:$16 sps:$4 sm:$0xff]  }
 0x196   :  { %5313 = vmatprep.subr.bf16.mxu1 %v8868_v60  ;;  %v8910_v60 = vld [vmem:[#allocation5 + $0x1244] ss:$16 sps:$4 sm:$0xff]  }
 0x198   :  { %5271 = vmatpush2.bf16.msra.mxu0 %v8863_v61  ;;  %v8905_v61 = vld [vmem:[#allocation5 + $0x1040] ss:$16 sps:$4 sm:$0xff]  }
 0x199   :  { %5314 = vmatpush2.bf16.msra.mxu1 %v8866_v62  ;;  %5272 = vmatprep.subr.bf16.mxu0 %v8871_v0  ;;  %v8908_v62 = vld [vmem:[#allocation5 + $0x1240] ss:$16 sps:$4 sm:$0xff]   ;;  %v8913_v0 = vld [vmem:[#allocation5 + $0x1024] ss:$16 sps:$4 sm:$0xff]  }
 0x19a   :  { %5315 = vmatprep.subr.bf16.mxu1 %v8874_v1  ;;  %v8916_v1 = vld [vmem:[#allocation5 + $0x1224] ss:$16 sps:$4 sm:$0xff]  }
 0x19c   :  { %5273 = vmatpush2.bf16.msra.mxu0 %v8869_v2  ;;  %v8911_v2 = vld [vmem:[#allocation5 + $0x1020] ss:$16 sps:$4 sm:$0xff]  }
 0x19d   :  { %5316 = vmatpush2.bf16.msra.mxu1 %v8872_v3  ;;  %5328 = vmatprep.subr.bf16.mxu0 %v8877_v6  ;;  %v8914_v3 = vld [vmem:[#allocation5 + $0x1220] ss:$16 sps:$4 sm:$0xff]   ;;  %v8922_v6 = vld [vmem:[#allocation5 + $0x1204] ss:$16 sps:$4 sm:$0xff]  }
 0x19e   :  { %5371 = vmatprep.subr.bf16.mxu1 %v8880_v7  ;;  %v8917_v7 = vld [vmem:[#allocation5 + $0x1000] ss:$16 sps:$4 sm:$0xff]  }
 0x19f   :  { %v5018_v46 = vpop.f32.mrf.mxu0  ;;  %5275 = vmatmul.mubr.bf16.vlgmr.msra.gmra.mxu0 %v10438_v14 }
 0x1a0   :  { %v5061_v47 = vpop.f32.mrf.mxu1  ;;  %5318 = vmatmul.mubr.bf16.vlgmr.msra.gmra.mxu1 %v10442_v15  ;;  %v5019_v24 = vadd.f32 %v5018_v46, %v1007_v17  ;;  %5329 = vmatpush1.bf16.msra.mxu0 %v8875_v11  ;;  %v8920_v11 = vld [vmem:[#allocation5 + $0x1200] ss:$16 sps:$4 sm:$0xff]   ;;  %v8931_v46 = vld [vmem:[#allocation5 + $0x11c4] ss:$16 sps:$4 sm:$0xff]  }
 0x1a1   :  { %5372 = vmatpush1.bf16.msra.mxu1 %v8878_v18  ;;  %v10457_v26 = vpop.f32.mrf.mxu0  ;;  %5330 = vmatprep.subr.bf16.mxu0 %v8883_v19  ;;  %v8928_v18 = vld [vmem:[#allocation5 + $0x13e4] ss:$16 sps:$4 sm:$0xff]   ;;  %v8923_v19 = vld [vmem:[#allocation5 + $0x11e0] ss:$16 sps:$4 sm:$0xff]  }
 0x1a2   :  { %v10459_v27 = vpop.f32.mrf.mxu1  ;;  %5373 = vmatprep.subr.bf16.mxu1 %v8886_v22  ;;  %v10461_v36 = vadd.f32 %v5061_v47, %v5019_v24  ;;  %5360 = vmatprep.mubr.bf16.mxu0 %v10449_v23  ;;  %v8926_v22 = vld [vmem:[#allocation5 + $0x13e0] ss:$16 sps:$4 sm:$0xff]   ;;  %v8934_v47 = vld [vmem:[#allocation5 + $0x13c4] ss:$16 sps:$4 sm:$0xff]  }
 0x1a3   :  { %5403 = vmatprep.mubr.bf16.mxu1 %v10453_v44  ;;  %v5022_v37 = vpop.f32.mrf.mxu0  ;;  %v8932_v24 = vld [vmem:[#allocation5 + $0x13c0] ss:$16 sps:$4 sm:$0xff]  }
 0x1a4   :  { %v5023_v39 = vadd.f32 %v5022_v37, %v1007_v17  ;;  %5331 = vmatpush1.bf16.msra.mxu0 %v8881_v50  ;;  %v5065_v42 = vpop.f32.mrf.mxu1  ;;  %v8925_v17 = vld [vmem:[#allocation5 + $0x11e4] ss:$16 sps:$4 sm:$0xff]   ;;  %v8929_v50 = vld [vmem:[#allocation5 + $0x11c0] ss:$16 sps:$4 sm:$0xff]  }
 0x1a5   :  { %5374 = vmatpush1.bf16.msra.mxu1 %v8884_v25  ;;  %5332 = vmatprep.subr.bf16.mxu0 %v8889_v32  ;;  %v8937_v25 = vld [vmem:[#allocation5 + $0x11a4] ss:$16 sps:$4 sm:$0xff]   ;;  %v8938_v37 = vld [vmem:[#allocation5 + $0x13a0] ss:$16 sps:$4 sm:$0xff]  }
 0x1a6   :  { %5375 = vmatprep.subr.bf16.mxu1 %v8892_v34  ;;  %v10465_v52 = vadd.f32 %v5065_v42, %v5023_v39  ;;  %v8940_v32 = vld [vmem:[#allocation5 + $0x13a4] ss:$16 sps:$4 sm:$0xff]   ;;  %v8935_v34 = vld [vmem:[#allocation5 + $0x11a0] ss:$16 sps:$4 sm:$0xff]  }
 0x1a7   :  { %v8946_v39 = vld [vmem:[#allocation5 + $0x1384] ss:$16 sps:$4 sm:$0xff]   ;;  %v8944_v42 = vld [vmem:[#allocation5 + $0x1380] ss:$16 sps:$4 sm:$0xff]  }
 0x1a8   :  { %5333 = vmatpush1.bf16.msra.mxu0 %v8887_v38  ;;  %v8943_v38 = vld [vmem:[#allocation5 + $0x1184] ss:$16 sps:$4 sm:$0xff]  }
 0x1a9   :  { %5376 = vmatpush1.bf16.msra.mxu1 %v8890_v40  ;;  %5334 = vmatprep.subr.bf16.mxu0 %v8895_v45  ;;  %v8941_v40 = vld [vmem:[#allocation5 + $0x1180] ss:$16 sps:$4 sm:$0xff]   ;;  %v8949_v45 = vld [vmem:[#allocation5 + $0x1164] ss:$16 sps:$4 sm:$0xff]  }
 0x1aa   :  { %5377 = vmatprep.subr.bf16.mxu1 %v8898_v51  ;;  %v8952_v51 = vld [vmem:[#allocation5 + $0x1364] ss:$16 sps:$4 sm:$0xff]  }
 0x1ac   :  { %5335 = vmatpush1.bf16.msra.mxu0 %v8893_v54  ;;  %v8947_v54 = vld [vmem:[#allocation5 + $0x1160] ss:$16 sps:$4 sm:$0xff]  }
 0x1ad   :  { %5378 = vmatpush1.bf16.msra.mxu1 %v8896_v29  ;;  %5336 = vmatprep.subr.bf16.mxu0 %v8901_v30  ;;  %v8950_v29 = vld [vmem:[#allocation5 + $0x1360] ss:$16 sps:$4 sm:$0xff]   ;;  %v8955_v30 = vld [vmem:[#allocation5 + $0x1144] ss:$16 sps:$4 sm:$0xff]  }
 0x1ae   :  { %5379 = vmatprep.subr.bf16.mxu1 %v8904_v31  ;;  %v8958_v31 = vld [vmem:[#allocation5 + $0x1344] ss:$16 sps:$4 sm:$0xff]  }
 0x1b0   :  { %5337 = vmatpush1.bf16.msra.mxu0 %v8899_v57  ;;  %v8953_v57 = vld [vmem:[#allocation5 + $0x1140] ss:$16 sps:$4 sm:$0xff]  }
 0x1b1   :  { %5380 = vmatpush1.bf16.msra.mxu1 %v8902_v58  ;;  %5338 = vmatprep.subr.bf16.mxu0 %v8907_v59  ;;  %v8956_v58 = vld [vmem:[#allocation5 + $0x1340] ss:$16 sps:$4 sm:$0xff]   ;;  %v8961_v59 = vld [vmem:[#allocation5 + $0x1124] ss:$16 sps:$4 sm:$0xff]  }
 0x1b2   :  { %5381 = vmatprep.subr.bf16.mxu1 %v8910_v60  ;;  %v8964_v60 = vld [vmem:[#allocation5 + $0x1324] ss:$16 sps:$4 sm:$0xff]  }
 0x1b4   :  { %5339 = vmatpush1.bf16.msra.mxu0 %v8905_v61  ;;  %v8959_v61 = vld [vmem:[#allocation5 + $0x1120] ss:$16 sps:$4 sm:$0xff]  }
 0x1b5   :  { %5382 = vmatpush1.bf16.msra.mxu1 %v8908_v62  ;;  %5340 = vmatprep.subr.bf16.mxu0 %v8913_v0  ;;  %v8962_v62 = vld [vmem:[#allocation5 + $0x1320] ss:$16 sps:$4 sm:$0xff]   ;;  %v8967_v0 = vld [vmem:[#allocation5 + $0x1104] ss:$16 sps:$4 sm:$0xff]  }
 0x1b6   :  { %5383 = vmatprep.subr.bf16.mxu1 %v8916_v1  ;;  %v8970_v1 = vld [vmem:[#allocation5 + $0x1304] ss:$16 sps:$4 sm:$0xff]  }
 0x1b8   :  { %5341 = vmatpush1.bf16.msra.mxu0 %v8911_v2  ;;  %v8965_v2 = vld [vmem:[#allocation5 + $0x1100] ss:$16 sps:$4 sm:$0xff]  }
 0x1b9   :  { %5384 = vmatpush1.bf16.msra.mxu1 %v8914_v3  ;;  %5342 = vmatprep.subr.bf16.mxu0 %v8919_v4  ;;  %v8968_v3 = vld [vmem:[#allocation5 + $0x1300] ss:$16 sps:$4 sm:$0xff]   ;;  %v8973_v4 = vld [vmem:[#allocation5 + $0x14e4] ss:$16 sps:$4 sm:$0xff]  }
 0x1ba   :  { %5385 = vmatprep.subr.bf16.mxu1 %v8922_v6  ;;  %v8976_v6 = vld [vmem:[#allocation5 + $0x16e4] ss:$16 sps:$4 sm:$0xff]  }
 0x1bc   :  { %5343 = vmatpush1.bf16.msra.mxu0 %v8917_v7  ;;  %v10467_v7 = vld [vmem:[#allocation2 + $0x50] sm:$0xff] }
 0x1bd   :  { %5386 = vmatpush1.bf16.msra.mxu1 %v8920_v11  ;;  %5344 = vmatprep.subr.bf16.mxu0 %v8925_v17  ;;  %v10469_v11 = vld [vmem:[#allocation2 + $0xb0] sm:$0xff]  ;;  %v10471_v17 = vld [vmem:[#allocation2 + $0x58] sm:$0xff] }
 0x1be   :  { %5387 = vmatprep.subr.bf16.mxu1 %v8928_v18  ;;  %v10473_v18 = vld [vmem:[#allocation2 + $0xb8] sm:$0xff] }
 0x1c0   :  { %5345 = vmatpush2.bf16.msra.mxu0 %v8923_v19  ;;  %v8971_v19 = vld [vmem:[#allocation5 + $0x14e0] ss:$16 sps:$4 sm:$0xff]  }
 0x1c1   :  { %5388 = vmatpush2.bf16.msra.mxu1 %v8926_v22  ;;  %5346 = vmatprep.subr.bf16.mxu0 %v8931_v46  ;;  %v8974_v22 = vld [vmem:[#allocation5 + $0x16e0] ss:$16 sps:$4 sm:$0xff]   ;;  %v10477_v46 = vcombine.low %v10430_v10, %v10432_v12  ;;  %v10489_v10 = vcombine.high %v10467_v7, %v10469_v11  ;;  %v10493_v12 = vcombine.high %v10471_v17, %v10473_v18 }
 0x1c2   :  { %5389 = vmatprep.subr.bf16.mxu1 %v8934_v47  ;;  %v10481_v47 = vcombine.low %v10434_v13, %v10444_v16 }
 0x1c4   :  { %5347 = vmatpush2.bf16.msra.mxu0 %v8929_v50  ;;  %v10483_v50 = vpop.f32.mrf.mxu0 }
 0x1c5   :  { %5390 = vmatpush2.bf16.msra.mxu1 %v8932_v24  ;;  %5348 = vmatprep.subr.bf16.mxu0 %v8937_v25  ;;  %v10485_v24 = vpop.f32.mrf.mxu1  ;;  %v8979_v25 = vld [vmem:[#allocation5 + $0x14c4] ss:$16 sps:$4 sm:$0xff]  }
 0x1c6   :  { %5391 = vmatprep.subr.bf16.mxu1 %v8940_v32  ;;  %v8982_v32 = vld [vmem:[#allocation5 + $0x16c4] ss:$16 sps:$4 sm:$0xff]  }
 0x1c8   :  { %5349 = vmatpush2.bf16.msra.mxu0 %v8935_v34  ;;  %v8977_v34 = vld [vmem:[#allocation5 + $0x14c0] ss:$16 sps:$4 sm:$0xff]  }
 0x1c9   :  { %5392 = vmatpush2.bf16.msra.mxu1 %v8938_v37  ;;  %5350 = vmatprep.subr.bf16.mxu0 %v8943_v38  ;;  %v8980_v37 = vld [vmem:[#allocation5 + $0x16c0] ss:$16 sps:$4 sm:$0xff]  }
 0x1ca   :  { %5393 = vmatprep.subr.bf16.mxu1 %v8946_v39 }
 0x1cc   :  { %5351 = vmatpush2.bf16.msra.mxu0 %v8941_v40 }
 0x1cd   :  { %5394 = vmatpush2.bf16.msra.mxu1 %v8944_v42  ;;  %5352 = vmatprep.subr.bf16.mxu0 %v8949_v45  ;;  %v8985_v42 = vld [vmem:[#allocation5 + $0x14a4] ss:$16 sps:$4 sm:$0xff]  }
 0x1ce   :  { %5395 = vmatprep.subr.bf16.mxu1 %v8952_v51  ;;  %v8988_v45 = vld [vmem:[#allocation5 + $0x16a4] ss:$16 sps:$4 sm:$0xff]  }
 0x1d0   :  { %5353 = vmatpush2.bf16.msra.mxu0 %v8947_v54  ;;  %v8983_v54 = vld [vmem:[#allocation5 + $0x14a0] ss:$16 sps:$4 sm:$0xff]  }
 0x1d1   :  { %5396 = vmatpush2.bf16.msra.mxu1 %v8950_v29  ;;  %5354 = vmatprep.subr.bf16.mxu0 %v8955_v30  ;;  %v8986_v29 = vld [vmem:[#allocation5 + $0x16a0] ss:$16 sps:$4 sm:$0xff]  }
 0x1d2   :  { %5397 = vmatprep.subr.bf16.mxu1 %v8958_v31 }
 0x1d4   :  { %5355 = vmatpush2.bf16.msra.mxu0 %v8953_v57  ;;  %v8991_v57 = vld [vmem:[#allocation5 + $0x1484] ss:$16 sps:$4 sm:$0xff]  }
 0x1d5   :  { %5398 = vmatpush2.bf16.msra.mxu1 %v8956_v58  ;;  %5356 = vmatprep.subr.bf16.mxu0 %v8961_v59  ;;  %v8994_v58 = vld [vmem:[#allocation5 + $0x1684] ss:$16 sps:$4 sm:$0xff]  }
 0x1d6   :  { %5399 = vmatprep.subr.bf16.mxu1 %v8964_v60  ;;  %v8989_v60 = vld [vmem:[#allocation5 + $0x1480] ss:$16 sps:$4 sm:$0xff]  }
 0x1d8   :  { %5357 = vmatpush2.bf16.msra.mxu0 %v8959_v61  ;;  %v8992_v61 = vld [vmem:[#allocation5 + $0x1680] ss:$16 sps:$4 sm:$0xff]  }
 0x1d9   :  { %5400 = vmatpush2.bf16.msra.mxu1 %v8962_v62  ;;  %5358 = vmatprep.subr.bf16.mxu0 %v8967_v0  ;;  %v8997_v62 = vld [vmem:[#allocation5 + $0x1464] ss:$16 sps:$4 sm:$0xff]  }
 0x1da   :  { %5401 = vmatprep.subr.bf16.mxu1 %v8970_v1  ;;  %v9000_v0 = vld [vmem:[#allocation5 + $0x1664] ss:$16 sps:$4 sm:$0xff]   ;;  %v8998_v1 = vld [vmem:[#allocation5 + $0x1660] ss:$16 sps:$4 sm:$0xff]  }
 0x1dc   :  { %5359 = vmatpush2.bf16.msra.mxu0 %v8965_v2  ;;  %v9003_v2 = vld [vmem:[#allocation5 + $0x1444] ss:$16 sps:$4 sm:$0xff]  }
 0x1dd   :  { %5402 = vmatpush2.bf16.msra.mxu1 %v8968_v3  ;;  %5414 = vmatprep.subr.bf16.mxu0 %v8973_v4  ;;  %v9006_v3 = vld [vmem:[#allocation5 + $0x1644] ss:$16 sps:$4 sm:$0xff]   ;;  %v9001_v4 = vld [vmem:[#allocation5 + $0x1440] ss:$16 sps:$4 sm:$0xff]  }
 0x1de   :  { %5457 = vmatprep.subr.bf16.mxu1 %v8976_v6  ;;  %v9004_v6 = vld [vmem:[#allocation5 + $0x1640] ss:$16 sps:$4 sm:$0xff]  }
 0x1df   :  { %v5104_v13 = vpop.f32.mrf.mxu0  ;;  %5361 = vmatmul.mubr.bf16.vlgmr.msra.gmra.mxu0 %v10477_v46 }
 0x1e0   :  { %v5147_v16 = vpop.f32.mrf.mxu1  ;;  %5404 = vmatmul.mubr.bf16.vlgmr.msra.gmra.mxu1 %v10481_v47  ;;  %v5105_v38 = vadd.f32 %v5104_v13, %v10461_v36  ;;  %5415 = vmatpush1.bf16.msra.mxu0 %v8971_v19  ;;  %v9009_v19 = vld [vmem:[#allocation5 + $0x1424] ss:$16 sps:$4 sm:$0xff]   ;;  %v9013_v13 = vld [vmem:[#allocation5 + $0x1400] ss:$16 sps:$4 sm:$0xff]  }
 0x1e1   :  { %5458 = vmatpush1.bf16.msra.mxu1 %v8974_v22  ;;  %v10498_v39 = vpop.f32.mrf.mxu0  ;;  %5416 = vmatprep.subr.bf16.mxu0 %v8979_v25  ;;  %v9012_v22 = vld [vmem:[#allocation5 + $0x1624] ss:$16 sps:$4 sm:$0xff]   ;;  %v9007_v25 = vld [vmem:[#allocation5 + $0x1420] ss:$16 sps:$4 sm:$0xff]  }
 0x1e2   :  { %v10500_v40 = vpop.f32.mrf.mxu1  ;;  %5459 = vmatprep.subr.bf16.mxu1 %v8982_v32  ;;  %v10502_v51 = vadd.f32 %v5147_v16, %v5105_v38  ;;  %5446 = vmatprep.mubr.bf16.mxu0 %v10489_v10  ;;  %v9010_v32 = vld [vmem:[#allocation5 + $0x1620] ss:$16 sps:$4 sm:$0xff]   ;;  %v9021_v38 = vld [vmem:[#allocation5 + $0x15e4] ss:$16 sps:$4 sm:$0xff]  }
 0x1e3   :  { %5489 = vmatprep.mubr.bf16.mxu1 %v10493_v12  ;;  %v5108_v30 = vpop.f32.mrf.mxu0  ;;  %v9016_v16 = vld [vmem:[#allocation5 + $0x1600] ss:$16 sps:$4 sm:$0xff]  }
 0x1e4   :  { %v5109_v36 = vadd.f32 %v5108_v30, %v10465_v52  ;;  %5417 = vmatpush1.bf16.msra.mxu0 %v8977_v34  ;;  %v5151_v31 = vpop.f32.mrf.mxu1  ;;  %v8995_v52 = vld [vmem:[#allocation5 + $0x1460] ss:$16 sps:$4 sm:$0xff]   ;;  %v9015_v34 = vld [vmem:[#allocation5 + $0x1404] ss:$16 sps:$4 sm:$0xff]  }
 0x1e5   :  { %5460 = vmatpush1.bf16.msra.mxu1 %v8980_v37  ;;  %5418 = vmatprep.subr.bf16.mxu0 %v8985_v42  ;;  %v9018_v37 = vld [vmem:[#allocation5 + $0x1604] ss:$16 sps:$4 sm:$0xff]  }
 0x1e6   :  { %5461 = vmatprep.subr.bf16.mxu1 %v8988_v45  ;;  %v10507_v59 = vadd.f32 %v5151_v31, %v5109_v36  ;;  %v9024_v42 = vld [vmem:[#allocation5 + $0x17e4] ss:$16 sps:$4 sm:$0xff]   ;;  %v9019_v45 = vld [vmem:[#allocation5 + $0x15e0] ss:$16 sps:$4 sm:$0xff]  }
 0x1e7   :  { %v9030_v30 = vld [vmem:[#allocation5 + $0x17c4] ss:$16 sps:$4 sm:$0xff]   ;;  %v9025_v36 = vld [vmem:[#allocation5 + $0x15c0] ss:$16 sps:$4 sm:$0xff]  }
 0x1e8   :  { %5419 = vmatpush1.bf16.msra.mxu0 %v8983_v54  ;;  %v9022_v54 = vld [vmem:[#allocation5 + $0x17e0] ss:$16 sps:$4 sm:$0xff]  }
 0x1e9   :  { %5462 = vmatpush1.bf16.msra.mxu1 %v8986_v29  ;;  %5420 = vmatprep.subr.bf16.mxu0 %v8991_v57  ;;  %v9027_v29 = vld [vmem:[#allocation5 + $0x15c4] ss:$16 sps:$4 sm:$0xff]   ;;  %v9028_v31 = vld [vmem:[#allocation5 + $0x17c0] ss:$16 sps:$4 sm:$0xff]  }
 0x1ea   :  { %5463 = vmatprep.subr.bf16.mxu1 %v8994_v58  ;;  %v9033_v57 = vld [vmem:[#allocation5 + $0x15a4] ss:$16 sps:$4 sm:$0xff]  }
 0x1eb   :  { %v9036_v58 = vld [vmem:[#allocation5 + $0x17a4] ss:$16 sps:$4 sm:$0xff]  }
 0x1ec   :  { %5421 = vmatpush1.bf16.msra.mxu0 %v8989_v60  ;;  %v9031_v60 = vld [vmem:[#allocation5 + $0x15a0] ss:$16 sps:$4 sm:$0xff]  }
 0x1ed   :  { %5464 = vmatpush1.bf16.msra.mxu1 %v8992_v61  ;;  %5422 = vmatprep.subr.bf16.mxu0 %v8997_v62  ;;  %v9034_v61 = vld [vmem:[#allocation5 + $0x17a0] ss:$16 sps:$4 sm:$0xff]   ;;  %v9039_v62 = vld [vmem:[#allocation5 + $0x1584] ss:$16 sps:$4 sm:$0xff]  }
 0x1ee   :  { %5465 = vmatprep.subr.bf16.mxu1 %v9000_v0  ;;  %v9042_v0 = vld [vmem:[#allocation5 + $0x1784] ss:$16 sps:$4 sm:$0xff]  }
 0x1f0   :  { %5423 = vmatpush1.bf16.msra.mxu0 %v8995_v52  ;;  %v9037_v52 = vld [vmem:[#allocation5 + $0x1580] ss:$16 sps:$4 sm:$0xff]  }
 0x1f1   :  { %5466 = vmatpush1.bf16.msra.mxu1 %v8998_v1  ;;  %5424 = vmatprep.subr.bf16.mxu0 %v9003_v2  ;;  %v9040_v1 = vld [vmem:[#allocation5 + $0x1780] ss:$16 sps:$4 sm:$0xff]   ;;  %v9045_v2 = vld [vmem:[#allocation5 + $0x1564] ss:$16 sps:$4 sm:$0xff]  }
 0x1f2   :  { %5467 = vmatprep.subr.bf16.mxu1 %v9006_v3  ;;  %v9048_v3 = vld [vmem:[#allocation5 + $0x1764] ss:$16 sps:$4 sm:$0xff]  }
 0x1f4   :  { %5425 = vmatpush1.bf16.msra.mxu0 %v9001_v4  ;;  %v9043_v4 = vld [vmem:[#allocation5 + $0x1560] ss:$16 sps:$4 sm:$0xff]  }
 0x1f5   :  { %5468 = vmatpush1.bf16.msra.mxu1 %v9004_v6  ;;  %5426 = vmatprep.subr.bf16.mxu0 %v9009_v19  ;;  %v9046_v6 = vld [vmem:[#allocation5 + $0x1760] ss:$16 sps:$4 sm:$0xff]   ;;  %v9051_v19 = vld [vmem:[#allocation5 + $0x1544] ss:$16 sps:$4 sm:$0xff]  }
 0x1f6   :  { %5469 = vmatprep.subr.bf16.mxu1 %v9012_v22  ;;  %v9054_v22 = vld [vmem:[#allocation5 + $0x1744] ss:$16 sps:$4 sm:$0xff]  }
 0x1f8   :  { %5427 = vmatpush1.bf16.msra.mxu0 %v9007_v25  ;;  %v9049_v25 = vld [vmem:[#allocation5 + $0x1540] ss:$16 sps:$4 sm:$0xff]  }
 0x1f9   :  { %5470 = vmatpush1.bf16.msra.mxu1 %v9010_v32  ;;  %5428 = vmatprep.subr.bf16.mxu0 %v9015_v34  ;;  %v9052_v32 = vld [vmem:[#allocation5 + $0x1740] ss:$16 sps:$4 sm:$0xff]   ;;  %v9057_v34 = vld [vmem:[#allocation5 + $0x1524] ss:$16 sps:$4 sm:$0xff]  }
 0x1fa   :  { %5471 = vmatprep.subr.bf16.mxu1 %v9018_v37  ;;  %v9060_v37 = vld [vmem:[#allocation5 + $0x1724] ss:$16 sps:$4 sm:$0xff]  }
 0x1fc   :  { %5429 = vmatpush1.bf16.msra.mxu0 %v9013_v13  ;;  %v9055_v13 = vld [vmem:[#allocation5 + $0x1520] ss:$16 sps:$4 sm:$0xff]  }
 0x1fd   :  { %5472 = vmatpush1.bf16.msra.mxu1 %v9016_v16  ;;  %5430 = vmatprep.subr.bf16.mxu0 %v9021_v38  ;;  %v9058_v16 = vld [vmem:[#allocation5 + $0x1720] ss:$16 sps:$4 sm:$0xff]   ;;  %v9063_v38 = vld [vmem:[#allocation5 + $0x1504] ss:$16 sps:$4 sm:$0xff]  }
 0x1fe   :  { %5473 = vmatprep.subr.bf16.mxu1 %v9024_v42  ;;  %v9066_v42 = vld [vmem:[#allocation5 + $0x1704] ss:$16 sps:$4 sm:$0xff]  }
 0x200   :  { %5431 = vmatpush2.bf16.msra.mxu0 %v9019_v45  ;;  %v9061_v45 = vld [vmem:[#allocation5 + $0x1500] ss:$16 sps:$4 sm:$0xff]  }
 0x201   :  { %5474 = vmatpush2.bf16.msra.mxu1 %v9022_v54  ;;  %5432 = vmatprep.subr.bf16.mxu0 %v9027_v29  ;;  %v9064_v54 = vld [vmem:[#allocation5 + $0x1700] ss:$16 sps:$4 sm:$0xff]   ;;  %v9069_v29 = vld [vmem:[#allocation5 + $0xec] ss:$16 sps:$4 sm:$0xff]  }
 0x202   :  { %5475 = vmatprep.subr.bf16.mxu1 %v9030_v30  ;;  %v9072_v30 = vld [vmem:[#allocation5 + $0x2ec] ss:$16 sps:$4 sm:$0xff]  }
 0x204   :  { %5433 = vmatpush2.bf16.msra.mxu0 %v9025_v36  ;;  %v9067_v36 = vld [vmem:[#allocation5 + $0xe8] ss:$16 sps:$4 sm:$0xff]  }
 0x205   :  { %5476 = vmatpush2.bf16.msra.mxu1 %v9028_v31  ;;  %5434 = vmatprep.subr.bf16.mxu0 %v9033_v57  ;;  %v9070_v31 = vld [vmem:[#allocation5 + $0x2e8] ss:$16 sps:$4 sm:$0xff]   ;;  %v10511_v57 = vcombine.low %v10467_v7, %v10469_v11 }
 0x206   :  { %5477 = vmatprep.subr.bf16.mxu1 %v9036_v58  ;;  %v10515_v58 = vcombine.low %v10471_v17, %v10473_v18  ;;  %v9081_v18 = vld [vmem:[#allocation5 + $0xac] ss:$16 sps:$4 sm:$0xff]  }
 0x208   :  { %5435 = vmatpush2.bf16.msra.mxu0 %v9031_v60  ;;  %v10517_v60 = vpop.f32.mrf.mxu0 }
 0x209   :  { %5478 = vmatpush2.bf16.msra.mxu1 %v9034_v61  ;;  %5436 = vmatprep.subr.bf16.mxu0 %v9039_v62  ;;  %v10519_v61 = vpop.f32.mrf.mxu1  ;;  %v9075_v62 = vld [vmem:[#allocation5 + $0xcc] ss:$16 sps:$4 sm:$0xff]  }
 0x20a   :  { %5479 = vmatprep.subr.bf16.mxu1 %v9042_v0  ;;  %v9078_v0 = vld [vmem:[#allocation5 + $0x2cc] ss:$16 sps:$4 sm:$0xff]  }
 0x20c   :  { %5437 = vmatpush2.bf16.msra.mxu0 %v9037_v52  ;;  %v9073_v52 = vld [vmem:[#allocation5 + $0xc8] ss:$16 sps:$4 sm:$0xff]  }
 0x20d   :  { %5480 = vmatpush2.bf16.msra.mxu1 %v9040_v1  ;;  %5438 = vmatprep.subr.bf16.mxu0 %v9045_v2  ;;  %v9076_v1 = vld [vmem:[#allocation5 + $0x2c8] ss:$16 sps:$4 sm:$0xff]  }
 0x20e   :  { %5481 = vmatprep.subr.bf16.mxu1 %v9048_v3 }
 0x210   :  { %5439 = vmatpush2.bf16.msra.mxu0 %v9043_v4  ;;  %v9084_v4 = vld [vmem:[#allocation5 + $0x2ac] ss:$16 sps:$4 sm:$0xff]  }
 0x211   :  { %5482 = vmatpush2.bf16.msra.mxu1 %v9046_v6  ;;  %5440 = vmatprep.subr.bf16.mxu0 %v9051_v19  ;;  %v9079_v19 = vld [vmem:[#allocation5 + $0xa8] ss:$16 sps:$4 sm:$0xff]  }
 0x212   :  { %5483 = vmatprep.subr.bf16.mxu1 %v9054_v22  ;;  %v9082_v22 = vld [vmem:[#allocation5 + $0x2a8] ss:$16 sps:$4 sm:$0xff]  }
 0x214   :  { %5441 = vmatpush2.bf16.msra.mxu0 %v9049_v25 }
 0x215   :  { %5484 = vmatpush2.bf16.msra.mxu1 %v9052_v32  ;;  %5442 = vmatprep.subr.bf16.mxu0 %v9057_v34  ;;  %v9087_v34 = vld [vmem:[#allocation5 + $0x8c] ss:$16 sps:$4 sm:$0xff]  }
 0x216   :  { %5485 = vmatprep.subr.bf16.mxu1 %v9060_v37  ;;  %v9090_v37 = vld [vmem:[#allocation5 + $0x28c] ss:$16 sps:$4 sm:$0xff]  }
 0x218   :  { %5443 = vmatpush2.bf16.msra.mxu0 %v9055_v13 }
 0x219   :  { %5486 = vmatpush2.bf16.msra.mxu1 %v9058_v16  ;;  %5444 = vmatprep.subr.bf16.mxu0 %v9063_v38  ;;  %v9085_v16 = vld [vmem:[#allocation5 + $0x88] ss:$16 sps:$4 sm:$0xff]  }
 0x21a   :  { %5487 = vmatprep.subr.bf16.mxu1 %v9066_v42  ;;  %v9088_v38 = vld [vmem:[#allocation5 + $0x288] ss:$16 sps:$4 sm:$0xff]  }
 0x21b   :  { %v9094_v42 = vld [vmem:[#allocation5 + $0x268] ss:$16 sps:$4 sm:$0xff]  }
 0x21c   :  { %5445 = vmatpush2.bf16.msra.mxu0 %v9061_v45  ;;  %v9099_v45 = vld [vmem:[#allocation5 + $0x4c] ss:$16 sps:$4 sm:$0xff]  }
 0x21d   :  { %5488 = vmatpush2.bf16.msra.mxu1 %v9064_v54  ;;  %5500 = vmatprep.subr.bf16.mxu0 %v9069_v29  ;;  %v9102_v54 = vld [vmem:[#allocation5 + $0x24c] ss:$16 sps:$4 sm:$0xff]   ;;  %v9097_v29 = vld [vmem:[#allocation5 + $0x48] ss:$16 sps:$4 sm:$0xff]  }
 0x21e   :  { %5543 = vmatprep.subr.bf16.mxu1 %v9072_v30  ;;  %v9100_v30 = vld [vmem:[#allocation5 + $0x248] ss:$16 sps:$4 sm:$0xff]  }
 0x21f   :  { %v5190_v2 = vpop.f32.mrf.mxu0  ;;  %5447 = vmatmul.mubr.bf16.vlgmr.msra.gmra.mxu0 %v10511_v57 }
 0x220   :  { %v5233_v3 = vpop.f32.mrf.mxu1  ;;  %5490 = vmatmul.mubr.bf16.vlgmr.msra.gmra.mxu1 %v10515_v58  ;;  %v5191_v7 = vadd.f32 %v5190_v2, %v10502_v51  ;;  %5501 = vmatpush1.bf16.msra.mxu0 %v9067_v36  ;;  %v9105_v36 = vld [vmem:[#allocation5 + $0x2c] ss:$16 sps:$4 sm:$0xff]   ;;  %v9109_v2 = vld [vmem:[#allocation5 + $0x8] ss:$16 sps:$4 sm:$0xff]  }
 0x221   :  { %5544 = vmatpush1.bf16.msra.mxu1 %v9070_v31  ;;  %v10524_v11 = vpop.f32.mrf.mxu0  ;;  %5502 = vmatprep.subr.bf16.mxu0 %v9075_v62  ;;  %v9108_v31 = vld [vmem:[#allocation5 + $0x22c] ss:$16 sps:$4 sm:$0xff]   ;;  %v9103_v62 = vld [vmem:[#allocation5 + $0x28] ss:$16 sps:$4 sm:$0xff]  }
 0x222   :  { %v10526_v17 = vpop.f32.mrf.mxu1  ;;  %5545 = vmatprep.subr.bf16.mxu1 %v9078_v0  ;;  %v10528_v6 = vadd.f32 %v5233_v3, %v5191_v7  ;;  %5532 = vmatprep.mubr.bf16.mxu0 %v10339_v53  ;;  %v9093_v53 = vld [vmem:[#allocation5 + $0x6c] ss:$16 sps:$4 sm:$0xff]   ;;  %v9106_v0 = vld [vmem:[#allocation5 + $0x228] ss:$16 sps:$4 sm:$0xff]  }
 0x223   :  { %5575 = vmatprep.mubr.bf16.mxu1 %v10341_v55  ;;  %v5194_v25 = vpop.f32.mrf.mxu0  ;;  %v9096_v55 = vld [vmem:[#allocation5 + $0x26c] ss:$16 sps:$4 sm:$0xff]   ;;  %v9112_v3 = vld [vmem:[#allocation5 + $0x208] ss:$16 sps:$4 sm:$0xff]  }
 0x224   :  { %v5195_v51 = vadd.f32 %v5194_v25, %v10507_v59  ;;  %5503 = vmatpush1.bf16.msra.mxu0 %v9073_v52  ;;  %v5237_v32 = vpop.f32.mrf.mxu1  ;;  %v9091_v59 = vld [vmem:[#allocation5 + $0x68] ss:$16 sps:$4 sm:$0xff]   ;;  %v9111_v52 = vld [vmem:[#allocation5 + $0xc] ss:$16 sps:$4 sm:$0xff]  }
 0x225   :  { %5546 = vmatpush1.bf16.msra.mxu1 %v9076_v1  ;;  %5504 = vmatprep.subr.bf16.mxu0 %v9081_v18  ;;  %v9114_v1 = vld [vmem:[#allocation5 + $0x20c] ss:$16 sps:$4 sm:$0xff]  }
 0x226   :  { %5547 = vmatprep.subr.bf16.mxu1 %v9084_v4  ;;  %v10533_v13 = vadd.f32 %v5237_v32, %v5195_v51  ;;  %v9117_v7 = vld [vmem:[#allocation5 + $0x1ec] ss:$16 sps:$4 sm:$0xff]   ;;  %v9115_v4 = vld [vmem:[#allocation5 + $0x1e8] ss:$16 sps:$4 sm:$0xff]  }
 0x227   :  { %v9120_v18 = vld [vmem:[#allocation5 + $0x3ec] ss:$16 sps:$4 sm:$0xff]   ;;  %v9121_v51 = vld [vmem:[#allocation5 + $0x1c8] ss:$16 sps:$4 sm:$0xff]  }
 0x228   :  { %5505 = vmatpush1.bf16.msra.mxu0 %v9079_v19  ;;  %v9118_v19 = vld [vmem:[#allocation5 + $0x3e8] ss:$16 sps:$4 sm:$0xff]   ;;  %v9126_v25 = vld [vmem:[#allocation5 + $0x3cc] ss:$16 sps:$4 sm:$0xff]  }
 0x229   :  { %5548 = vmatpush1.bf16.msra.mxu1 %v9082_v22  ;;  %5506 = vmatprep.subr.bf16.mxu0 %v9087_v34  ;;  %v9123_v22 = vld [vmem:[#allocation5 + $0x1cc] ss:$16 sps:$4 sm:$0xff]   ;;  %v9124_v32 = vld [vmem:[#allocation5 + $0x3c8] ss:$16 sps:$4 sm:$0xff]  }
 0x22a   :  { %5549 = vmatprep.subr.bf16.mxu1 %v9090_v37  ;;  %v9129_v34 = vld [vmem:[#allocation5 + $0x1ac] ss:$16 sps:$4 sm:$0xff]  }
 0x22b   :  { %v9132_v37 = vld [vmem:[#allocation5 + $0x3ac] ss:$16 sps:$4 sm:$0xff]  }
 0x22c   :  { %5507 = vmatpush1.bf16.msra.mxu0 %v9085_v16  ;;  %v9127_v16 = vld [vmem:[#allocation5 + $0x1a8] ss:$16 sps:$4 sm:$0xff]  }
 0x22d   :  { %5550 = vmatpush1.bf16.msra.mxu1 %v9088_v38  ;;  %5508 = vmatprep.subr.bf16.mxu0 %v9093_v53  ;;  %v9130_v38 = vld [vmem:[#allocation5 + $0x3a8] ss:$16 sps:$4 sm:$0xff]   ;;  %v9135_v53 = vld [vmem:[#allocation5 + $0x18c] ss:$16 sps:$4 sm:$0xff]  }
 0x22e   :  { %5551 = vmatprep.subr.bf16.mxu1 %v9096_v55  ;;  %v9138_v55 = vld [vmem:[#allocation5 + $0x38c] ss:$16 sps:$4 sm:$0xff]  }
 0x230   :  { %5509 = vmatpush1.bf16.msra.mxu0 %v9091_v59  ;;  %v9133_v59 = vld [vmem:[#allocation5 + $0x188] ss:$16 sps:$4 sm:$0xff]  }
 0x231   :  { %5552 = vmatpush1.bf16.msra.mxu1 %v9094_v42  ;;  %5510 = vmatprep.subr.bf16.mxu0 %v9099_v45  ;;  %v9136_v42 = vld [vmem:[#allocation5 + $0x388] ss:$16 sps:$4 sm:$0xff]   ;;  %v9141_v45 = vld [vmem:[#allocation5 + $0x16c] ss:$16 sps:$4 sm:$0xff]  }
 0x232   :  { %5553 = vmatprep.subr.bf16.mxu1 %v9102_v54  ;;  %v9144_v54 = vld [vmem:[#allocation5 + $0x36c] ss:$16 sps:$4 sm:$0xff]  }
 0x234   :  { %5511 = vmatpush1.bf16.msra.mxu0 %v9097_v29  ;;  %v9139_v29 = vld [vmem:[#allocation5 + $0x168] ss:$16 sps:$4 sm:$0xff]  }
 0x235   :  { %5554 = vmatpush1.bf16.msra.mxu1 %v9100_v30  ;;  %5512 = vmatprep.subr.bf16.mxu0 %v9105_v36  ;;  %v9142_v30 = vld [vmem:[#allocation5 + $0x368] ss:$16 sps:$4 sm:$0xff]   ;;  %v9147_v36 = vld [vmem:[#allocation5 + $0x14c] ss:$16 sps:$4 sm:$0xff]  }
 0x236   :  { %5555 = vmatprep.subr.bf16.mxu1 %v9108_v31  ;;  %v9150_v31 = vld [vmem:[#allocation5 + $0x34c] ss:$16 sps:$4 sm:$0xff]  }
 0x238   :  { %5513 = vmatpush1.bf16.msra.mxu0 %v9103_v62  ;;  %v9145_v62 = vld [vmem:[#allocation5 + $0x148] ss:$16 sps:$4 sm:$0xff]  }
 0x239   :  { %5556 = vmatpush1.bf16.msra.mxu1 %v9106_v0  ;;  %5514 = vmatprep.subr.bf16.mxu0 %v9111_v52  ;;  %v9148_v0 = vld [vmem:[#allocation5 + $0x348] ss:$16 sps:$4 sm:$0xff]   ;;  %v9153_v52 = vld [vmem:[#allocation5 + $0x12c] ss:$16 sps:$4 sm:$0xff]  }
 0x23a   :  { %5557 = vmatprep.subr.bf16.mxu1 %v9114_v1  ;;  %v9156_v1 = vld [vmem:[#allocation5 + $0x32c] ss:$16 sps:$4 sm:$0xff]  }
 0x23c   :  { %5515 = vmatpush1.bf16.msra.mxu0 %v9109_v2  ;;  %v9151_v2 = vld [vmem:[#allocation5 + $0x128] ss:$16 sps:$4 sm:$0xff]  }
 0x23d   :  { %5558 = vmatpush1.bf16.msra.mxu1 %v9112_v3  ;;  %5516 = vmatprep.subr.bf16.mxu0 %v9117_v7  ;;  %v9154_v3 = vld [vmem:[#allocation5 + $0x328] ss:$16 sps:$4 sm:$0xff]   ;;  %v9159_v7 = vld [vmem:[#allocation5 + $0x10c] ss:$16 sps:$4 sm:$0xff]  }
 0x23e   :  { %5559 = vmatprep.subr.bf16.mxu1 %v9120_v18  ;;  %v9162_v18 = vld [vmem:[#allocation5 + $0x30c] ss:$16 sps:$4 sm:$0xff]  }
 0x240   :  { %5517 = vmatpush2.bf16.msra.mxu0 %v9115_v4  ;;  %v9157_v4 = vld [vmem:[#allocation5 + $0x108] ss:$16 sps:$4 sm:$0xff]  }
 0x241   :  { %5560 = vmatpush2.bf16.msra.mxu1 %v9118_v19  ;;  %5518 = vmatprep.subr.bf16.mxu0 %v9123_v22  ;;  %v9160_v19 = vld [vmem:[#allocation5 + $0x308] ss:$16 sps:$4 sm:$0xff]   ;;  %v9165_v22 = vld [vmem:[#allocation5 + $0x4ec] ss:$16 sps:$4 sm:$0xff]  }
 0x242   :  { %5561 = vmatprep.subr.bf16.mxu1 %v9126_v25  ;;  %v9168_v25 = vld [vmem:[#allocation5 + $0x6ec] ss:$16 sps:$4 sm:$0xff]  }
 0x244   :  { %5519 = vmatpush2.bf16.msra.mxu0 %v9121_v51  ;;  %v9163_v51 = vld [vmem:[#allocation5 + $0x4e8] ss:$16 sps:$4 sm:$0xff]  }
 0x245   :  { %5562 = vmatpush2.bf16.msra.mxu1 %v9124_v32  ;;  %5520 = vmatprep.subr.bf16.mxu0 %v9129_v34  ;;  %v9166_v32 = vld [vmem:[#allocation5 + $0x6e8] ss:$16 sps:$4 sm:$0xff]   ;;  %v10535_v34 = vpop.f32.mrf.mxu0 }
 0x246   :  { %5563 = vmatprep.subr.bf16.mxu1 %v9132_v37  ;;  %v10537_v37 = vpop.f32.mrf.mxu1 }
 0x248   :  { %5521 = vmatpush2.bf16.msra.mxu0 %v9127_v16  ;;  %v9171_v16 = vld [vmem:[#allocation5 + $0x4cc] ss:$16 sps:$4 sm:$0xff]  }
 0x249   :  { %5564 = vmatpush2.bf16.msra.mxu1 %v9130_v38  ;;  %5522 = vmatprep.subr.bf16.mxu0 %v9135_v53  ;;  %v9174_v38 = vld [vmem:[#allocation5 + $0x6cc] ss:$16 sps:$4 sm:$0xff]   ;;  %v9169_v53 = vld [vmem:[#allocation5 + $0x4c8] ss:$16 sps:$4 sm:$0xff]  }
 0x24a   :  { %5565 = vmatprep.subr.bf16.mxu1 %v9138_v55  ;;  %v9172_v55 = vld [vmem:[#allocation5 + $0x6c8] ss:$16 sps:$4 sm:$0xff]  }
 0x24c   :  { %5523 = vmatpush2.bf16.msra.mxu0 %v9133_v59 }
 0x24d   :  { %5566 = vmatpush2.bf16.msra.mxu1 %v9136_v42  ;;  %5524 = vmatprep.subr.bf16.mxu0 %v9141_v45 }
 0x24e   :  { %5567 = vmatprep.subr.bf16.mxu1 %v9144_v54 }
 0x250   :  { %5525 = vmatpush2.bf16.msra.mxu0 %v9139_v29 }
 0x251   :  { %5568 = vmatpush2.bf16.msra.mxu1 %v9142_v30  ;;  %5526 = vmatprep.subr.bf16.mxu0 %v9147_v36  ;;  %v9177_v30 = vld [vmem:[#allocation5 + $0x4ac] ss:$16 sps:$4 sm:$0xff]  }
 0x252   :  { %5569 = vmatprep.subr.bf16.mxu1 %v9150_v31  ;;  %v9180_v36 = vld [vmem:[#allocation5 + $0x6ac] ss:$16 sps:$4 sm:$0xff]  }
 0x254   :  { %5527 = vmatpush2.bf16.msra.mxu0 %v9145_v62  ;;  %v9175_v62 = vld [vmem:[#allocation5 + $0x4a8] ss:$16 sps:$4 sm:$0xff]  }
 0x255   :  { %5570 = vmatpush2.bf16.msra.mxu1 %v9148_v0  ;;  %5528 = vmatprep.subr.bf16.mxu0 %v9153_v52  ;;  %v9178_v0 = vld [vmem:[#allocation5 + $0x6a8] ss:$16 sps:$4 sm:$0xff]   ;;  %v9183_v52 = vld [vmem:[#allocation5 + $0x48c] ss:$16 sps:$4 sm:$0xff]  }
 0x256   :  { %5571 = vmatprep.subr.bf16.mxu1 %v9156_v1  ;;  %v9186_v1 = vld [vmem:[#allocation5 + $0x68c] ss:$16 sps:$4 sm:$0xff]  }
 0x258   :  { %5529 = vmatpush2.bf16.msra.mxu0 %v9151_v2 }
 0x259   :  { %5572 = vmatpush2.bf16.msra.mxu1 %v9154_v3  ;;  %5530 = vmatprep.subr.bf16.mxu0 %v9159_v7  ;;  %v9181_v3 = vld [vmem:[#allocation5 + $0x488] ss:$16 sps:$4 sm:$0xff]  }
 0x25a   :  { %5573 = vmatprep.subr.bf16.mxu1 %v9162_v18  ;;  %v9184_v7 = vld [vmem:[#allocation5 + $0x688] ss:$16 sps:$4 sm:$0xff]  }
 0x25b   :  { %v9190_v18 = vld [vmem:[#allocation5 + $0x668] ss:$16 sps:$4 sm:$0xff]  }
 0x25c   :  { %5531 = vmatpush2.bf16.msra.mxu0 %v9157_v4  ;;  %v9195_v4 = vld [vmem:[#allocation5 + $0x44c] ss:$16 sps:$4 sm:$0xff]  }
 0x25d   :  { %5574 = vmatpush2.bf16.msra.mxu1 %v9160_v19  ;;  %5586 = vmatprep.subr.bf16.mxu0 %v9165_v22  ;;  %v9198_v19 = vld [vmem:[#allocation5 + $0x64c] ss:$16 sps:$4 sm:$0xff]   ;;  %v9193_v22 = vld [vmem:[#allocation5 + $0x448] ss:$16 sps:$4 sm:$0xff]  }
 0x25e   :  { %5629 = vmatprep.subr.bf16.mxu1 %v9168_v25  ;;  %v9196_v25 = vld [vmem:[#allocation5 + $0x648] ss:$16 sps:$4 sm:$0xff]  }
 0x25f   :  { %v5276_v59 = vpop.f32.mrf.mxu0  ;;  %5533 = vmatmul.mubr.bf16.vlgmr.msra.gmra.mxu0 %v10345_v8 }
 0x260   :  { %v5319_v42 = vpop.f32.mrf.mxu1  ;;  %5576 = vmatmul.mubr.bf16.vlgmr.msra.gmra.mxu1 %v10347_v9  ;;  %v5277_v45 = vadd.f32 %v5276_v59, %v10528_v6  ;;  %5587 = vmatpush1.bf16.msra.mxu0 %v9163_v51  ;;  %v9201_v51 = vld [vmem:[#allocation5 + $0x42c] ss:$16 sps:$4 sm:$0xff]   ;;  %v9205_v59 = vld [vmem:[#allocation5 + $0x408] ss:$16 sps:$4 sm:$0xff]  }
 0x261   :  { %5630 = vmatpush1.bf16.msra.mxu1 %v9166_v32  ;;  %v10542_v54 = vpop.f32.mrf.mxu0  ;;  %5588 = vmatprep.subr.bf16.mxu0 %v9171_v16  ;;  %v9204_v32 = vld [vmem:[#allocation5 + $0x62c] ss:$16 sps:$4 sm:$0xff]   ;;  %v9199_v16 = vld [vmem:[#allocation5 + $0x428] ss:$16 sps:$4 sm:$0xff]  }
 0x262   :  { %v10544_v29 = vpop.f32.mrf.mxu1  ;;  %5631 = vmatprep.subr.bf16.mxu1 %v9174_v38  ;;  %v10546_v31 = vadd.f32 %v5319_v42, %v5277_v45  ;;  %5618 = vmatprep.mubr.bf16.mxu0 %v10361_v41  ;;  %v9189_v41 = vld [vmem:[#allocation5 + $0x46c] ss:$16 sps:$4 sm:$0xff]   ;;  %v9202_v38 = vld [vmem:[#allocation5 + $0x628] ss:$16 sps:$4 sm:$0xff]  }
 0x263   :  { %5661 = vmatprep.mubr.bf16.mxu1 %v10365_v43  ;;  %v5280_v8 = vpop.f32.mrf.mxu0  ;;  %v9192_v43 = vld [vmem:[#allocation5 + $0x66c] ss:$16 sps:$4 sm:$0xff]   ;;  %v9208_v42 = vld [vmem:[#allocation5 + $0x608] ss:$16 sps:$4 sm:$0xff]  }
 0x264   :  { %v5281_v9 = vadd.f32 %v5280_v8, %v10533_v13  ;;  %5589 = vmatpush1.bf16.msra.mxu0 %v9169_v53  ;;  %v5323_v6 = vpop.f32.mrf.mxu1  ;;  %v9187_v13 = vld [vmem:[#allocation5 + $0x468] ss:$16 sps:$4 sm:$0xff]   ;;  %v9207_v53 = vld [vmem:[#allocation5 + $0x40c] ss:$16 sps:$4 sm:$0xff]  }
 0x265   :  { %5632 = vmatpush1.bf16.msra.mxu1 %v9172_v55  ;;  %5590 = vmatprep.subr.bf16.mxu0 %v9177_v30  ;;  %v9210_v55 = vld [vmem:[#allocation5 + $0x60c] ss:$16 sps:$4 sm:$0xff]  }
 0x266   :  { %5633 = vmatprep.subr.bf16.mxu1 %v9180_v36  ;;  %v10551_v2 = vadd.f32 %v5323_v6, %v5281_v9  ;;  %v9213_v45 = vld [vmem:[#allocation5 + $0x5ec] ss:$16 sps:$4 sm:$0xff]   ;;  %v9211_v36 = vld [vmem:[#allocation5 + $0x5e8] ss:$16 sps:$4 sm:$0xff]  }
 0x267   :  { %v9216_v30 = vld [vmem:[#allocation5 + $0x7ec] ss:$16 sps:$4 sm:$0xff]   ;;  %v9217_v9 = vld [vmem:[#allocation5 + $0x5c8] ss:$16 sps:$4 sm:$0xff]  }
 0x268   :  { %5591 = vmatpush1.bf16.msra.mxu0 %v9175_v62  ;;  %v9214_v62 = vld [vmem:[#allocation5 + $0x7e8] ss:$16 sps:$4 sm:$0xff]   ;;  %v9222_v8 = vld [vmem:[#allocation5 + $0x7cc] ss:$16 sps:$4 sm:$0xff]  }
 0x269   :  { %5634 = vmatpush1.bf16.msra.mxu1 %v9178_v0  ;;  %5592 = vmatprep.subr.bf16.mxu0 %v9183_v52  ;;  %v9219_v0 = vld [vmem:[#allocation5 + $0x5cc] ss:$16 sps:$4 sm:$0xff]   ;;  %v9220_v6 = vld [vmem:[#allocation5 + $0x7c8] ss:$16 sps:$4 sm:$0xff]  }
 0x26a   :  { %5635 = vmatprep.subr.bf16.mxu1 %v9186_v1  ;;  %v9225_v52 = vld [vmem:[#allocation5 + $0x5ac] ss:$16 sps:$4 sm:$0xff]  }
 0x26b   :  { %v9228_v1 = vld [vmem:[#allocation5 + $0x7ac] ss:$16 sps:$4 sm:$0xff]  }
 0x26c   :  { %5593 = vmatpush1.bf16.msra.mxu0 %v9181_v3  ;;  %v9223_v3 = vld [vmem:[#allocation5 + $0x5a8] ss:$16 sps:$4 sm:$0xff]  }
 0x26d   :  { %5636 = vmatpush1.bf16.msra.mxu1 %v9184_v7  ;;  %5594 = vmatprep.subr.bf16.mxu0 %v9189_v41  ;;  %v9226_v7 = vld [vmem:[#allocation5 + $0x7a8] ss:$16 sps:$4 sm:$0xff]   ;;  %v9231_v41 = vld [vmem:[#allocation5 + $0x58c] ss:$16 sps:$4 sm:$0xff]  }
 0x26e   :  { %5637 = vmatprep.subr.bf16.mxu1 %v9192_v43  ;;  %v9234_v43 = vld [vmem:[#allocation5 + $0x78c] ss:$16 sps:$4 sm:$0xff]  }
 0x270   :  { %5595 = vmatpush1.bf16.msra.mxu0 %v9187_v13  ;;  %v9229_v13 = vld [vmem:[#allocation5 + $0x588] ss:$16 sps:$4 sm:$0xff]  }
 0x271   :  { %5638 = vmatpush1.bf16.msra.mxu1 %v9190_v18  ;;  %5596 = vmatprep.subr.bf16.mxu0 %v9195_v4  ;;  %v9232_v18 = vld [vmem:[#allocation5 + $0x788] ss:$16 sps:$4 sm:$0xff]   ;;  %v9237_v4 = vld [vmem:[#allocation5 + $0x56c] ss:$16 sps:$4 sm:$0xff]  }
 0x272   :  { %5639 = vmatprep.subr.bf16.mxu1 %v9198_v19  ;;  %v9240_v19 = vld [vmem:[#allocation5 + $0x76c] ss:$16 sps:$4 sm:$0xff]  }
 0x274   :  { %5597 = vmatpush1.bf16.msra.mxu0 %v9193_v22  ;;  %v9235_v22 = vld [vmem:[#allocation5 + $0x568] ss:$16 sps:$4 sm:$0xff]  }
 0x275   :  { %5640 = vmatpush1.bf16.msra.mxu1 %v9196_v25  ;;  %5598 = vmatprep.subr.bf16.mxu0 %v9201_v51  ;;  %v9238_v25 = vld [vmem:[#allocation5 + $0x768] ss:$16 sps:$4 sm:$0xff]   ;;  %v9243_v51 = vld [vmem:[#allocation5 + $0x54c] ss:$16 sps:$4 sm:$0xff]  }
 0x276   :  { %5641 = vmatprep.subr.bf16.mxu1 %v9204_v32  ;;  %v9246_v32 = vld [vmem:[#allocation5 + $0x74c] ss:$16 sps:$4 sm:$0xff]  }
 0x278   :  { %5599 = vmatpush1.bf16.msra.mxu0 %v9199_v16  ;;  %v9241_v16 = vld [vmem:[#allocation5 + $0x548] ss:$16 sps:$4 sm:$0xff]  }
 0x279   :  { %5642 = vmatpush1.bf16.msra.mxu1 %v9202_v38  ;;  %5600 = vmatprep.subr.bf16.mxu0 %v9207_v53  ;;  %v9244_v38 = vld [vmem:[#allocation5 + $0x748] ss:$16 sps:$4 sm:$0xff]   ;;  %v9249_v53 = vld [vmem:[#allocation5 + $0x52c] ss:$16 sps:$4 sm:$0xff]  }
 0x27a   :  { %5643 = vmatprep.subr.bf16.mxu1 %v9210_v55  ;;  %v9252_v55 = vld [vmem:[#allocation5 + $0x72c] ss:$16 sps:$4 sm:$0xff]  }
 0x27c   :  { %5601 = vmatpush1.bf16.msra.mxu0 %v9205_v59  ;;  %v9247_v59 = vld [vmem:[#allocation5 + $0x528] ss:$16 sps:$4 sm:$0xff]  }
 0x27d   :  { %5644 = vmatpush1.bf16.msra.mxu1 %v9208_v42  ;;  %5602 = vmatprep.subr.bf16.mxu0 %v9213_v45  ;;  %v9250_v42 = vld [vmem:[#allocation5 + $0x728] ss:$16 sps:$4 sm:$0xff]   ;;  %v9255_v45 = vld [vmem:[#allocation5 + $0x50c] ss:$16 sps:$4 sm:$0xff]  }
 0x27e   :  { %5645 = vmatprep.subr.bf16.mxu1 %v9216_v30  ;;  %v9258_v30 = vld [vmem:[#allocation5 + $0x70c] ss:$16 sps:$4 sm:$0xff]  }
 0x280   :  { %5603 = vmatpush2.bf16.msra.mxu0 %v9211_v36  ;;  %v9253_v36 = vld [vmem:[#allocation5 + $0x508] ss:$16 sps:$4 sm:$0xff]  }
 0x281   :  { %5646 = vmatpush2.bf16.msra.mxu1 %v9214_v62  ;;  %5604 = vmatprep.subr.bf16.mxu0 %v9219_v0  ;;  %v9256_v62 = vld [vmem:[#allocation5 + $0x708] ss:$16 sps:$4 sm:$0xff]   ;;  %v9261_v0 = vld [vmem:[#allocation5 + $0x8ec] ss:$16 sps:$4 sm:$0xff]  }
 0x282   :  { %5647 = vmatprep.subr.bf16.mxu1 %v9222_v8  ;;  %v9264_v8 = vld [vmem:[#allocation5 + $0xaec] ss:$16 sps:$4 sm:$0xff]  }
 0x284   :  { %5605 = vmatpush2.bf16.msra.mxu0 %v9217_v9  ;;  %v9259_v9 = vld [vmem:[#allocation5 + $0x8e8] ss:$16 sps:$4 sm:$0xff]  }
 0x285   :  { %5648 = vmatpush2.bf16.msra.mxu1 %v9220_v6  ;;  %5606 = vmatprep.subr.bf16.mxu0 %v9225_v52  ;;  %v9262_v6 = vld [vmem:[#allocation5 + $0xae8] ss:$16 sps:$4 sm:$0xff]   ;;  %v10553_v52 = vpop.f32.mrf.mxu0 }
 0x286   :  { %5649 = vmatprep.subr.bf16.mxu1 %v9228_v1  ;;  %v10555_v1 = vpop.f32.mrf.mxu1 }
 0x288   :  { %5607 = vmatpush2.bf16.msra.mxu0 %v9223_v3  ;;  %v9267_v3 = vld [vmem:[#allocation5 + $0x8cc] ss:$16 sps:$4 sm:$0xff]  }
 0x289   :  { %5650 = vmatpush2.bf16.msra.mxu1 %v9226_v7  ;;  %5608 = vmatprep.subr.bf16.mxu0 %v9231_v41  ;;  %v9270_v7 = vld [vmem:[#allocation5 + $0xacc] ss:$16 sps:$4 sm:$0xff]   ;;  %v9265_v41 = vld [vmem:[#allocation5 + $0x8c8] ss:$16 sps:$4 sm:$0xff]  }
 0x28a   :  { %5651 = vmatprep.subr.bf16.mxu1 %v9234_v43  ;;  %v9268_v43 = vld [vmem:[#allocation5 + $0xac8] ss:$16 sps:$4 sm:$0xff]  }
 0x28c   :  { %5609 = vmatpush2.bf16.msra.mxu0 %v9229_v13 }
 0x28d   :  { %5652 = vmatpush2.bf16.msra.mxu1 %v9232_v18  ;;  %5610 = vmatprep.subr.bf16.mxu0 %v9237_v4 }
 0x28e   :  { %5653 = vmatprep.subr.bf16.mxu1 %v9240_v19 }
 0x290   :  { %5611 = vmatpush2.bf16.msra.mxu0 %v9235_v22 }
 0x291   :  { %5654 = vmatpush2.bf16.msra.mxu1 %v9238_v25  ;;  %5612 = vmatprep.subr.bf16.mxu0 %v9243_v51  ;;  %v9273_v25 = vld [vmem:[#allocation5 + $0x8ac] ss:$16 sps:$4 sm:$0xff]  }
 0x292   :  { %5655 = vmatprep.subr.bf16.mxu1 %v9246_v32  ;;  %v9276_v51 = vld [vmem:[#allocation5 + $0xaac] ss:$16 sps:$4 sm:$0xff]  }
 0x294   :  { %5613 = vmatpush2.bf16.msra.mxu0 %v9241_v16  ;;  %v9271_v16 = vld [vmem:[#allocation5 + $0x8a8] ss:$16 sps:$4 sm:$0xff]  }
 0x295   :  { %5656 = vmatpush2.bf16.msra.mxu1 %v9244_v38  ;;  %5614 = vmatprep.subr.bf16.mxu0 %v9249_v53  ;;  %v9274_v38 = vld [vmem:[#allocation5 + $0xaa8] ss:$16 sps:$4 sm:$0xff]   ;;  %v9279_v53 = vld [vmem:[#allocation5 + $0x88c] ss:$16 sps:$4 sm:$0xff]  }
 0x296   :  { %5657 = vmatprep.subr.bf16.mxu1 %v9252_v55  ;;  %v9282_v55 = vld [vmem:[#allocation5 + $0xa8c] ss:$16 sps:$4 sm:$0xff]  }
 0x298   :  { %5615 = vmatpush2.bf16.msra.mxu0 %v9247_v59 }
 0x299   :  { %5658 = vmatpush2.bf16.msra.mxu1 %v9250_v42  ;;  %5616 = vmatprep.subr.bf16.mxu0 %v9255_v45  ;;  %v9277_v42 = vld [vmem:[#allocation5 + $0x888] ss:$16 sps:$4 sm:$0xff]  }
 0x29a   :  { %5659 = vmatprep.subr.bf16.mxu1 %v9258_v30  ;;  %v9280_v45 = vld [vmem:[#allocation5 + $0xa88] ss:$16 sps:$4 sm:$0xff]  }
 0x29b   :  { %v9286_v30 = vld [vmem:[#allocation5 + $0xa68] ss:$16 sps:$4 sm:$0xff]  }
 0x29c   :  { %5617 = vmatpush2.bf16.msra.mxu0 %v9253_v36  ;;  %v9291_v36 = vld [vmem:[#allocation5 + $0x84c] ss:$16 sps:$4 sm:$0xff]  }
 0x29d   :  { %5660 = vmatpush2.bf16.msra.mxu1 %v9256_v62  ;;  %5672 = vmatprep.subr.bf16.mxu0 %v9261_v0  ;;  %v9294_v62 = vld [vmem:[#allocation5 + $0xa4c] ss:$16 sps:$4 sm:$0xff]   ;;  %v9289_v0 = vld [vmem:[#allocation5 + $0x848] ss:$16 sps:$4 sm:$0xff]  }
 0x29e   :  { %5715 = vmatprep.subr.bf16.mxu1 %v9264_v8  ;;  %v9292_v8 = vld [vmem:[#allocation5 + $0xa48] ss:$16 sps:$4 sm:$0xff]  }
 0x29f   :  { %v5362_v13 = vpop.f32.mrf.mxu0  ;;  %5619 = vmatmul.mubr.bf16.vlgmr.msra.gmra.mxu0 %v10371_v20 }
 0x2a0   :  { %v5405_v18 = vpop.f32.mrf.mxu1  ;;  %5662 = vmatmul.mubr.bf16.vlgmr.msra.gmra.mxu1 %v10375_v21  ;;  %v5363_v4 = vadd.f32 %v5362_v13, %v10546_v31  ;;  %5673 = vmatpush1.bf16.msra.mxu0 %v9259_v9  ;;  %v9297_v9 = vld [vmem:[#allocation5 + $0x82c] ss:$16 sps:$4 sm:$0xff]   ;;  %v9301_v13 = vld [vmem:[#allocation5 + $0x808] ss:$16 sps:$4 sm:$0xff]  }
 0x2a1   :  { %5716 = vmatpush1.bf16.msra.mxu1 %v9262_v6  ;;  %v10560_v19 = vpop.f32.mrf.mxu0  ;;  %5674 = vmatprep.subr.bf16.mxu0 %v9267_v3  ;;  %v9300_v6 = vld [vmem:[#allocation5 + $0xa2c] ss:$16 sps:$4 sm:$0xff]   ;;  %v9295_v3 = vld [vmem:[#allocation5 + $0x828] ss:$16 sps:$4 sm:$0xff]  }
 0x2a2   :  { %v10562_v22 = vpop.f32.mrf.mxu1  ;;  %5717 = vmatprep.subr.bf16.mxu1 %v9270_v7  ;;  %v10564_v32 = vadd.f32 %v5405_v18, %v5363_v4  ;;  %5704 = vmatprep.mubr.bf16.mxu0 %v10389_v33  ;;  %v9285_v33 = vld [vmem:[#allocation5 + $0x86c] ss:$16 sps:$4 sm:$0xff]   ;;  %v9298_v7 = vld [vmem:[#allocation5 + $0xa28] ss:$16 sps:$4 sm:$0xff]  }
 0x2a3   :  { %5747 = vmatprep.mubr.bf16.mxu1 %v10393_v35  ;;  %v5366_v20 = vpop.f32.mrf.mxu0  ;;  %v9288_v35 = vld [vmem:[#allocation5 + $0xa6c] ss:$16 sps:$4 sm:$0xff]   ;;  %v9304_v18 = vld [vmem:[#allocation5 + $0xa08] ss:$16 sps:$4 sm:$0xff]  }
 0x2a4   :  { %v5367_v21 = vadd.f32 %v5366_v20, %v10551_v2  ;;  %5675 = vmatpush1.bf16.msra.mxu0 %v9265_v41  ;;  %v5409_v31 = vpop.f32.mrf.mxu1  ;;  %v9283_v2 = vld [vmem:[#allocation5 + $0x868] ss:$16 sps:$4 sm:$0xff]   ;;  %v9303_v41 = vld [vmem:[#allocation5 + $0x80c] ss:$16 sps:$4 sm:$0xff]  }
 0x2a5   :  { %5718 = vmatpush1.bf16.msra.mxu1 %v9268_v43  ;;  %5676 = vmatprep.subr.bf16.mxu0 %v9273_v25  ;;  %v9306_v43 = vld [vmem:[#allocation5 + $0xa0c] ss:$16 sps:$4 sm:$0xff]  }
 0x2a6   :  { %5719 = vmatprep.subr.bf16.mxu1 %v9276_v51  ;;  %v10569_v59 = vadd.f32 %v5409_v31, %v5367_v21  ;;  %v9309_v4 = vld [vmem:[#allocation5 + $0x9ec] ss:$16 sps:$4 sm:$0xff]   ;;  %v9307_v51 = vld [vmem:[#allocation5 + $0x9e8] ss:$16 sps:$4 sm:$0xff]  }
 0x2a7   :  { %v9312_v25 = vld [vmem:[#allocation5 + $0xbec] ss:$16 sps:$4 sm:$0xff]   ;;  %v9313_v21 = vld [vmem:[#allocation5 + $0x9c8] ss:$16 sps:$4 sm:$0xff]  }
 0x2a8   :  { %5677 = vmatpush1.bf16.msra.mxu0 %v9271_v16  ;;  %v9310_v16 = vld [vmem:[#allocation5 + $0xbe8] ss:$16 sps:$4 sm:$0xff]   ;;  %v9318_v20 = vld [vmem:[#allocation5 + $0xbcc] ss:$16 sps:$4 sm:$0xff]  }
 0x2a9   :  { %5720 = vmatpush1.bf16.msra.mxu1 %v9274_v38  ;;  %5678 = vmatprep.subr.bf16.mxu0 %v9279_v53  ;;  %v9315_v38 = vld [vmem:[#allocation5 + $0x9cc] ss:$16 sps:$4 sm:$0xff]   ;;  %v9316_v31 = vld [vmem:[#allocation5 + $0xbc8] ss:$16 sps:$4 sm:$0xff]  }
 0x2aa   :  { %5721 = vmatprep.subr.bf16.mxu1 %v9282_v55  ;;  %v9321_v53 = vld [vmem:[#allocation5 + $0x9ac] ss:$16 sps:$4 sm:$0xff]  }
 0x2ab   :  { %v9324_v55 = vld [vmem:[#allocation5 + $0xbac] ss:$16 sps:$4 sm:$0xff]  }
 0x2ac   :  { %5679 = vmatpush1.bf16.msra.mxu0 %v9277_v42  ;;  %v9319_v42 = vld [vmem:[#allocation5 + $0x9a8] ss:$16 sps:$4 sm:$0xff]  }
 0x2ad   :  { %5722 = vmatpush1.bf16.msra.mxu1 %v9280_v45  ;;  %5680 = vmatprep.subr.bf16.mxu0 %v9285_v33  ;;  %v9322_v45 = vld [vmem:[#allocation5 + $0xba8] ss:$16 sps:$4 sm:$0xff]   ;;  %v9327_v33 = vld [vmem:[#allocation5 + $0x98c] ss:$16 sps:$4 sm:$0xff]  }
 0x2ae   :  { %5723 = vmatprep.subr.bf16.mxu1 %v9288_v35  ;;  %v9330_v35 = vld [vmem:[#allocation5 + $0xb8c] ss:$16 sps:$4 sm:$0xff]  }
 0x2b0   :  { %5681 = vmatpush1.bf16.msra.mxu0 %v9283_v2  ;;  %v9325_v2 = vld [vmem:[#allocation5 + $0x988] ss:$16 sps:$4 sm:$0xff]  }
 0x2b1   :  { %5724 = vmatpush1.bf16.msra.mxu1 %v9286_v30  ;;  %5682 = vmatprep.subr.bf16.mxu0 %v9291_v36  ;;  %v9328_v30 = vld [vmem:[#allocation5 + $0xb88] ss:$16 sps:$4 sm:$0xff]   ;;  %v9333_v36 = vld [vmem:[#allocation5 + $0x96c] ss:$16 sps:$4 sm:$0xff]  }
 0x2b2   :  { %5725 = vmatprep.subr.bf16.mxu1 %v9294_v62  ;;  %v9336_v62 = vld [vmem:[#allocation5 + $0xb6c] ss:$16 sps:$4 sm:$0xff]  }
 0x2b4   :  { %5683 = vmatpush1.bf16.msra.mxu0 %v9289_v0  ;;  %v9331_v0 = vld [vmem:[#allocation5 + $0x968] ss:$16 sps:$4 sm:$0xff]  }
 0x2b5   :  { %5726 = vmatpush1.bf16.msra.mxu1 %v9292_v8  ;;  %5684 = vmatprep.subr.bf16.mxu0 %v9297_v9  ;;  %v9334_v8 = vld [vmem:[#allocation5 + $0xb68] ss:$16 sps:$4 sm:$0xff]   ;;  %v9339_v9 = vld [vmem:[#allocation5 + $0x94c] ss:$16 sps:$4 sm:$0xff]  }
 0x2b6   :  { %5727 = vmatprep.subr.bf16.mxu1 %v9300_v6  ;;  %v9342_v6 = vld [vmem:[#allocation5 + $0xb4c] ss:$16 sps:$4 sm:$0xff]  }
 0x2b8   :  { %5685 = vmatpush1.bf16.msra.mxu0 %v9295_v3  ;;  %v9337_v3 = vld [vmem:[#allocation5 + $0x948] ss:$16 sps:$4 sm:$0xff]  }
 0x2b9   :  { %5728 = vmatpush1.bf16.msra.mxu1 %v9298_v7  ;;  %5686 = vmatprep.subr.bf16.mxu0 %v9303_v41  ;;  %v9340_v7 = vld [vmem:[#allocation5 + $0xb48] ss:$16 sps:$4 sm:$0xff]   ;;  %v9345_v41 = vld [vmem:[#allocation5 + $0x92c] ss:$16 sps:$4 sm:$0xff]  }
 0x2ba   :  { %5729 = vmatprep.subr.bf16.mxu1 %v9306_v43  ;;  %v9348_v43 = vld [vmem:[#allocation5 + $0xb2c] ss:$16 sps:$4 sm:$0xff]  }
 0x2bc   :  { %5687 = vmatpush1.bf16.msra.mxu0 %v9301_v13  ;;  %v9343_v13 = vld [vmem:[#allocation5 + $0x928] ss:$16 sps:$4 sm:$0xff]  }
 0x2bd   :  { %5730 = vmatpush1.bf16.msra.mxu1 %v9304_v18  ;;  %5688 = vmatprep.subr.bf16.mxu0 %v9309_v4  ;;  %v9346_v18 = vld [vmem:[#allocation5 + $0xb28] ss:$16 sps:$4 sm:$0xff]   ;;  %v9351_v4 = vld [vmem:[#allocation5 + $0x90c] ss:$16 sps:$4 sm:$0xff]  }
 0x2be   :  { %5731 = vmatprep.subr.bf16.mxu1 %v9312_v25  ;;  %v9354_v25 = vld [vmem:[#allocation5 + $0xb0c] ss:$16 sps:$4 sm:$0xff]  }
 0x2c0   :  { %5689 = vmatpush2.bf16.msra.mxu0 %v9307_v51  ;;  %v9349_v51 = vld [vmem:[#allocation5 + $0x908] ss:$16 sps:$4 sm:$0xff]  }
 0x2c1   :  { %5732 = vmatpush2.bf16.msra.mxu1 %v9310_v16  ;;  %5690 = vmatprep.subr.bf16.mxu0 %v9315_v38  ;;  %v9352_v16 = vld [vmem:[#allocation5 + $0xb08] ss:$16 sps:$4 sm:$0xff]   ;;  %v9357_v38 = vld [vmem:[#allocation5 + $0xcec] ss:$16 sps:$4 sm:$0xff]  }
 0x2c2   :  { %5733 = vmatprep.subr.bf16.mxu1 %v9318_v20  ;;  %v9360_v20 = vld [vmem:[#allocation5 + $0xeec] ss:$16 sps:$4 sm:$0xff]  }
 0x2c4   :  { %5691 = vmatpush2.bf16.msra.mxu0 %v9313_v21  ;;  %v9355_v21 = vld [vmem:[#allocation5 + $0xce8] ss:$16 sps:$4 sm:$0xff]  }
 0x2c5   :  { %5734 = vmatpush2.bf16.msra.mxu1 %v9316_v31  ;;  %5692 = vmatprep.subr.bf16.mxu0 %v9321_v53  ;;  %v9358_v31 = vld [vmem:[#allocation5 + $0xee8] ss:$16 sps:$4 sm:$0xff]   ;;  %v10571_v53 = vpop.f32.mrf.mxu0 }
 0x2c6   :  { %5735 = vmatprep.subr.bf16.mxu1 %v9324_v55  ;;  %v10573_v55 = vpop.f32.mrf.mxu1 }
 0x2c8   :  { %5693 = vmatpush2.bf16.msra.mxu0 %v9319_v42  ;;  %v9363_v42 = vld [vmem:[#allocation5 + $0xccc] ss:$16 sps:$4 sm:$0xff]  }
 0x2c9   :  { %5736 = vmatpush2.bf16.msra.mxu1 %v9322_v45  ;;  %5694 = vmatprep.subr.bf16.mxu0 %v9327_v33  ;;  %v9366_v45 = vld [vmem:[#allocation5 + $0xecc] ss:$16 sps:$4 sm:$0xff]  }
 0x2ca   :  { %5737 = vmatprep.subr.bf16.mxu1 %v9330_v35 }
 0x2cc   :  { %5695 = vmatpush2.bf16.msra.mxu0 %v9325_v2 }
 0x2cd   :  { %5738 = vmatpush2.bf16.msra.mxu1 %v9328_v30  ;;  %5696 = vmatprep.subr.bf16.mxu0 %v9333_v36  ;;  %v9361_v30 = vld [vmem:[#allocation5 + $0xcc8] ss:$16 sps:$4 sm:$0xff]  }
 0x2ce   :  { %5739 = vmatprep.subr.bf16.mxu1 %v9336_v62  ;;  %v9364_v36 = vld [vmem:[#allocation5 + $0xec8] ss:$16 sps:$4 sm:$0xff]  }
 0x2d0   :  { %5697 = vmatpush2.bf16.msra.mxu0 %v9331_v0 }
 0x2d1   :  { %5740 = vmatpush2.bf16.msra.mxu1 %v9334_v8  ;;  %5698 = vmatprep.subr.bf16.mxu0 %v9339_v9  ;;  %v9369_v8 = vld [vmem:[#allocation5 + $0xcac] ss:$16 sps:$4 sm:$0xff]  }
 0x2d2   :  { %5741 = vmatprep.subr.bf16.mxu1 %v9342_v6  ;;  %v9372_v9 = vld [vmem:[#allocation5 + $0xeac] ss:$16 sps:$4 sm:$0xff]  }
 0x2d4   :  { %5699 = vmatpush2.bf16.msra.mxu0 %v9337_v3  ;;  %v9370_v3 = vld [vmem:[#allocation5 + $0xea8] ss:$16 sps:$4 sm:$0xff]  }
 0x2d5   :  { %5742 = vmatpush2.bf16.msra.mxu1 %v9340_v7  ;;  %5700 = vmatprep.subr.bf16.mxu0 %v9345_v41  ;;  %v9375_v41 = vld [vmem:[#allocation5 + $0xc8c] ss:$16 sps:$4 sm:$0xff]  }
 0x2d6   :  { %5743 = vmatprep.subr.bf16.mxu1 %v9348_v43  ;;  %v9378_v43 = vld [vmem:[#allocation5 + $0xe8c] ss:$16 sps:$4 sm:$0xff]  }
 0x2d8   :  { %5701 = vmatpush2.bf16.msra.mxu0 %v9343_v13 }
 0x2d9   :  { %5744 = vmatpush2.bf16.msra.mxu1 %v9346_v18  ;;  %5702 = vmatprep.subr.bf16.mxu0 %v9351_v4 }
 0x2da   :  { %5745 = vmatprep.subr.bf16.mxu1 %v9354_v25  ;;  %v9376_v25 = vld [vmem:[#allocation5 + $0xe88] ss:$16 sps:$4 sm:$0xff]  }
 0x2dc   :  { %5703 = vmatpush2.bf16.msra.mxu0 %v9349_v51 }
 0x2dd   :  { %5746 = vmatpush2.bf16.msra.mxu1 %v9352_v16  ;;  %5758 = vmatprep.subr.bf16.mxu0 %v9357_v38  ;;  %v9379_v16 = vld [vmem:[#allocation5 + $0xc68] ss:$16 sps:$4 sm:$0xff]  }
 0x2de   :  { %5801 = vmatprep.subr.bf16.mxu1 %v9360_v20  ;;  %v9382_v38 = vld [vmem:[#allocation5 + $0xe68] ss:$16 sps:$4 sm:$0xff]   ;;  %v9387_v20 = vld [vmem:[#allocation5 + $0xc4c] ss:$16 sps:$4 sm:$0xff]  }
 0x2df   :  { %v5448_v33 = vpop.f32.mrf.mxu0  ;;  %5705 = vmatmul.mubr.bf16.vlgmr.msra.gmra.mxu0 %v10405_v48 }
 0x2e0   :  { %v5491_v35 = vpop.f32.mrf.mxu1  ;;  %5748 = vmatmul.mubr.bf16.vlgmr.msra.gmra.mxu1 %v10409_v49  ;;  %v5449_v2 = vadd.f32 %v5448_v33, %v10564_v32  ;;  %5759 = vmatpush1.bf16.msra.mxu0 %v9355_v21  ;;  %v9367_v32 = vld [vmem:[#allocation5 + $0xca8] ss:$16 sps:$4 sm:$0xff]   ;;  %v9390_v21 = vld [vmem:[#allocation5 + $0xe4c] ss:$16 sps:$4 sm:$0xff]  }
 0x2e1   :  { %5802 = vmatpush1.bf16.msra.mxu1 %v9358_v31  ;;  %v10578_v62 = vpop.f32.mrf.mxu0  ;;  %5760 = vmatprep.subr.bf16.mxu0 %v9363_v42  ;;  %v9385_v31 = vld [vmem:[#allocation5 + $0xc48] ss:$16 sps:$4 sm:$0xff]   ;;  %v9396_v33 = vld [vmem:[#allocation5 + $0xe2c] ss:$16 sps:$4 sm:$0xff]  }
 0x2e2   :  { %v10580_v0 = vpop.f32.mrf.mxu1  ;;  %5803 = vmatprep.subr.bf16.mxu1 %v9366_v45  ;;  %v5492_v6 = vadd.f32 %v5491_v35, %v5449_v2  ;;  %5790 = vmatprep.mubr.bf16.mxu0 %v10415_v56  ;;  %v9373_v56 = vld [vmem:[#allocation5 + $0xc88] ss:$16 sps:$4 sm:$0xff]   ;;  %v9393_v45 = vld [vmem:[#allocation5 + $0xc2c] ss:$16 sps:$4 sm:$0xff]  }
 0x2e3   :  { %5833 = vmatprep.mubr.bf16.mxu1 %v10419_v28  ;;  %v5452_v48 = vpop.f32.mrf.mxu0  ;;  %v9381_v28 = vld [vmem:[#allocation5 + $0xc6c] ss:$16 sps:$4 sm:$0xff]   ;;  %v9388_v42 = vld [vmem:[#allocation5 + $0xe48] ss:$16 sps:$4 sm:$0xff]  }
 0x2e4   :  { %v5453_v49 = vadd.f32 %v5452_v48, %v10569_v59  ;;  %5761 = vmatpush1.bf16.msra.mxu0 %v9361_v30  ;;  %v5495_v7 = vpop.f32.mrf.mxu1  ;;  %v6016_v18 = vmax.f32 %v5492_v6, 0.0  ;;  %v9384_v59 = vld [vmem:[#allocation5 + $0xe6c] ss:$16 sps:$4 sm:$0xff]   ;;  %v9391_v35 = vld [vmem:[#allocation5 + $0xc28] ss:$16 sps:$4 sm:$0xff]  }
 0x2e5   :  { %5804 = vmatpush1.bf16.msra.mxu1 %v9364_v36  ;;  %5762 = vmatprep.subr.bf16.mxu0 %v9369_v8  ;;  %v9394_v2 = vld [vmem:[#allocation5 + $0xe28] ss:$16 sps:$4 sm:$0xff]   ;;  %v9399_v30 = vld [vmem:[#allocation5 + $0xc0c] ss:$16 sps:$4 sm:$0xff]  }
 0x2e6   :  { %5805 = vmatprep.subr.bf16.mxu1 %v9372_v9  ;;  %v5496_v13 = vadd.f32 %v5495_v7, %v5453_v49  ;;  %v9402_v36 = vld [vmem:[#allocation5 + $0xe0c] ss:$16 sps:$4 sm:$0xff]   ;;  %v9397_v8 = vld [vmem:[#allocation5 + $0xc08] ss:$16 sps:$4 sm:$0xff]  }
 0x2e7   :  { %v9400_v9 = vld [vmem:[#allocation5 + $0xe08] ss:$16 sps:$4 sm:$0xff]   ;;  %v9405_v6 = vld [vmem:[#allocation5 + $0xdec] ss:$16 sps:$4 sm:$0xff]  }
 0x2e8   :  { %v6020_v4 = vmax.f32 %v5496_v13, 0.0  ;;  %5763 = vmatpush1.bf16.msra.mxu0 %v9367_v32  ;;  %v9408_v48 = vld [vmem:[#allocation5 + $0xfec] ss:$16 sps:$4 sm:$0xff]   ;;  %v9403_v49 = vld [vmem:[#allocation5 + $0xde8] ss:$16 sps:$4 sm:$0xff]  }
 0x2e9   :  { %5806 = vmatpush1.bf16.msra.mxu1 %v9370_v3  ;;  %5764 = vmatprep.subr.bf16.mxu0 %v9375_v41  ;;  %v9406_v32 = vld [vmem:[#allocation5 + $0xfe8] ss:$16 sps:$4 sm:$0xff]   ;;  %v9411_v3 = vld [vmem:[#allocation5 + $0xdcc] ss:$16 sps:$4 sm:$0xff]  }
 0x2ea   :  { %5807 = vmatprep.subr.bf16.mxu1 %v9378_v43  ;;  %v10585_v51 = vpack.c.bf16 %v6020_v4, %v6016_v18  ;;  %v9414_v7 = vld [vmem:[#allocation5 + $0xfcc] ss:$16 sps:$4 sm:$0xff]   ;;  %v9409_v41 = vld [vmem:[#allocation5 + $0xdc8] ss:$16 sps:$4 sm:$0xff]  }
 0x2eb   :  { %v9412_v43 = vld [vmem:[#allocation5 + $0xfc8] ss:$16 sps:$4 sm:$0xff]   ;;  %v9417_v13 = vld [vmem:[#allocation5 + $0xdac] ss:$16 sps:$4 sm:$0xff]  }
 0x2ec   :  { %5765 = vmatpush1.bf16.msra.mxu0 %v9373_v56  ;;  %v9420_v18 = vld [vmem:[#allocation5 + $0xfac] ss:$16 sps:$4 sm:$0xff]   ;;  %v9415_v4 = vld [vmem:[#allocation5 + $0xda8] ss:$16 sps:$4 sm:$0xff]  }
 0x2ed   :  { %5808 = vmatpush1.bf16.msra.mxu1 %v9376_v25  ;;  %5766 = vmatprep.subr.bf16.mxu0 %v9381_v28  ;;  %v9418_v56 = vld [vmem:[#allocation5 + $0xfa8] ss:$16 sps:$4 sm:$0xff]   ;;  %v9423_v25 = vld [vmem:[#allocation5 + $0xd8c] ss:$16 sps:$4 sm:$0xff]  }
 0x2ee   :  { %5809 = vmatprep.subr.bf16.mxu1 %v9384_v59  ;;  %v9426_v28 = vld [vmem:[#allocation5 + $0xf8c] ss:$16 sps:$4 sm:$0xff]   ;;  %v9421_v59 = vld [vmem:[#allocation5 + $0xd88] ss:$16 sps:$4 sm:$0xff]  }
 0x2f0   :  { %5767 = vmatpush1.bf16.msra.mxu0 %v9379_v16  ;;  %v9424_v16 = vld [vmem:[#allocation5 + $0xf88] ss:$16 sps:$4 sm:$0xff]  }
 0x2f1   :  { %5810 = vmatpush1.bf16.msra.mxu1 %v9382_v38  ;;  %5768 = vmatprep.subr.bf16.mxu0 %v9387_v20  ;;  %v9429_v38 = vld [vmem:[#allocation5 + $0xd6c] ss:$16 sps:$4 sm:$0xff]  }
 0x2f2   :  { %5811 = vmatprep.subr.bf16.mxu1 %v9390_v21  ;;  %v9432_v20 = vld [vmem:[#allocation5 + $0xf6c] ss:$16 sps:$4 sm:$0xff]   ;;  %v9427_v21 = vld [vmem:[#allocation5 + $0xd68] ss:$16 sps:$4 sm:$0xff]  }
 0x2f4   :  { %5769 = vmatpush1.bf16.msra.mxu0 %v9385_v31  ;;  %v9430_v31 = vld [vmem:[#allocation5 + $0xf68] ss:$16 sps:$4 sm:$0xff]  }
 0x2f5   :  { %5812 = vmatpush1.bf16.msra.mxu1 %v9388_v42  ;;  %5770 = vmatprep.subr.bf16.mxu0 %v9393_v45  ;;  %v9435_v42 = vld [vmem:[#allocation5 + $0xd4c] ss:$16 sps:$4 sm:$0xff]  }
 0x2f6   :  { %5813 = vmatprep.subr.bf16.mxu1 %v9396_v33  ;;  %v9438_v45 = vld [vmem:[#allocation5 + $0xf4c] ss:$16 sps:$4 sm:$0xff]   ;;  %v9433_v33 = vld [vmem:[#allocation5 + $0xd48] ss:$16 sps:$4 sm:$0xff]  }
 0x2f8   :  { %5771 = vmatpush1.bf16.msra.mxu0 %v9391_v35  ;;  %v9436_v35 = vld [vmem:[#allocation5 + $0xf48] ss:$16 sps:$4 sm:$0xff]  }
 0x2f9   :  { %5814 = vmatpush1.bf16.msra.mxu1 %v9394_v2  ;;  %5772 = vmatprep.subr.bf16.mxu0 %v9399_v30  ;;  %v9441_v2 = vld [vmem:[#allocation5 + $0xd2c] ss:$16 sps:$4 sm:$0xff]  }
 0x2fa   :  { %5815 = vmatprep.subr.bf16.mxu1 %v9402_v36  ;;  %v9444_v30 = vld [vmem:[#allocation5 + $0xf2c] ss:$16 sps:$4 sm:$0xff]   ;;  %v9439_v36 = vld [vmem:[#allocation5 + $0xd28] ss:$16 sps:$4 sm:$0xff]  }
 0x2fc   :  { %5773 = vmatpush1.bf16.msra.mxu0 %v9397_v8  ;;  %v9442_v8 = vld [vmem:[#allocation5 + $0xf28] ss:$16 sps:$4 sm:$0xff]  }
 0x2fd   :  { %5816 = vmatpush1.bf16.msra.mxu1 %v9400_v9  ;;  %5774 = vmatprep.subr.bf16.mxu0 %v9405_v6  ;;  %v9447_v9 = vld [vmem:[#allocation5 + $0xd0c] ss:$16 sps:$4 sm:$0xff]  }
 0x2fe   :  { %5817 = vmatprep.subr.bf16.mxu1 %v9408_v48  ;;  %v9450_v6 = vld [vmem:[#allocation5 + $0xf0c] ss:$16 sps:$4 sm:$0xff]   ;;  %v9445_v48 = vld [vmem:[#allocation5 + $0xd08] ss:$16 sps:$4 sm:$0xff]  }
 0x300   :  { %5775 = vmatpush2.bf16.msra.mxu0 %v9403_v49  ;;  %v9448_v49 = vld [vmem:[#allocation5 + $0xf08] ss:$16 sps:$4 sm:$0xff]  }
 0x301   :  { %5818 = vmatpush2.bf16.msra.mxu1 %v9406_v32  ;;  %5776 = vmatprep.subr.bf16.mxu0 %v9411_v3  ;;  %v9453_v32 = vld [vmem:[#allocation5 + $0x10ec] ss:$16 sps:$4 sm:$0xff]  }
 0x302   :  { %5819 = vmatprep.subr.bf16.mxu1 %v9414_v7  ;;  %v9456_v3 = vld [vmem:[#allocation5 + $0x12ec] ss:$16 sps:$4 sm:$0xff]   ;;  %v9451_v7 = vld [vmem:[#allocation5 + $0x10e8] ss:$16 sps:$4 sm:$0xff]  }
 0x304   :  { %5777 = vmatpush2.bf16.msra.mxu0 %v9409_v41  ;;  %v9454_v41 = vld [vmem:[#allocation5 + $0x12e8] ss:$16 sps:$4 sm:$0xff]  }
 0x305   :  { %5820 = vmatpush2.bf16.msra.mxu1 %v9412_v43  ;;  %5778 = vmatprep.subr.bf16.mxu0 %v9417_v13  ;;  %v9459_v43 = vld [vmem:[#allocation5 + $0x10cc] ss:$16 sps:$4 sm:$0xff]  }
 0x306   :  { %5821 = vmatprep.subr.bf16.mxu1 %v9420_v18  ;;  %v9462_v13 = vld [vmem:[#allocation5 + $0x12cc] ss:$16 sps:$4 sm:$0xff]   ;;  %v9457_v18 = vld [vmem:[#allocation5 + $0x10c8] ss:$16 sps:$4 sm:$0xff]  }
 0x308   :  { %5779 = vmatpush2.bf16.msra.mxu0 %v9415_v4  ;;  %v9460_v4 = vld [vmem:[#allocation5 + $0x12c8] ss:$16 sps:$4 sm:$0xff]  }
 0x309   :  { %5822 = vmatpush2.bf16.msra.mxu1 %v9418_v56  ;;  %5780 = vmatprep.subr.bf16.mxu0 %v9423_v25  ;;  %v9465_v56 = vld [vmem:[#allocation5 + $0x10ac] ss:$16 sps:$4 sm:$0xff]  }
 0x30a   :  { %5823 = vmatprep.subr.bf16.mxu1 %v9426_v28  ;;  %v9468_v25 = vld [vmem:[#allocation5 + $0x12ac] ss:$16 sps:$4 sm:$0xff]   ;;  %v9463_v28 = vld [vmem:[#allocation5 + $0x10a8] ss:$16 sps:$4 sm:$0xff]  }
 0x30c   :  { %5781 = vmatpush2.bf16.msra.mxu0 %v9421_v59  ;;  %v9466_v59 = vld [vmem:[#allocation5 + $0x12a8] ss:$16 sps:$4 sm:$0xff]  }
 0x30d   :  { %5824 = vmatpush2.bf16.msra.mxu1 %v9424_v16  ;;  %5782 = vmatprep.subr.bf16.mxu0 %v9429_v38  ;;  %v9469_v16 = vld [vmem:[#allocation5 + $0x1088] ss:$16 sps:$4 sm:$0xff]  }
 0x30e   :  { %5825 = vmatprep.subr.bf16.mxu1 %v9432_v20  ;;  %v9472_v38 = vld [vmem:[#allocation5 + $0x1288] ss:$16 sps:$4 sm:$0xff]   ;;  %v9477_v20 = vld [vmem:[#allocation5 + $0x106c] ss:$16 sps:$4 sm:$0xff]  }
 0x310   :  { %5783 = vmatpush2.bf16.msra.mxu0 %v9427_v21  ;;  %v9480_v21 = vld [vmem:[#allocation5 + $0x126c] ss:$16 sps:$4 sm:$0xff]  }
 0x311   :  { %5826 = vmatpush2.bf16.msra.mxu1 %v9430_v31  ;;  %5784 = vmatprep.subr.bf16.mxu0 %v9435_v42  ;;  %v9483_v31 = vld [vmem:[#allocation5 + $0x104c] ss:$16 sps:$4 sm:$0xff]  }
 0x312   :  { %5827 = vmatprep.subr.bf16.mxu1 %v9438_v45  ;;  %v9486_v42 = vld [vmem:[#allocation5 + $0x124c] ss:$16 sps:$4 sm:$0xff]   ;;  %v9481_v45 = vld [vmem:[#allocation5 + $0x1048] ss:$16 sps:$4 sm:$0xff]  }
 0x314   :  { %5785 = vmatpush2.bf16.msra.mxu0 %v9433_v33  ;;  %v9484_v33 = vld [vmem:[#allocation5 + $0x1248] ss:$16 sps:$4 sm:$0xff]  }
 0x315   :  { %5828 = vmatpush2.bf16.msra.mxu1 %v9436_v35  ;;  %5786 = vmatprep.subr.bf16.mxu0 %v9441_v2  ;;  %v9489_v35 = vld [vmem:[#allocation5 + $0x102c] ss:$16 sps:$4 sm:$0xff]  }
 0x316   :  { %5829 = vmatprep.subr.bf16.mxu1 %v9444_v30  ;;  %v9492_v2 = vld [vmem:[#allocation5 + $0x122c] ss:$16 sps:$4 sm:$0xff]   ;;  %v9487_v30 = vld [vmem:[#allocation5 + $0x1028] ss:$16 sps:$4 sm:$0xff]  }
 0x318   :  { %5787 = vmatpush2.bf16.msra.mxu0 %v9439_v36  ;;  %v9490_v36 = vld [vmem:[#allocation5 + $0x1228] ss:$16 sps:$4 sm:$0xff]  }
 0x319   :  { %5830 = vmatpush2.bf16.msra.mxu1 %v9442_v8  ;;  %5788 = vmatprep.subr.bf16.mxu0 %v9447_v9  ;;  %v9495_v8 = vld [vmem:[#allocation5 + $0x100c] ss:$16 sps:$4 sm:$0xff]  }
 0x31a   :  { %5831 = vmatprep.subr.bf16.mxu1 %v9450_v6  ;;  %v9498_v9 = vld [vmem:[#allocation5 + $0x120c] ss:$16 sps:$4 sm:$0xff]   ;;  %v9493_v6 = vld [vmem:[#allocation5 + $0x1008] ss:$16 sps:$4 sm:$0xff]  }
 0x31c   :  { %5789 = vmatpush2.bf16.msra.mxu0 %v9445_v48  ;;  %v9496_v48 = vld [vmem:[#allocation5 + $0x1208] ss:$16 sps:$4 sm:$0xff]  }
 0x31d   :  { %5832 = vmatpush2.bf16.msra.mxu1 %v9448_v49  ;;  %5844 = vmatprep.subr.bf16.mxu0 %v9453_v32  ;;  %v9501_v49 = vld [vmem:[#allocation5 + $0x11ec] ss:$16 sps:$4 sm:$0xff]  }
 0x31e   :  { %5887 = vmatprep.subr.bf16.mxu1 %v9456_v3  ;;  %v9504_v32 = vld [vmem:[#allocation5 + $0x13ec] ss:$16 sps:$4 sm:$0xff]   ;;  %v9499_v3 = vld [vmem:[#allocation5 + $0x11e8] ss:$16 sps:$4 sm:$0xff]  }
 0x31f   :  { %5791 = vmatmul.mubr.bf16.vlgmr.msra.gmra.mxu0 %v10438_v14  ;;  %v9471_v14 = vld [vmem:[#allocation5 + $0x108c] ss:$16 sps:$4 sm:$0xff]  }
 0x320   :  { %5834 = vmatmul.mubr.bf16.vlgmr.msra.gmra.mxu1 %v10442_v15  ;;  %5845 = vmatpush1.bf16.msra.mxu0 %v9451_v7  ;;  %v9474_v15 = vld [vmem:[#allocation5 + $0x128c] ss:$16 sps:$4 sm:$0xff]   ;;  %v9502_v7 = vld [vmem:[#allocation5 + $0x13e8] ss:$16 sps:$4 sm:$0xff]  }
 0x321   :  { %5888 = vmatpush1.bf16.msra.mxu1 %v9454_v41  ;;  %5846 = vmatprep.subr.bf16.mxu0 %v9459_v43  ;;  %v9507_v41 = vld [vmem:[#allocation5 + $0x11cc] ss:$16 sps:$4 sm:$0xff]  }
 0x322   :  { %5889 = vmatprep.subr.bf16.mxu1 %v9462_v13  ;;  %5876 = vmatprep.mubr.bf16.mxu0 %v10449_v23  ;;  %v9475_v23 = vld [vmem:[#allocation5 + $0x1068] ss:$16 sps:$4 sm:$0xff]   ;;  %v9510_v43 = vld [vmem:[#allocation5 + $0x13cc] ss:$16 sps:$4 sm:$0xff]  }
 0x323   :  { %5919 = vmatprep.mubr.bf16.mxu1 %v10453_v44  ;;  %v9478_v44 = vld [vmem:[#allocation5 + $0x1268] ss:$16 sps:$4 sm:$0xff]  }
 0x324   :  { %5847 = vmatpush1.bf16.msra.mxu0 %v9457_v18  ;;  %v9505_v13 = vld [vmem:[#allocation5 + $0x11c8] ss:$16 sps:$4 sm:$0xff]  }
 0x325   :  { %5890 = vmatpush1.bf16.msra.mxu1 %v9460_v4  ;;  %5848 = vmatprep.subr.bf16.mxu0 %v9465_v56  ;;  %v9508_v18 = vld [vmem:[#allocation5 + $0x13c8] ss:$16 sps:$4 sm:$0xff]   ;;  %v9513_v4 = vld [vmem:[#allocation5 + $0x11ac] ss:$16 sps:$4 sm:$0xff]  }
 0x326   :  { %5891 = vmatprep.subr.bf16.mxu1 %v9468_v25  ;;  %v9516_v56 = vld [vmem:[#allocation5 + $0x13ac] ss:$16 sps:$4 sm:$0xff]   ;;  %v9511_v25 = vld [vmem:[#allocation5 + $0x11a8] ss:$16 sps:$4 sm:$0xff]  }
 0x328   :  { %5849 = vmatpush1.bf16.msra.mxu0 %v9463_v28  ;;  %v9514_v28 = vld [vmem:[#allocation5 + $0x13a8] ss:$16 sps:$4 sm:$0xff]  }
 0x329   :  { %5892 = vmatpush1.bf16.msra.mxu1 %v9466_v59  ;;  %5850 = vmatprep.subr.bf16.mxu0 %v9471_v14  ;;  %v9519_v59 = vld [vmem:[#allocation5 + $0x118c] ss:$16 sps:$4 sm:$0xff]  }
 0x32a   :  { %5893 = vmatprep.subr.bf16.mxu1 %v9474_v15  ;;  %v9522_v14 = vld [vmem:[#allocation5 + $0x138c] ss:$16 sps:$4 sm:$0xff]   ;;  %v9517_v15 = vld [vmem:[#allocation5 + $0x1188] ss:$16 sps:$4 sm:$0xff]  }
 0x32c   :  { %5851 = vmatpush1.bf16.msra.mxu0 %v9469_v16  ;;  %v9520_v16 = vld [vmem:[#allocation5 + $0x1388] ss:$16 sps:$4 sm:$0xff]  }
 0x32d   :  { %5894 = vmatpush1.bf16.msra.mxu1 %v9472_v38  ;;  %5852 = vmatprep.subr.bf16.mxu0 %v9477_v20  ;;  %v9525_v38 = vld [vmem:[#allocation5 + $0x116c] ss:$16 sps:$4 sm:$0xff]  }
 0x32e   :  { %5895 = vmatprep.subr.bf16.mxu1 %v9480_v21  ;;  %v9528_v20 = vld [vmem:[#allocation5 + $0x136c] ss:$16 sps:$4 sm:$0xff]   ;;  %v9523_v21 = vld [vmem:[#allocation5 + $0x1168] ss:$16 sps:$4 sm:$0xff]  }
 0x330   :  { %5853 = vmatpush1.bf16.msra.mxu0 %v9475_v23  ;;  %v9526_v23 = vld [vmem:[#allocation5 + $0x1368] ss:$16 sps:$4 sm:$0xff]  }
 0x331   :  { %5896 = vmatpush1.bf16.msra.mxu1 %v9478_v44  ;;  %5854 = vmatprep.subr.bf16.mxu0 %v9483_v31  ;;  %v9531_v44 = vld [vmem:[#allocation5 + $0x114c] ss:$16 sps:$4 sm:$0xff]  }
 0x332   :  { %5897 = vmatprep.subr.bf16.mxu1 %v9486_v42  ;;  %v9534_v31 = vld [vmem:[#allocation5 + $0x134c] ss:$16 sps:$4 sm:$0xff]   ;;  %v9529_v42 = vld [vmem:[#allocation5 + $0x1148] ss:$16 sps:$4 sm:$0xff]  }
 0x334   :  { %5855 = vmatpush1.bf16.msra.mxu0 %v9481_v45  ;;  %v9532_v45 = vld [vmem:[#allocation5 + $0x1348] ss:$16 sps:$4 sm:$0xff]  }
 0x335   :  { %5898 = vmatpush1.bf16.msra.mxu1 %v9484_v33  ;;  %5856 = vmatprep.subr.bf16.mxu0 %v9489_v35  ;;  %v9537_v33 = vld [vmem:[#allocation5 + $0x112c] ss:$16 sps:$4 sm:$0xff]  }
 0x336   :  { %5899 = vmatprep.subr.bf16.mxu1 %v9492_v2  ;;  %v9540_v35 = vld [vmem:[#allocation5 + $0x132c] ss:$16 sps:$4 sm:$0xff]   ;;  %v9535_v2 = vld [vmem:[#allocation5 + $0x1128] ss:$16 sps:$4 sm:$0xff]  }
 0x338   :  { %5857 = vmatpush1.bf16.msra.mxu0 %v9487_v30  ;;  %v9538_v30 = vld [vmem:[#allocation5 + $0x1328] ss:$16 sps:$4 sm:$0xff]  }
 0x339   :  { %5900 = vmatpush1.bf16.msra.mxu1 %v9490_v36  ;;  %5858 = vmatprep.subr.bf16.mxu0 %v9495_v8  ;;  %v9543_v36 = vld [vmem:[#allocation5 + $0x110c] ss:$16 sps:$4 sm:$0xff]  }
 0x33a   :  { %5901 = vmatprep.subr.bf16.mxu1 %v9498_v9  ;;  %v9546_v8 = vld [vmem:[#allocation5 + $0x130c] ss:$16 sps:$4 sm:$0xff]   ;;  %v9541_v9 = vld [vmem:[#allocation5 + $0x1108] ss:$16 sps:$4 sm:$0xff]  }
 0x33c   :  { %5859 = vmatpush1.bf16.msra.mxu0 %v9493_v6  ;;  %v9544_v6 = vld [vmem:[#allocation5 + $0x1308] ss:$16 sps:$4 sm:$0xff]  }
 0x33d   :  { %5902 = vmatpush1.bf16.msra.mxu1 %v9496_v48  ;;  %5860 = vmatprep.subr.bf16.mxu0 %v9501_v49  ;;  %v9549_v48 = vld [vmem:[#allocation5 + $0x14ec] ss:$16 sps:$4 sm:$0xff]  }
 0x33e   :  { %5903 = vmatprep.subr.bf16.mxu1 %v9504_v32  ;;  %v9552_v49 = vld [vmem:[#allocation5 + $0x16ec] ss:$16 sps:$4 sm:$0xff]   ;;  %v9547_v32 = vld [vmem:[#allocation5 + $0x14e8] ss:$16 sps:$4 sm:$0xff]  }
 0x340   :  { %5861 = vmatpush2.bf16.msra.mxu0 %v9499_v3  ;;  %v9550_v3 = vld [vmem:[#allocation5 + $0x16e8] ss:$16 sps:$4 sm:$0xff]  }
 0x341   :  { %5904 = vmatpush2.bf16.msra.mxu1 %v9502_v7  ;;  %5862 = vmatprep.subr.bf16.mxu0 %v9507_v41  ;;  %v9555_v7 = vld [vmem:[#allocation5 + $0x14cc] ss:$16 sps:$4 sm:$0xff]  }
 0x342   :  { %5905 = vmatprep.subr.bf16.mxu1 %v9510_v43  ;;  %v9558_v41 = vld [vmem:[#allocation5 + $0x16cc] ss:$16 sps:$4 sm:$0xff]   ;;  %v9553_v43 = vld [vmem:[#allocation5 + $0x14c8] ss:$16 sps:$4 sm:$0xff]  }
 0x344   :  { %5863 = vmatpush2.bf16.msra.mxu0 %v9505_v13  ;;  %v9556_v13 = vld [vmem:[#allocation5 + $0x16c8] ss:$16 sps:$4 sm:$0xff]  }
 0x345   :  { %5906 = vmatpush2.bf16.msra.mxu1 %v9508_v18  ;;  %5864 = vmatprep.subr.bf16.mxu0 %v9513_v4  ;;  %v9561_v18 = vld [vmem:[#allocation5 + $0x14ac] ss:$16 sps:$4 sm:$0xff]  }
 0x346   :  { %5907 = vmatprep.subr.bf16.mxu1 %v9516_v56  ;;  %v9564_v4 = vld [vmem:[#allocation5 + $0x16ac] ss:$16 sps:$4 sm:$0xff]   ;;  %v9559_v56 = vld [vmem:[#allocation5 + $0x14a8] ss:$16 sps:$4 sm:$0xff]  }
 0x348   :  { %5865 = vmatpush2.bf16.msra.mxu0 %v9511_v25  ;;  %v9562_v25 = vld [vmem:[#allocation5 + $0x16a8] ss:$16 sps:$4 sm:$0xff]  }
 0x349   :  { %5908 = vmatpush2.bf16.msra.mxu1 %v9514_v28  ;;  %5866 = vmatprep.subr.bf16.mxu0 %v9519_v59  ;;  %v9565_v28 = vld [vmem:[#allocation5 + $0x1488] ss:$16 sps:$4 sm:$0xff]  }
 0x34a   :  { %5909 = vmatprep.subr.bf16.mxu1 %v9522_v14  ;;  %v9568_v59 = vld [vmem:[#allocation5 + $0x1688] ss:$16 sps:$4 sm:$0xff]   ;;  %v9573_v14 = vld [vmem:[#allocation5 + $0x146c] ss:$16 sps:$4 sm:$0xff]  }
 0x34c   :  { %5867 = vmatpush2.bf16.msra.mxu0 %v9517_v15  ;;  %v9576_v15 = vld [vmem:[#allocation5 + $0x166c] ss:$16 sps:$4 sm:$0xff]  }
 0x34d   :  { %5910 = vmatpush2.bf16.msra.mxu1 %v9520_v16  ;;  %5868 = vmatprep.subr.bf16.mxu0 %v9525_v38  ;;  %v9579_v16 = vld [vmem:[#allocation5 + $0x144c] ss:$16 sps:$4 sm:$0xff]  }
 0x34e   :  { %5911 = vmatprep.subr.bf16.mxu1 %v9528_v20  ;;  %v9582_v38 = vld [vmem:[#allocation5 + $0x164c] ss:$16 sps:$4 sm:$0xff]   ;;  %v10596_v20 = vsub.s32 1, %v10425_v63 }
 0x350   :  { %5869 = vmatpush2.bf16.msra.mxu0 %v9523_v21  ;;  %v9577_v21 = vld [vmem:[#allocation5 + $0x1448] ss:$16 sps:$4 sm:$0xff]  }
 0x351   :  { %5912 = vmatpush2.bf16.msra.mxu1 %v9526_v23  ;;  %5870 = vmatprep.subr.bf16.mxu0 %v9531_v44  ;;  %v9580_v23 = vld [vmem:[#allocation5 + $0x1648] ss:$16 sps:$4 sm:$0xff]   ;;  %v9585_v44 = vld [vmem:[#allocation5 + $0x142c] ss:$16 sps:$4 sm:$0xff]  }
 0x352   :  { %5913 = vmatprep.subr.bf16.mxu1 %v9534_v31  ;;  %v9588_v31 = vld [vmem:[#allocation5 + $0x162c] ss:$16 sps:$4 sm:$0xff]  }
 0x354   :  { %5871 = vmatpush2.bf16.msra.mxu0 %v9529_v42  ;;  %v10598_v42 = vld [vmem:[#allocation7] sm:$0xf] }
 0x355   :  { %5914 = vmatpush2.bf16.msra.mxu1 %v9532_v45  ;;  %5872 = vmatprep.subr.bf16.mxu0 %v9537_v33  ;;  %v1011_v45 = vrot.slane %v10598_v42, %v10596_v20 }
 0x356   :  { %5915 = vmatprep.subr.bf16.mxu1 %v9540_v35  ;;  %v9583_v35 = vld [vmem:[#allocation5 + $0x1428] ss:$16 sps:$4 sm:$0xff]  }
 0x357   :  { %v5025_v33 = vadd.f32 %v10483_v50, %v1011_v45  ;;  %v9600_v50 = vld [vmem:[#allocation5 + $0x17ec] ss:$16 sps:$4 sm:$0xff]  }
 0x358   :  { %5873 = vmatpush2.bf16.msra.mxu0 %v9535_v2  ;;  %v9586_v2 = vld [vmem:[#allocation5 + $0x1628] ss:$16 sps:$4 sm:$0xff]  }
 0x359   :  { %5916 = vmatpush2.bf16.msra.mxu1 %v9538_v30  ;;  %5874 = vmatprep.subr.bf16.mxu0 %v9543_v36  ;;  %v9591_v30 = vld [vmem:[#allocation5 + $0x140c] ss:$16 sps:$4 sm:$0xff]  }
 0x35a   :  { %5917 = vmatprep.subr.bf16.mxu1 %v9546_v8  ;;  %v9594_v36 = vld [vmem:[#allocation5 + $0x160c] ss:$16 sps:$4 sm:$0xff]   ;;  %v5021_v8 = vadd.f32 %v10457_v26, %v1011_v45  ;;  %v9598_v26 = vld [vmem:[#allocation5 + $0x17e8] ss:$16 sps:$4 sm:$0xff]  }
 0x35b   :  { %v9628_v45 = vld [vmem:[#allocation5 + $0x1748] ss:$16 sps:$4 sm:$0xff]  }
 0x35c   :  { %5875 = vmatpush2.bf16.msra.mxu0 %v9541_v9  ;;  %v5068_v9 = vadd.f32 %v10485_v24, %v5025_v33  ;;  %v9603_v24 = vld [vmem:[#allocation5 + $0x15cc] ss:$16 sps:$4 sm:$0xff]  }
 0x35d   :  { %5918 = vmatpush2.bf16.msra.mxu1 %v9544_v6  ;;  %5930 = vmatprep.subr.bf16.mxu0 %v9549_v48  ;;  %v9589_v6 = vld [vmem:[#allocation5 + $0x1408] ss:$16 sps:$4 sm:$0xff]  }
 0x35e   :  { %5973 = vmatprep.subr.bf16.mxu1 %v9552_v49  ;;  %v9592_v48 = vld [vmem:[#allocation5 + $0x1608] ss:$16 sps:$4 sm:$0xff]   ;;  %v9597_v49 = vld [vmem:[#allocation5 + $0x15ec] ss:$16 sps:$4 sm:$0xff]  }
 0x35f   :  { %5877 = vmatmul.mubr.bf16.vlgmr.msra.gmra.mxu0 %v10477_v46  ;;  %v9567_v46 = vld [vmem:[#allocation5 + $0x148c] ss:$16 sps:$4 sm:$0xff]  }
 0x360   :  { %5920 = vmatmul.mubr.bf16.vlgmr.msra.gmra.mxu1 %v10481_v47  ;;  %5931 = vmatpush1.bf16.msra.mxu0 %v9547_v32  ;;  %v9570_v47 = vld [vmem:[#allocation5 + $0x168c] ss:$16 sps:$4 sm:$0xff]   ;;  %v5064_v32 = vadd.f32 %v10459_v27, %v5021_v8  ;;  %v9601_v27 = vld [vmem:[#allocation5 + $0x15c8] ss:$16 sps:$4 sm:$0xff]  }
 0x361   :  { %5974 = vmatpush1.bf16.msra.mxu1 %v9550_v3  ;;  %5932 = vmatprep.subr.bf16.mxu0 %v9555_v7  ;;  %v5111_v3 = vadd.f32 %v10517_v60, %v5068_v9  ;;  %v9604_v60 = vld [vmem:[#allocation5 + $0x17c8] ss:$16 sps:$4 sm:$0xff]   ;;  %v9642_v8 = vld [vmem:[#allocation5 + $0x170c] ss:$16 sps:$4 sm:$0xff]  }
 0x362   :  { %5975 = vmatprep.subr.bf16.mxu1 %v9558_v41  ;;  %5962 = vmatprep.mubr.bf16.mxu0 %v10489_v10  ;;  %v9571_v10 = vld [vmem:[#allocation5 + $0x1468] ss:$16 sps:$4 sm:$0xff]   ;;  %v5107_v7 = vadd.f32 %v10498_v39, %v5064_v32  ;;  %v9609_v39 = vld [vmem:[#allocation5 + $0x15ac] ss:$16 sps:$4 sm:$0xff]  }
 0x363   :  { %6005 = vmatprep.mubr.bf16.mxu1 %v10493_v12  ;;  %v9574_v12 = vld [vmem:[#allocation5 + $0x1668] ss:$16 sps:$4 sm:$0xff]   ;;  %v9643_v32 = vld [vmem:[#allocation8 + $0x70] ss:$8 sps:$4 sm:$0xff]  }
 0x364   :  { %5933 = vmatpush1.bf16.msra.mxu0 %v9553_v43  ;;  %v9595_v41 = vld [vmem:[#allocation5 + $0x15e8] ss:$16 sps:$4 sm:$0xff]   ;;  %v9606_v43 = vld [vmem:[#allocation5 + $0x17cc] ss:$16 sps:$4 sm:$0xff]  }
 0x365   :  { %5976 = vmatpush1.bf16.msra.mxu1 %v9556_v13  ;;  %5934 = vmatprep.subr.bf16.mxu0 %v9561_v18  ;;  %v5154_v13 = vadd.f32 %v10519_v61, %v5111_v3  ;;  %v5150_v18 = vadd.f32 %v10500_v40, %v5107_v7  ;;  %v9610_v61 = vld [vmem:[#allocation5 + $0x17a8] ss:$16 sps:$4 sm:$0xff]   ;;  %v9615_v40 = vld [vmem:[#allocation5 + $0x158c] ss:$16 sps:$4 sm:$0xff]  }
 0x366   :  { %5977 = vmatprep.subr.bf16.mxu1 %v9564_v4  ;;  %v9648_v3 = vld [vmem:[#allocation8 + $0x64] ss:$8 sps:$4 sm:$0xff]  }
 0x367   :  { %v5197_v4 = vadd.f32 %v10535_v34, %v5154_v13  ;;  %v9618_v34 = vld [vmem:[#allocation5 + $0x178c] ss:$16 sps:$4 sm:$0xff]  }
 0x368   :  { %5935 = vmatpush1.bf16.msra.mxu0 %v9559_v56  ;;  %v9612_v56 = vld [vmem:[#allocation5 + $0x17ac] ss:$16 sps:$4 sm:$0xff]  }
 0x369   :  { %5978 = vmatpush1.bf16.msra.mxu1 %v9562_v25  ;;  %5936 = vmatprep.subr.bf16.mxu0 %v9567_v46  ;;  %v5193_v25 = vadd.f32 %v10524_v11, %v5150_v18  ;;  %v5240_v46 = vadd.f32 %v10537_v37, %v5197_v4  ;;  %v9616_v11 = vld [vmem:[#allocation5 + $0x1788] ss:$16 sps:$4 sm:$0xff]   ;;  %v9621_v37 = vld [vmem:[#allocation5 + $0x156c] ss:$16 sps:$4 sm:$0xff]  }
 0x36a   :  { %5979 = vmatprep.subr.bf16.mxu1 %v9570_v47  ;;  %v9607_v47 = vld [vmem:[#allocation5 + $0x15a8] ss:$16 sps:$4 sm:$0xff]   ;;  %v9691_v13 = vld [vmem:[#allocation8 + $0x170] ss:$8 sps:$4 sm:$0xff]  }
 0x36b   :  { %v9693_v18 = vld [vmem:[#allocation8 + $0x174] ss:$8 sps:$4 sm:$0xff]  }
 0x36c   :  { %5937 = vmatpush1.bf16.msra.mxu0 %v9565_v28  ;;  %v5236_v28 = vadd.f32 %v10526_v17, %v5193_v25  ;;  %v9619_v17 = vld [vmem:[#allocation5 + $0x1568] ss:$16 sps:$4 sm:$0xff]   ;;  %v9658_v25 = vld [vmem:[#allocation8 + $0x20] ss:$8 sps:$4 sm:$0xff]  }
 0x36d   :  { %5980 = vmatpush1.bf16.msra.mxu1 %v9568_v59  ;;  %5938 = vmatprep.subr.bf16.mxu0 %v9573_v14  ;;  %v5283_v59 = vadd.f32 %v10553_v52, %v5240_v46  ;;  %v9622_v52 = vld [vmem:[#allocation5 + $0x1768] ss:$16 sps:$4 sm:$0xff]  }
 0x36e   :  { %5981 = vmatprep.subr.bf16.mxu1 %v9576_v15  ;;  %v5279_v14 = vadd.f32 %v10542_v54, %v5236_v28  ;;  %v9613_v15 = vld [vmem:[#allocation5 + $0x1588] ss:$16 sps:$4 sm:$0xff]   ;;  %v9627_v54 = vld [vmem:[#allocation5 + $0x154c] ss:$16 sps:$4 sm:$0xff]  }
 0x36f   :  { %v9657_v4 = vld [vmem:[#allocation8 + $0x34] ss:$8 sps:$4 sm:$0xff]   ;;  %v9702_v46 = vld [vmem:[#allocation8 + $0x144] ss:$8 sps:$4 sm:$0xff]  }
 0x370   :  { %5939 = vmatpush1.bf16.msra.mxu0 %v9571_v10  ;;  %v9624_v10 = vld [vmem:[#allocation5 + $0x176c] ss:$16 sps:$4 sm:$0xff]   ;;  %v9666_v28 = vld [vmem:[#allocation8 + $0x4] ss:$8 sps:$4 sm:$0xff]  }
 0x371   :  { %5982 = vmatpush1.bf16.msra.mxu1 %v9574_v12  ;;  %5940 = vmatprep.subr.bf16.mxu0 %v9579_v16  ;;  %v5326_v12 = vadd.f32 %v10555_v1, %v5283_v59  ;;  %v5322_v16 = vadd.f32 %v10544_v29, %v5279_v14  ;;  %v9625_v1 = vld [vmem:[#allocation5 + $0x1548] ss:$16 sps:$4 sm:$0xff]   ;;  %v9633_v29 = vld [vmem:[#allocation5 + $0x152c] ss:$16 sps:$4 sm:$0xff]  }
 0x372   :  { %5983 = vmatprep.subr.bf16.mxu1 %v9582_v38  ;;  %v9703_v59 = vld [vmem:[#allocation8 + $0x130] ss:$8 sps:$4 sm:$0xff]   ;;  %v9664_v14 = vld [vmem:[#allocation8] ss:$8 sps:$4 sm:$0xff]  }
 0x373   :  { %v5369_v38 = vadd.f32 %v10571_v53, %v5326_v12  ;;  %v9636_v53 = vld [vmem:[#allocation5 + $0x172c] ss:$16 sps:$4 sm:$0xff]   ;;  %v9711_v12 = vld [vmem:[#allocation8 + $0x114] ss:$8 sps:$4 sm:$0xff]  }
 0x374   :  { %5941 = vmatpush1.bf16.msra.mxu0 %v9577_v21  ;;  %v9630_v21 = vld [vmem:[#allocation5 + $0x174c] ss:$16 sps:$4 sm:$0xff]  }
 0x375   :  { %5984 = vmatpush1.bf16.msra.mxu1 %v9580_v23  ;;  %5942 = vmatprep.subr.bf16.mxu0 %v9585_v44  ;;  %v5365_v23 = vadd.f32 %v10560_v19, %v5322_v16  ;;  %v5454_v44 = vpop.f32.mrf.mxu0  ;;  %v9634_v19 = vld [vmem:[#allocation5 + $0x1728] ss:$16 sps:$4 sm:$0xff]  }
 0x376   :  { %5985 = vmatprep.subr.bf16.mxu1 %v9588_v31  ;;  %v5412_v31 = vadd.f32 %v10573_v55, %v5369_v38  ;;  %v9639_v55 = vld [vmem:[#allocation5 + $0x150c] ss:$16 sps:$4 sm:$0xff]   ;;  %v9672_v16 = vld [vmem:[#allocation8 + $0xe4] ss:$8 sps:$4 sm:$0xff]  }
 0x377   :  { %v5408_v33 = vadd.f32 %v10562_v22, %v5365_v23  ;;  %v9645_v22 = vld [vmem:[#allocation8 + $0x74] ss:$8 sps:$4 sm:$0xff]   ;;  %v9709_v38 = vld [vmem:[#allocation8 + $0x110] ss:$8 sps:$4 sm:$0xff]  }
 0x378   :  { %5943 = vmatpush1.bf16.msra.mxu0 %v9583_v35  ;;  %v5455_v35 = vadd.f32 %v5454_v44, %v5412_v31  ;;  %v9673_v23 = vld [vmem:[#allocation8 + $0xd0] ss:$8 sps:$4 sm:$0xff]   ;;  %v9717_v44 = vld [vmem:[#allocation8 + $0x1f4] ss:$8 sps:$4 sm:$0xff]   ;;  %v9678_v31 = vld [vmem:[#allocation8 + $0xc4] ss:$8 sps:$4 sm:$0xff]  }
 0x379   :  { %5986 = vmatpush1.bf16.msra.mxu1 %v9586_v2  ;;  %5944 = vmatprep.subr.bf16.mxu0 %v9591_v30  ;;  %v5451_v2 = vadd.f32 %v10578_v62, %v5408_v33  ;;  %v9631_v30 = vld [vmem:[#allocation5 + $0x1528] ss:$16 sps:$4 sm:$0xff]   ;;  %v9718_v33 = vld [vmem:[#allocation8 + $0x1e0] ss:$8 sps:$4 sm:$0xff]  }
 0x37a   :  { %5987 = vmatprep.subr.bf16.mxu1 %v9594_v36  ;;  %v5497_v36 = vpop.f32.mrf.mxu1 }
 0x37b   :  { %v5498_v9 = vadd.f32 %v5497_v36, %v5455_v35  ;;  %v9679_v35 = vld [vmem:[#allocation8 + $0xb0] ss:$8 sps:$4 sm:$0xff]   ;;  %v9682_v36 = vld [vmem:[#allocation8 + $0xa0] ss:$8 sps:$4 sm:$0xff]  }
 0x37c   :  { %5945 = vmatpush1.bf16.msra.mxu0 %v9589_v6  ;;  %v5494_v6 = vadd.f32 %v10580_v0, %v5451_v2  ;;  %v9646_v0 = vld [vmem:[#allocation8 + $0x60] ss:$8 sps:$4 sm:$0xff]   ;;  %v9723_v2 = vld [vmem:[#allocation8 + $0x1d4] ss:$8 sps:$4 sm:$0xff]  }
 0x37d   :  { %5988 = vmatpush1.bf16.msra.mxu1 %v9592_v48  ;;  %5946 = vmatprep.subr.bf16.mxu0 %v9597_v49  ;;  %v9637_v48 = vld [vmem:[#allocation5 + $0x1508] ss:$16 sps:$4 sm:$0xff]   ;;  %v6021_v62 = vmax.f32 %v5498_v9, 0.0  ;;  %v9724_v9 = vld [vmem:[#allocation8 + $0x1c0] ss:$8 sps:$4 sm:$0xff]  }
 0x37e   :  { %5989 = vmatprep.subr.bf16.mxu1 %v9600_v50  ;;  %v9640_v49 = vld [vmem:[#allocation5 + $0x1708] ss:$16 sps:$4 sm:$0xff]   ;;  %v6017_v50 = vmax.f32 %v5494_v6, 0.0  ;;  %v9685_v6 = vld [vmem:[#allocation8 + $0x90] ss:$8 sps:$4 sm:$0xff]  }
 0x380   :  { %5947 = vmatpush2.bf16.msra.mxu0 %v9595_v41  ;;  %v6025_v7 = vpack.c.bf16 %v6021_v62, %v6017_v50  ;;  %v9651_v41 = vld [vmem:[#allocation8 + $0x54] ss:$8 sps:$4 sm:$0xff]   ;;  %v9727_v62 = vld [vmem:[#allocation8 + $0x1b0] ss:$8 sps:$4 sm:$0xff]   ;;  %v9732_v50 = vld [vmem:[#allocation8 + $0x1a4] ss:$8 sps:$4 sm:$0xff]  }
 0x381   :  { %5990 = vmatpush2.bf16.msra.mxu1 %v9598_v26  ;;  %5948 = vmatprep.subr.bf16.mxu0 %v9603_v24  ;;  %v9649_v26 = vld [vmem:[#allocation8 + $0x50] ss:$8 sps:$4 sm:$0xff]   ;;  %v9654_v24 = vld [vmem:[#allocation8 + $0x44] ss:$8 sps:$4 sm:$0xff]  }
 0x382   :  { %5991 = vmatprep.subr.bf16.mxu1 %v9606_v43  ;;  %v9652_v43 = vld [vmem:[#allocation8 + $0x40] ss:$8 sps:$4 sm:$0xff]  }
 0x384   :  { %5949 = vmatpush2.bf16.msra.mxu0 %v9601_v27  ;;  %v9696_v27 = vld [vmem:[#allocation8 + $0x164] ss:$8 sps:$4 sm:$0xff]  }
 0x385   :  { %5992 = vmatpush2.bf16.msra.mxu1 %v9604_v60  ;;  %5950 = vmatprep.subr.bf16.mxu0 %v9609_v39  ;;  %v9699_v60 = vld [vmem:[#allocation8 + $0x154] ss:$8 sps:$4 sm:$0xff]   ;;  %v9660_v39 = vld [vmem:[#allocation8 + $0x24] ss:$8 sps:$4 sm:$0xff]  }
 0x386   :  { %5993 = vmatprep.subr.bf16.mxu1 %v9612_v56  ;;  %v9697_v56 = vld [vmem:[#allocation8 + $0x150] ss:$8 sps:$4 sm:$0xff]  }
 0x388   :  { %5951 = vmatpush2.bf16.msra.mxu0 %v9607_v47  ;;  %v9663_v47 = vld [vmem:[#allocation8 + $0x14] ss:$8 sps:$4 sm:$0xff]  }
 0x389   :  { %5994 = vmatpush2.bf16.msra.mxu1 %v9610_v61  ;;  %5952 = vmatprep.subr.bf16.mxu0 %v9615_v40  ;;  %v9700_v61 = vld [vmem:[#allocation8 + $0x140] ss:$8 sps:$4 sm:$0xff]   ;;  %v9661_v40 = vld [vmem:[#allocation8 + $0x10] ss:$8 sps:$4 sm:$0xff]  }
 0x38a   :  { %5995 = vmatprep.subr.bf16.mxu1 %v9618_v34  ;;  %v9705_v34 = vld [vmem:[#allocation8 + $0x134] ss:$8 sps:$4 sm:$0xff]  }
 0x38c   :  { %5953 = vmatpush2.bf16.msra.mxu0 %v9613_v15  ;;  %v9708_v15 = vld [vmem:[#allocation8 + $0x124] ss:$8 sps:$4 sm:$0xff]  }
 0x38d   :  { %5996 = vmatpush2.bf16.msra.mxu1 %v9616_v11  ;;  %5954 = vmatprep.subr.bf16.mxu0 %v9621_v37  ;;  %v9669_v11 = vld [vmem:[#allocation8 + $0xf4] ss:$8 sps:$4 sm:$0xff]   ;;  %v9706_v37 = vld [vmem:[#allocation8 + $0x120] ss:$8 sps:$4 sm:$0xff]  }
 0x38e   :  { %5997 = vmatprep.subr.bf16.mxu1 %v9624_v10  ;;  %v9667_v10 = vld [vmem:[#allocation8 + $0xf0] ss:$8 sps:$4 sm:$0xff]  }
 0x390   :  { %5955 = vmatpush2.bf16.msra.mxu0 %v9619_v17  ;;  %v9670_v17 = vld [vmem:[#allocation8 + $0xe0] ss:$8 sps:$4 sm:$0xff]  }
 0x391   :  { %5998 = vmatpush2.bf16.msra.mxu1 %v9622_v52  ;;  %5956 = vmatprep.subr.bf16.mxu0 %v9627_v54  ;;  %v9714_v52 = vld [vmem:[#allocation8 + $0x104] ss:$8 sps:$4 sm:$0xff]   ;;  %v9675_v54 = vld [vmem:[#allocation8 + $0xd4] ss:$8 sps:$4 sm:$0xff]  }
 0x392   :  { %5999 = vmatprep.subr.bf16.mxu1 %v9630_v21  ;;  %v9712_v21 = vld [vmem:[#allocation8 + $0x100] ss:$8 sps:$4 sm:$0xff]  }
 0x394   :  { %5957 = vmatpush2.bf16.msra.mxu0 %v9625_v1  ;;  %v9715_v1 = vld [vmem:[#allocation8 + $0x1f0] ss:$8 sps:$4 sm:$0xff]  }
 0x395   :  { %6000 = vmatpush2.bf16.msra.mxu1 %v9628_v45  ;;  %5958 = vmatprep.subr.bf16.mxu0 %v9633_v29  ;;  %v9676_v45 = vld [vmem:[#allocation8 + $0xc0] ss:$8 sps:$4 sm:$0xff]   ;;  %v9720_v29 = vld [vmem:[#allocation8 + $0x1e4] ss:$8 sps:$4 sm:$0xff]  }
 0x396   :  { %6001 = vmatprep.subr.bf16.mxu1 %v9636_v53  ;;  %v9681_v53 = vld [vmem:[#allocation8 + $0xb4] ss:$8 sps:$4 sm:$0xff]  }
 0x398   :  { %5959 = vmatpush2.bf16.msra.mxu0 %v9631_v30  ;;  %v9684_v30 = vld [vmem:[#allocation8 + $0xa4] ss:$8 sps:$4 sm:$0xff]  }
 0x399   :  { %6002 = vmatpush2.bf16.msra.mxu1 %v9634_v19  ;;  %5960 = vmatprep.subr.bf16.mxu0 %v9639_v55  ;;  %v9721_v19 = vld [vmem:[#allocation8 + $0x1d0] ss:$8 sps:$4 sm:$0xff]   ;;  %v9726_v55 = vld [vmem:[#allocation8 + $0x1c4] ss:$8 sps:$4 sm:$0xff]  }
 0x39a   :  { %6003 = vmatprep.subr.bf16.mxu1 %v9642_v8  ;;  %v9687_v8 = vld [vmem:[#allocation8 + $0x94] ss:$8 sps:$4 sm:$0xff]  }
 0x39c   :  { %5961 = vmatpush2.bf16.msra.mxu0 %v9637_v48  ;;  %v9690_v48 = vld [vmem:[#allocation8 + $0x84] ss:$8 sps:$4 sm:$0xff]  }
 0x39d   :  { %6004 = vmatpush2.bf16.msra.mxu1 %v9640_v49  ;;  %6424 = vmatprep.subr.bf16.mxu0 %v9645_v22  ;;  %v9688_v49 = vld [vmem:[#allocation8 + $0x80] ss:$8 sps:$4 sm:$0xff]   ;;  %v9729_v22 = vld [vmem:[#allocation8 + $0x1b4] ss:$8 sps:$4 sm:$0xff]  }
 0x39e   :  { %6467 = vmatprep.subr.bf16.mxu1 %v9693_v18 }
 0x39f   :  { %5963 = vmatmul.mubr.bf16.vlgmr.msra.gmra.mxu0 %v10511_v57  ;;  %v9694_v57 = vld [vmem:[#allocation8 + $0x160] ss:$8 sps:$4 sm:$0xff]  }
 0x3a0   :  { %6006 = vmatmul.mubr.bf16.vlgmr.msra.gmra.mxu1 %v10515_v58  ;;  %6425 = vmatpush1.bf16.msra.mxu0 %v9643_v32  ;;  %v9655_v58 = vld [vmem:[#allocation8 + $0x30] ss:$8 sps:$4 sm:$0xff]   ;;  %v9730_v32 = vld [vmem:[#allocation8 + $0x1a0] ss:$8 sps:$4 sm:$0xff]  }
 0x3a1   :  { %6456 = vmatprep.mubr.bf16.mxu0 %v6025_v7  ;;  %6426 = vmatprep.subr.bf16.mxu0 %v9648_v3  ;;  %v9735_v3 = vld [vmem:[#allocation8 + $0x194] ss:$8 sps:$4 sm:$0xff]   ;;  %v9733_v7 = vld [vmem:[#allocation8 + $0x190] ss:$8 sps:$4 sm:$0xff]  }
 0x3a2   :  { %6468 = vmatpush1.bf16.msra.mxu1 %v9691_v13 }
 0x3a3   :  { %6469 = vmatprep.subr.bf16.mxu1 %v9696_v27 }
 0x3a4   :  { %6427 = vmatpush1.bf16.msra.mxu0 %v9646_v0  ;;  %v9738_v0 = vld [vmem:[#allocation8 + $0x184] ss:$8 sps:$4 sm:$0xff]  }
 0x3a5   :  { %6428 = vmatprep.subr.bf16.mxu0 %v9651_v41  ;;  %v9736_v41 = vld [vmem:[#allocation8 + $0x180] ss:$8 sps:$4 sm:$0xff]  }
 0x3a6   :  { %6470 = vmatpush1.bf16.msra.mxu1 %v9694_v57  ;;  %v9739_v57 = vld [vmem:[#allocation11 + $0x70] ss:$8 sps:$4 sm:$0xff]  }
 0x3a7   :  { %6471 = vmatprep.subr.bf16.mxu1 %v9699_v60 }
 0x3a8   :  { %6429 = vmatpush1.bf16.msra.mxu0 %v9649_v26  ;;  %v10627_v26 = vpop.f32.mrf.mxu0 }
 0x3a9   :  { %6430 = vmatprep.subr.bf16.mxu0 %v9654_v24  ;;  %v10629_v24 = vpop.f32.mrf.mxu1 }
 0x3aa   :  { %6472 = vmatpush1.bf16.msra.mxu1 %v9697_v56  ;;  %v9744_v56 = vld [vmem:[#allocation11 + $0x64] ss:$8 sps:$4 sm:$0xff]  }
 0x3ab   :  { %6473 = vmatprep.subr.bf16.mxu1 %v9702_v46  ;;  %v9747_v46 = vld [vmem:[#allocation11 + $0x54] ss:$8 sps:$4 sm:$0xff]  }
 0x3ac   :  { %6431 = vmatpush1.bf16.msra.mxu0 %v9652_v43  ;;  %v5536_v43 = vpop.f32.mrf.mxu0 }
 0x3ad   :  { %6432 = vmatprep.subr.bf16.mxu0 %v9657_v4 }
 0x3ae   :  { %6474 = vmatpush1.bf16.msra.mxu1 %v9700_v61  ;;  %v5538_v13 = vpop.f32.mrf.mxu0 }
 0x3af   :  { %6475 = vmatprep.subr.bf16.mxu1 %v9705_v34  ;;  %v9750_v34 = vld [vmem:[#allocation11 + $0x44] ss:$8 sps:$4 sm:$0xff]  }
 0x3b0   :  { %6433 = vmatpush1.bf16.msra.mxu0 %v9655_v58  ;;  %v10635_v4 = vpop.f32.mrf.mxu0  ;;  %v9741_v58 = vld [vmem:[#allocation11 + $0x74] ss:$8 sps:$4 sm:$0xff]  }
 0x3b1   :  { %6434 = vmatprep.subr.bf16.mxu0 %v9660_v39 }
 0x3b2   :  { %6476 = vmatpush1.bf16.msra.mxu1 %v9703_v59  ;;  %v10639_v60 = vpop.f32.mrf.mxu0 }
 0x3b3   :  { %6477 = vmatprep.subr.bf16.mxu1 %v9708_v15  ;;  %v9753_v15 = vld [vmem:[#allocation11 + $0x34] ss:$8 sps:$4 sm:$0xff]  }
 0x3b4   :  { %6435 = vmatpush1.bf16.msra.mxu0 %v9658_v25  ;;  %v9742_v25 = vld [vmem:[#allocation11 + $0x60] ss:$8 sps:$4 sm:$0xff]  }
 0x3b5   :  { %6436 = vmatprep.subr.bf16.mxu0 %v9663_v47  ;;  %v5622_v47 = vpop.f32.mrf.mxu0 }
 0x3b6   :  { %6478 = vmatpush1.bf16.msra.mxu1 %v9706_v37 }
 0x3b7   :  { %6479 = vmatprep.subr.bf16.mxu1 %v9711_v12 }
 0x3b8   :  { %6437 = vmatpush1.bf16.msra.mxu0 %v9661_v40  ;;  %v9745_v40 = vld [vmem:[#allocation11 + $0x50] ss:$8 sps:$4 sm:$0xff]  }
 0x3b9   :  { %6438 = vmatprep.subr.bf16.mxu0 %v9666_v28  ;;  %v5624_v28 = vpop.f32.mrf.mxu0 }
 0x3ba   :  { %6480 = vmatpush1.bf16.msra.mxu1 %v9709_v38  ;;  %v9756_v38 = vld [vmem:[#allocation11 + $0x24] ss:$8 sps:$4 sm:$0xff]  }
 0x3bb   :  { %6481 = vmatprep.subr.bf16.mxu1 %v9714_v52 }
 0x3bc   :  { %6439 = vmatpush1.bf16.msra.mxu0 %v9664_v14  ;;  %v9748_v14 = vld [vmem:[#allocation11 + $0x40] ss:$8 sps:$4 sm:$0xff]  }
 0x3bd   :  { %6440 = vmatprep.subr.bf16.mxu0 %v9669_v11  ;;  %v5626_v11 = vpop.f32.mrf.mxu0 }
 0x3be   :  { %6482 = vmatpush1.bf16.msra.mxu1 %v9712_v21  ;;  %v9759_v21 = vld [vmem:[#allocation11 + $0x14] ss:$8 sps:$4 sm:$0xff]  }
 0x3bf   :  { %6483 = vmatprep.subr.bf16.mxu1 %v9717_v44  ;;  %v1014_v44 = vsub.s32 2, %v10425_v63 }
 0x3c0   :  { %6441 = vmatpush2.bf16.msra.mxu0 %v9667_v10  ;;  %v10649_v10 = vpop.f32.mrf.mxu0 }
 0x3c1   :  { %6442 = vmatprep.subr.bf16.mxu0 %v9672_v16  ;;  %v9751_v16 = vld [vmem:[#allocation11 + $0x30] ss:$8 sps:$4 sm:$0xff]  }
 0x3c2   :  { %6484 = vmatpush2.bf16.msra.mxu1 %v9715_v1 }
 0x3c3   :  { %6485 = vmatprep.subr.bf16.mxu1 %v9720_v29  ;;  %v9762_v29 = vld [vmem:[#allocation11 + $0x4] ss:$8 sps:$4 sm:$0xff]  }
 0x3c4   :  { %6443 = vmatpush2.bf16.msra.mxu0 %v9670_v17  ;;  %v5708_v17 = vpop.f32.mrf.mxu0 }
 0x3c5   :  { %6444 = vmatprep.subr.bf16.mxu0 %v9675_v54  ;;  %v9754_v54 = vld [vmem:[#allocation11 + $0x20] ss:$8 sps:$4 sm:$0xff]  }
 0x3c6   :  { %6486 = vmatpush2.bf16.msra.mxu1 %v9718_v33  ;;  %v1015_v33 = vrot.slane %v10598_v42, %v1014_v44 }
 0x3c7   :  { %6487 = vmatprep.subr.bf16.mxu1 %v9723_v2 }
 0x3c8   :  { %6445 = vmatpush2.bf16.msra.mxu0 %v9673_v23  ;;  %v1018_v23 = vsub.s32 3, %v10425_v63 }
 0x3c9   :  { %6446 = vmatprep.subr.bf16.mxu0 %v9678_v31  ;;  %v5710_v31 = vpop.f32.mrf.mxu0 }
 0x3ca   :  { %6488 = vmatpush2.bf16.msra.mxu1 %v9721_v19  ;;  %v9765_v19 = vld [vmem:[#allocation11 + $0xf4] ss:$8 sps:$4 sm:$0xff]  }
 0x3cb   :  { %6489 = vmatprep.subr.bf16.mxu1 %v9726_v55 }
 0x3cc   :  { %6447 = vmatpush2.bf16.msra.mxu0 %v9676_v45  ;;  %v9757_v45 = vld [vmem:[#allocation11 + $0x10] ss:$8 sps:$4 sm:$0xff]  }
 0x3cd   :  { %6448 = vmatprep.subr.bf16.mxu0 %v9681_v53  ;;  %v1019_v53 = vrot.slane %v10598_v42, %v1018_v23 }
 0x3ce   :  { %6490 = vmatpush2.bf16.msra.mxu1 %v9724_v9  ;;  %v9763_v9 = vld [vmem:[#allocation11 + $0xf0] ss:$8 sps:$4 sm:$0xff]  }
 0x3cf   :  { %6491 = vmatprep.subr.bf16.mxu1 %v9729_v22  ;;  %v5537_v63 = vadd.f32 %v5536_v43, %v1019_v53 }
 0x3d0   :  { %6449 = vmatpush2.bf16.msra.mxu0 %v9679_v35  ;;  %v5712_v35 = vpop.f32.mrf.mxu0 }
 0x3d1   :  { %6450 = vmatprep.subr.bf16.mxu0 %v9684_v30  ;;  %v9760_v30 = vld [vmem:[#allocation11] ss:$8 sps:$4 sm:$0xff]  }
 0x3d2   :  { %6492 = vmatpush2.bf16.msra.mxu1 %v9727_v62  ;;  %v5541_v62 = vadd.f32 %v10635_v4, %v1019_v53 }
 0x3d3   :  { %6493 = vmatprep.subr.bf16.mxu1 %v9732_v50 }
 0x3d4   :  { %6451 = vmatpush2.bf16.msra.mxu0 %v9682_v36 }
 0x3d5   :  { %6452 = vmatprep.subr.bf16.mxu0 %v9687_v8  ;;  %v5535_v8 = vadd.f32 %v10627_v26, %v1015_v33 }
 0x3d6   :  { %6494 = vmatpush2.bf16.msra.mxu1 %v9730_v32  ;;  %v9766_v32 = vld [vmem:[#allocation11 + $0xe0] ss:$8 sps:$4 sm:$0xff]  }
 0x3d7   :  { %6495 = vmatprep.subr.bf16.mxu1 %v9735_v3  ;;  %v5578_v50 = vadd.f32 %v10629_v24, %v5535_v8  ;;  %v9774_v24 = vld [vmem:[#allocation11 + $0xc4] ss:$8 sps:$4 sm:$0xff]  }
 0x3d8   :  { %6453 = vmatpush2.bf16.msra.mxu0 %v9685_v6  ;;  %v5539_v6 = vadd.f32 %v5538_v13, %v1015_v33 }
 0x3d9   :  { %6454 = vmatprep.subr.bf16.mxu0 %v9690_v48  ;;  %v9768_v48 = vld [vmem:[#allocation11 + $0xe4] ss:$8 sps:$4 sm:$0xff]  }
 0x3da   :  { %6496 = vmatpush2.bf16.msra.mxu1 %v9733_v7 }
 0x3db   :  { %6497 = vmatprep.subr.bf16.mxu1 %v9738_v0  ;;  %v9771_v0 = vld [vmem:[#allocation11 + $0xd4] ss:$8 sps:$4 sm:$0xff]  }
 0x3dc   :  { %6455 = vmatpush2.bf16.msra.mxu0 %v9688_v49 }
 0x3dd   :  { %6720 = vmatprep.subr.bf16.mxu0 %v9741_v58 }
 0x3de   :  { %6498 = vmatpush2.bf16.msra.mxu1 %v9736_v41  ;;  %v5621_v41 = vadd.f32 %v10639_v60, %v5578_v50 }
 0x3df   :  { %6457 = vmatmul.mubr.bf16.vlgmr.msra.gmra.mxu0 %v10585_v51  ;;  %v10631_v51 = vpop.f32.mrf.mxu1  ;;  %v5792_v36 = vpop.f32.mrf.mxu0 }
 0x3e0   :  { %6721 = vmatpush1.bf16.msra.mxu0 %v9739_v57  ;;  %v5580_v42 = vadd.f32 %v10631_v51, %v5537_v63  ;;  %v9769_v51 = vld [vmem:[#allocation11 + $0xd0] ss:$8 sps:$4 sm:$0xff]  }
 0x3e1   :  { %v10633_v18 = vpop.f32.mrf.mxu1  ;;  %6722 = vmatprep.subr.bf16.mxu0 %v9744_v56  ;;  %v5794_v49 = vpop.f32.mrf.mxu0 }
 0x3e2   :  { %v5582_v3 = vadd.f32 %v10633_v18, %v5539_v6  ;;  %v5623_v7 = vadd.f32 %v5622_v47, %v5580_v42 }
 0x3e3   :  { %v10637_v27 = vpop.f32.mrf.mxu1  ;;  %v5796_v26 = vpop.f32.mrf.mxu0 }
 0x3e4   :  { %6723 = vmatpush1.bf16.msra.mxu0 %v9742_v25  ;;  %v5584_v13 = vadd.f32 %v10637_v27, %v5541_v62  ;;  %v5625_v57 = vadd.f32 %v5624_v28, %v5582_v3  ;;  %v9772_v27 = vld [vmem:[#allocation11 + $0xc0] ss:$8 sps:$4 sm:$0xff]  }
 0x3e5   :  { %v10641_v39 = vpop.f32.mrf.mxu1  ;;  %6724 = vmatprep.subr.bf16.mxu0 %v9747_v46  ;;  %v5798_v18 = vpop.f32.mrf.mxu0 }
 0x3e6   :  { %v5627_v58 = vadd.f32 %v5626_v11, %v5584_v13  ;;  %v5664_v56 = vadd.f32 %v10641_v39, %v5621_v41 }
 0x3e7   :  { %v10643_v61 = vpop.f32.mrf.mxu1 }
 0x3e8   :  { %6725 = vmatpush1.bf16.msra.mxu0 %v9745_v40  ;;  %v5666_v4 = vadd.f32 %v10643_v61, %v5623_v7  ;;  %v5707_v60 = vadd.f32 %v10649_v10, %v5664_v56  ;;  %v9777_v61 = vld [vmem:[#allocation11 + $0xb4] ss:$8 sps:$4 sm:$0xff]   ;;  %v9780_v56 = vld [vmem:[#allocation11 + $0xa4] ss:$8 sps:$4 sm:$0xff]  }
 0x3e9   :  { %v10645_v59 = vpop.f32.mrf.mxu1  ;;  %6726 = vmatprep.subr.bf16.mxu0 %v9750_v34 }
 0x3ea   :  { %v5668_v46 = vadd.f32 %v10645_v59, %v5625_v57  ;;  %v5709_v47 = vadd.f32 %v5708_v17, %v5666_v4  ;;  %v9775_v59 = vld [vmem:[#allocation11 + $0xb0] ss:$8 sps:$4 sm:$0xff]  }
 0x3eb   :  { %v10647_v37 = vpop.f32.mrf.mxu1 }
 0x3ec   :  { %6727 = vmatpush1.bf16.msra.mxu0 %v9748_v14  ;;  %v5670_v28 = vadd.f32 %v10647_v37, %v5627_v58  ;;  %v5711_v14 = vadd.f32 %v5710_v31, %v5668_v46  ;;  %v9781_v46 = vld [vmem:[#allocation11 + $0x90] ss:$8 sps:$4 sm:$0xff]  }
 0x3ed   :  { %v10651_v12 = vpop.f32.mrf.mxu1  ;;  %6728 = vmatprep.subr.bf16.mxu0 %v9753_v15 }
 0x3ee   :  { %v5713_v11 = vadd.f32 %v5712_v35, %v5670_v28  ;;  %v5750_v39 = vadd.f32 %v10651_v12, %v5707_v60  ;;  %v9784_v60 = vld [vmem:[#allocation11 + $0x80] ss:$8 sps:$4 sm:$0xff]  }
 0x3ef   :  { %v10653_v52 = vpop.f32.mrf.mxu1  ;;  %v9790_v28 = vld [vmem:[#allocation14 + $0x60] ss:$8 sps:$4 sm:$0xff]  }
 0x3f0   :  { %6729 = vmatpush1.bf16.msra.mxu0 %v9751_v16  ;;  %v5752_v15 = vadd.f32 %v10653_v52, %v5709_v47  ;;  %v9786_v47 = vld [vmem:[#allocation11 + $0x84] ss:$8 sps:$4 sm:$0xff]  }
 0x3f1   :  { %6730 = vmatprep.subr.bf16.mxu0 %v9756_v38  ;;  %v10657_v1 = vpop.f32.mrf.mxu1 }
 0x3f2   :  { %v5754_v10 = vadd.f32 %v10657_v1, %v5711_v14  ;;  %v5795_v17 = vadd.f32 %v5794_v49, %v5752_v15  ;;  %v9795_v14 = vld [vmem:[#allocation14 + $0x54] ss:$8 sps:$4 sm:$0xff]   ;;  %v9798_v15 = vld [vmem:[#allocation14 + $0x44] ss:$8 sps:$4 sm:$0xff]  }
 0x3f3   :  { %v5755_v2 = vpop.f32.mrf.mxu1 }
 0x3f4   :  { %6731 = vmatpush1.bf16.msra.mxu0 %v9754_v54  ;;  %v5793_v54 = vadd.f32 %v5792_v36, %v5750_v39  ;;  %v5797_v23 = vadd.f32 %v5796_v26, %v5754_v10  ;;  %v9801_v39 = vld [vmem:[#allocation14 + $0x34] ss:$8 sps:$4 sm:$0xff]  }
 0x3f5   :  { %6732 = vmatprep.subr.bf16.mxu0 %v9759_v21  ;;  %v5835_v55 = vpop.f32.mrf.mxu1  ;;  %v5756_v21 = vadd.f32 %v5755_v2, %v5713_v11  ;;  %v9796_v11 = vld [vmem:[#allocation14 + $0x40] ss:$8 sps:$4 sm:$0xff]   ;;  %v9807_v10 = vld [vmem:[#allocation14 + $0x14] ss:$8 sps:$4 sm:$0xff]  }
 0x3f6   :  { %v5836_v52 = vadd.f32 %v5835_v55, %v5793_v54  ;;  %v9810_v54 = vld [vmem:[#allocation14 + $0x4] ss:$8 sps:$4 sm:$0xff]  }
 0x3f7   :  { %v5837_v22 = vpop.f32.mrf.mxu1 }
 0x3f8   :  { %6733 = vmatpush1.bf16.msra.mxu0 %v9757_v45  ;;  %v5838_v31 = vadd.f32 %v5837_v22, %v5795_v17  ;;  %v5799_v45 = vadd.f32 %v5798_v18, %v5756_v21  ;;  %v9778_v18 = vld [vmem:[#allocation11 + $0xa0] ss:$8 sps:$4 sm:$0xff]   ;;  %v9805_v17 = vld [vmem:[#allocation14 + $0x10] ss:$8 sps:$4 sm:$0xff]  }
 0x3f9   :  { %6734 = vmatprep.subr.bf16.mxu0 %v9762_v29  ;;  %v5839_v43 = vpop.f32.mrf.mxu1  ;;  %v9808_v21 = vld [vmem:[#allocation14] ss:$8 sps:$4 sm:$0xff]  }
 0x3fa   :  { %v5840_v29 = vadd.f32 %v5839_v43, %v5797_v23  ;;  %v9813_v23 = vld [vmem:[#allocation14 + $0xf4] ss:$8 sps:$4 sm:$0xff]  }
 0x3fb   :  { %v5841_v25 = vpop.f32.mrf.mxu1 }
 0x3fc   :  { %6735 = vmatpush1.bf16.msra.mxu0 %v9760_v30  ;;  %v5842_v30 = vadd.f32 %v5841_v25, %v5799_v45  ;;  %v9783_v25 = vld [vmem:[#allocation11 + $0x94] ss:$8 sps:$4 sm:$0xff]  }
 0x3fd   :  { %6736 = vmatprep.subr.bf16.mxu0 %v9765_v19  ;;  %v9819_v45 = vld [vmem:[#allocation14 + $0xd4] ss:$8 sps:$4 sm:$0xff]  }
 0x400   :  { %6737 = vmatpush2.bf16.msra.mxu0 %v9763_v9 }
 0x401   :  { %6738 = vmatprep.subr.bf16.mxu0 %v9768_v48 }
 0x404   :  { %6739 = vmatpush2.bf16.msra.mxu0 %v9766_v32 }
 0x405   :  { %6740 = vmatprep.subr.bf16.mxu0 %v9771_v0 }
 0x408   :  { %6741 = vmatpush2.bf16.msra.mxu0 %v9769_v51 }
 0x409   :  { %6742 = vmatprep.subr.bf16.mxu0 %v9774_v24 }
 0x40c   :  { %6743 = vmatpush2.bf16.msra.mxu0 %v9772_v27  ;;  %v9792_v27 = vld [vmem:[#allocation14 + $0x64] ss:$8 sps:$4 sm:$0xff]  }
 0x40d   :  { %6744 = vmatprep.subr.bf16.mxu0 %v9777_v61  ;;  %v9793_v61 = vld [vmem:[#allocation14 + $0x50] ss:$8 sps:$4 sm:$0xff]  }
 0x410   :  { %6745 = vmatpush2.bf16.msra.mxu0 %v9775_v59  ;;  %v9802_v59 = vld [vmem:[#allocation14 + $0x20] ss:$8 sps:$4 sm:$0xff]  }
 0x411   :  { %6746 = vmatprep.subr.bf16.mxu0 %v9780_v56  ;;  %v9832_v56 = vld [vmem:[#allocation14 + $0x80] ss:$8 sps:$4 sm:$0xff]  }
 0x414   :  { %6747 = vmatpush2.bf16.msra.mxu0 %v9778_v18  ;;  %v9835_v18 = vld [vmem:[#allocation17 + $0x70] ss:$8 sps:$4 sm:$0xff]  }
 0x415   :  { %6748 = vmatprep.subr.bf16.mxu0 %v9783_v25  ;;  %v9837_v25 = vld [vmem:[#allocation17 + $0x74] ss:$8 sps:$4 sm:$0xff]  }
 0x418   :  { %6749 = vmatpush2.bf16.msra.mxu0 %v9781_v46  ;;  %v9840_v46 = vld [vmem:[#allocation17 + $0x64] ss:$8 sps:$4 sm:$0xff]  }
 0x419   :  { %6750 = vmatprep.subr.bf16.mxu0 %v9786_v47  ;;  %v9838_v47 = vld [vmem:[#allocation17 + $0x60] ss:$8 sps:$4 sm:$0xff]  }
 0x41c   :  { %6751 = vmatpush2.bf16.msra.mxu0 %v9784_v60  ;;  %v9843_v60 = vld [vmem:[#allocation17 + $0x54] ss:$8 sps:$4 sm:$0xff]  }
 0x41d   :  { %7226 = vmatprep.subr.bf16.mxu0 %v9837_v25 }
 0x41f   :  { %v5878_v40 = vpop.f32.mrf.mxu0 }
 0x420   :  { %v5921_v34 = vpop.f32.mrf.mxu1  ;;  %v5879_v12 = vadd.f32 %v5878_v40, %v5836_v52  ;;  %v9787_v40 = vld [vmem:[#allocation14 + $0x70] ss:$8 sps:$4 sm:$0xff]  }
 0x421   :  { %v5880_v16 = vpop.f32.mrf.mxu0  ;;  %v9817_v52 = vld [vmem:[#allocation14 + $0xd0] ss:$8 sps:$4 sm:$0xff]  }
 0x422   :  { %v5923_v38 = vpop.f32.mrf.mxu1  ;;  %v5881_v53 = vadd.f32 %v5880_v16, %v5838_v31  ;;  %v5922_v36 = vadd.f32 %v5921_v34, %v5879_v12  ;;  %v9789_v34 = vld [vmem:[#allocation14 + $0x74] ss:$8 sps:$4 sm:$0xff]   ;;  %v9799_v16 = vld [vmem:[#allocation14 + $0x30] ss:$8 sps:$4 sm:$0xff]   ;;  %v9814_v31 = vld [vmem:[#allocation14 + $0xe0] ss:$8 sps:$4 sm:$0xff]  }
 0x423   :  { %v5882_v37 = vpop.f32.mrf.mxu0  ;;  %6973 = vmatprep.subr.bf16.mxu1 %v9789_v34  ;;  %v9825_v12 = vld [vmem:[#allocation14 + $0xb4] ss:$8 sps:$4 sm:$0xff]   ;;  %v9846_v34 = vld [vmem:[#allocation17 + $0x44] ss:$8 sps:$4 sm:$0xff]  }
 0x424   :  { %v5925_v44 = vpop.f32.mrf.mxu1  ;;  %v5883_v19 = vadd.f32 %v5882_v37, %v5840_v29  ;;  %v5924_v8 = vadd.f32 %v5923_v38, %v5881_v53  ;;  %v9804_v38 = vld [vmem:[#allocation14 + $0x24] ss:$8 sps:$4 sm:$0xff]   ;;  %v9811_v37 = vld [vmem:[#allocation14 + $0xf0] ss:$8 sps:$4 sm:$0xff]   ;;  %v9820_v53 = vld [vmem:[#allocation14 + $0xc0] ss:$8 sps:$4 sm:$0xff]  }
 0x425   :  { %v5884_v33 = vpop.f32.mrf.mxu0  ;;  %v9822_v29 = vld [vmem:[#allocation14 + $0xc4] ss:$8 sps:$4 sm:$0xff]  }
 0x426   :  { %v5927_v35 = vpop.f32.mrf.mxu1  ;;  %v5885_v9 = vadd.f32 %v5884_v33, %v5842_v30  ;;  %v5926_v48 = vadd.f32 %v5925_v44, %v5883_v19  ;;  %v9816_v44 = vld [vmem:[#allocation14 + $0xe4] ss:$8 sps:$4 sm:$0xff]   ;;  %v9823_v33 = vld [vmem:[#allocation14 + $0xb0] ss:$8 sps:$4 sm:$0xff]   ;;  %v6092_v19 = vld [vmem:[#allocation10] sm:$0x3] }
 0x428   :  { %v5928_v55 = vadd.f32 %v5927_v35, %v5885_v9 }
 0x45f   :  { %v5964_v63 = vpop.f32.mrf.mxu0 }
 0x460   :  { %v6007_v1 = vpop.f32.mrf.mxu1  ;;  %v5965_v42 = vadd.f32 %v5964_v63, %v5922_v36 }
 0x461   :  { %v5966_v2 = vpop.f32.mrf.mxu0 }
 0x462   :  { %v6009_v6 = vpop.f32.mrf.mxu1  ;;  %v5967_v49 = vadd.f32 %v5966_v2, %v5924_v8  ;;  %v6008_v41 = vadd.f32 %v6007_v1, %v5965_v42  ;;  %v6101_v1 = vrot.slane %v6092_v19, %v10596_v20  ;;  %v6097_v8 = vrot.slane %v6092_v19, %v10428_v5 }
 0x463   :  { %v5968_v22 = vpop.f32.mrf.mxu0 }
 0x464   :  { %v6011_v62 = vpop.f32.mrf.mxu1  ;;  %v5969_v50 = vadd.f32 %v5968_v22, %v5926_v48  ;;  %v6010_v3 = vadd.f32 %v6009_v6, %v5967_v49  ;;  %v6018_v4 = vmax.f32 %v6008_v41, 0.0 }
 0x465   :  { %v5970_v32 = vpop.f32.mrf.mxu0 }
 0x466   :  { %v6012_v7 = vadd.f32 %v6011_v62, %v5969_v50  ;;  %v5971_v0 = vadd.f32 %v5970_v32, %v5928_v55  ;;  %v6013_v26 = vpop.f32.mrf.mxu1  ;;  %v6019_v57 = vmax.f32 %v6010_v3, 0.0 }
 0x468   :  { %v6014_v43 = vadd.f32 %v6013_v26, %v5971_v0  ;;  %v6022_v13 = vmax.f32 %v6012_v7, 0.0 }
 0x46a   :  { %v6023_v51 = vmax.f32 %v6014_v43, 0.0  ;;  %v6026_v24 = vpack.c.bf16 %v6022_v13, %v6018_v4  ;;  %v9831_v4 = vld [vmem:[#allocation14 + $0x94] ss:$8 sps:$4 sm:$0xff]  }
 0x46c   :  { %v6027_v58 = vpack.c.bf16 %v6023_v51, %v6019_v57  ;;  %v9828_v57 = vld [vmem:[#allocation14 + $0xa4] ss:$8 sps:$4 sm:$0xff]   ;;  %v9826_v51 = vld [vmem:[#allocation14 + $0xa0] ss:$8 sps:$4 sm:$0xff]  }
 0x46e   :  { %6499 = vmatprep.mubr.bf16.mxu1 %v6027_v58  ;;  %v9829_v58 = vld [vmem:[#allocation14 + $0x90] ss:$8 sps:$4 sm:$0xff]  }
 0x46f   :  { %6500 = vmatmul.mubr.bf16.vlgmr.msra.gmra.mxu1 %v6026_v24  ;;  %v9834_v24 = vld [vmem:[#allocation14 + $0x84] ss:$8 sps:$4 sm:$0xff]  }
 0x470   :  { %6974 = vmatpush1.bf16.msra.mxu1 %v9787_v40  ;;  %v9841_v40 = vld [vmem:[#allocation17 + $0x50] ss:$8 sps:$4 sm:$0xff]  }
 0x471   :  { %6975 = vmatprep.subr.bf16.mxu1 %v9792_v27  ;;  %v9844_v27 = vld [vmem:[#allocation17 + $0x40] ss:$8 sps:$4 sm:$0xff]  }
 0x474   :  { %6976 = vmatpush1.bf16.msra.mxu1 %v9790_v28  ;;  %v9849_v28 = vld [vmem:[#allocation17 + $0x34] ss:$8 sps:$4 sm:$0xff]  }
 0x475   :  { %6977 = vmatprep.subr.bf16.mxu1 %v9795_v14  ;;  %v9847_v14 = vld [vmem:[#allocation17 + $0x30] ss:$8 sps:$4 sm:$0xff]  }
 0x478   :  { %6978 = vmatpush1.bf16.msra.mxu1 %v9793_v61  ;;  %v9852_v61 = vld [vmem:[#allocation17 + $0x24] ss:$8 sps:$4 sm:$0xff]  }
 0x479   :  { %6979 = vmatprep.subr.bf16.mxu1 %v9798_v15  ;;  %v9850_v15 = vld [vmem:[#allocation17 + $0x20] ss:$8 sps:$4 sm:$0xff]  }
 0x47c   :  { %6980 = vmatpush1.bf16.msra.mxu1 %v9796_v11  ;;  %v9855_v11 = vld [vmem:[#allocation17 + $0x14] ss:$8 sps:$4 sm:$0xff]  }
 0x47d   :  { %6981 = vmatprep.subr.bf16.mxu1 %v9801_v39  ;;  %v9853_v39 = vld [vmem:[#allocation17 + $0x10] ss:$8 sps:$4 sm:$0xff]  }
 0x480   :  { %6982 = vmatpush1.bf16.msra.mxu1 %v9799_v16  ;;  %v9858_v16 = vld [vmem:[#allocation17 + $0x4] ss:$8 sps:$4 sm:$0xff]  }
 0x481   :  { %6983 = vmatprep.subr.bf16.mxu1 %v9804_v38  ;;  %v9856_v38 = vld [vmem:[#allocation17] ss:$8 sps:$4 sm:$0xff]  }
 0x484   :  { %6984 = vmatpush1.bf16.msra.mxu1 %v9802_v59  ;;  %v9861_v59 = vld [vmem:[#allocation17 + $0xf4] ss:$8 sps:$4 sm:$0xff]  }
 0x485   :  { %6985 = vmatprep.subr.bf16.mxu1 %v9807_v10  ;;  %v9859_v10 = vld [vmem:[#allocation17 + $0xf0] ss:$8 sps:$4 sm:$0xff]  }
 0x488   :  { %6986 = vmatpush1.bf16.msra.mxu1 %v9805_v17  ;;  %v9864_v17 = vld [vmem:[#allocation17 + $0xe4] ss:$8 sps:$4 sm:$0xff]  }
 0x489   :  { %6987 = vmatprep.subr.bf16.mxu1 %v9810_v54  ;;  %v9862_v54 = vld [vmem:[#allocation17 + $0xe0] ss:$8 sps:$4 sm:$0xff]  }
 0x48c   :  { %6988 = vmatpush1.bf16.msra.mxu1 %v9808_v21  ;;  %v9867_v21 = vld [vmem:[#allocation17 + $0xd4] ss:$8 sps:$4 sm:$0xff]  }
 0x48d   :  { %6989 = vmatprep.subr.bf16.mxu1 %v9813_v23  ;;  %v9865_v23 = vld [vmem:[#allocation17 + $0xd0] ss:$8 sps:$4 sm:$0xff]  }
 0x490   :  { %6990 = vmatpush2.bf16.msra.mxu1 %v9811_v37  ;;  %v9870_v37 = vld [vmem:[#allocation17 + $0xc4] ss:$8 sps:$4 sm:$0xff]  }
 0x491   :  { %6991 = vmatprep.subr.bf16.mxu1 %v9816_v44  ;;  %v9868_v44 = vld [vmem:[#allocation17 + $0xc0] ss:$8 sps:$4 sm:$0xff]  }
 0x494   :  { %6992 = vmatpush2.bf16.msra.mxu1 %v9814_v31  ;;  %v9873_v31 = vld [vmem:[#allocation17 + $0xb4] ss:$8 sps:$4 sm:$0xff]  }
 0x495   :  { %6993 = vmatprep.subr.bf16.mxu1 %v9819_v45  ;;  %v9871_v45 = vld [vmem:[#allocation17 + $0xb0] ss:$8 sps:$4 sm:$0xff]  }
 0x498   :  { %6994 = vmatpush2.bf16.msra.mxu1 %v9817_v52  ;;  %v6548_v52 = vld [vmem:[#allocation13] sm:$0x3] }
 0x499   :  { %6995 = vmatprep.subr.bf16.mxu1 %v9822_v29 }
 0x49c   :  { %6996 = vmatpush2.bf16.msra.mxu1 %v9820_v53  ;;  %v6557_v53 = vrot.slane %v6548_v52, %v10596_v20 }
 0x49d   :  { %6997 = vmatprep.subr.bf16.mxu1 %v9825_v12  ;;  %v6553_v12 = vrot.slane %v6548_v52, %v10428_v5 }
 0x49f   :  { %v6458_v35 = vpop.f32.mrf.mxu0 }
 0x4a0   :  { %6998 = vmatpush2.bf16.msra.mxu1 %v9823_v33  ;;  %v6459_v49 = vadd.f32 %v6458_v35, %v6097_v8 }
 0x4a1   :  { %v6460_v30 = vpop.f32.mrf.mxu0  ;;  %6999 = vmatprep.subr.bf16.mxu1 %v9828_v57  ;;  %v9890_v57 = vld [vmem:[#allocation20 + $0x20] sm:$0xff]  }
 0x4a2   :  { %v6461_v6 = vadd.f32 %v6460_v30, %v6101_v1 }
 0x4a3   :  { %v6462_v63 = vpop.f32.mrf.mxu0 }
 0x4a4   :  { %v6463_v48 = vadd.f32 %v6462_v63, %v6097_v8  ;;  %7000 = vmatpush2.bf16.msra.mxu1 %v9826_v51  ;;  %v9891_v51 = vld [vmem:[#allocation20 + $0x58] sm:$0xff]  }
 0x4a5   :  { %v6464_v36 = vpop.f32.mrf.mxu0  ;;  %7001 = vmatprep.subr.bf16.mxu1 %v9831_v4  ;;  %v9892_v4 = vld [vmem:[#allocation20 + $0x18] sm:$0xff]  }
 0x4a6   :  { %v6465_v22 = vadd.f32 %v6464_v36, %v6101_v1 }
 0x4a8   :  { %7002 = vmatpush2.bf16.msra.mxu1 %v9829_v58  ;;  %v6801_v58 = vld [vmem:[#allocation16] sm:$0x3] }
 0x4a9   :  { %7003 = vmatprep.subr.bf16.mxu1 %v9834_v24 }
 0x4ac   :  { %7004 = vmatpush2.bf16.msra.mxu1 %v9832_v56  ;;  %v6810_v56 = vrot.slane %v6801_v58, %v10596_v20 }
 0x52f   :  { %v6501_v9 = vpop.f32.mrf.mxu1 }
 0x530   :  { %v6502_v50 = vadd.f32 %v6501_v9, %v6459_v49 }
 0x531   :  { %v6503_v2 = vpop.f32.mrf.mxu1 }
 0x532   :  { %v6504_v62 = vadd.f32 %v6503_v2, %v6461_v6  ;;  %v6510_v26 = vmax.f32 %v6502_v50, 0.0  ;;  %v9882_v50 = vld [vmem:[#allocation17 + $0x84] ss:$8 sps:$4 sm:$0xff]  }
 0x533   :  { %v6505_v42 = vpop.f32.mrf.mxu1 }
 0x534   :  { %v6506_v55 = vadd.f32 %v6505_v42, %v6463_v48  ;;  %v6511_v0 = vmax.f32 %v6504_v62, 0.0  ;;  %v9876_v42 = vld [vmem:[#allocation17 + $0xa4] ss:$8 sps:$4 sm:$0xff]   ;;  %v9879_v62 = vld [vmem:[#allocation17 + $0x94] ss:$8 sps:$4 sm:$0xff]  }
 0x535   :  { %v6507_v32 = vpop.f32.mrf.mxu1 }
 0x536   :  { %v6508_v3 = vadd.f32 %v6507_v32, %v6465_v22  ;;  %v6512_v7 = vmax.f32 %v6506_v55, 0.0  ;;  %v9874_v22 = vld [vmem:[#allocation17 + $0xa0] ss:$8 sps:$4 sm:$0xff]   ;;  %v9877_v55 = vld [vmem:[#allocation17 + $0x90] ss:$8 sps:$4 sm:$0xff]  }
 0x537   :  { %v9880_v32 = vld [vmem:[#allocation17 + $0x80] ss:$8 sps:$4 sm:$0xff]  }
 0x538   :  { %v6513_v41 = vmax.f32 %v6508_v3, 0.0  ;;  %v6514_v13 = vpack.c.bf16 %v6512_v7, %v6510_v26  ;;  %v9883_v3 = vld [vmem:[#allocation20 + $0x78] sm:$0xff]   ;;  %v9887_v26 = vld [vmem:[#allocation20 + $0x68] sm:$0xff]  }
 0x539   :  { %v9884_v7 = vld [vmem:[#allocation20 + $0x38] sm:$0xff]   ;;  %8447 = vmatprep.subr.bf16.mxu1 %v9883_v3 }
 0x53a   :  { %v6515_v43 = vpack.c.bf16 %v6513_v41, %v6511_v0  ;;  %v9885_v0 = vld [vmem:[#allocation20 + $0x70] sm:$0xff]  }
 0x53b   :  { %v9886_v41 = vld [vmem:[#allocation20 + $0x30] sm:$0xff]  }
 0x53c   :  { %6752 = vmatprep.mubr.bf16.mxu0 %v6515_v43  ;;  %v9888_v43 = vld [vmem:[#allocation20 + $0x28] sm:$0xff]  }
 0x53d   :  { %6753 = vmatmul.mubr.bf16.vlgmr.msra.gmra.mxu0 %v6514_v13  ;;  %v9889_v13 = vld [vmem:[#allocation20 + $0x60] sm:$0xff]  }
 0x53e   :  { %7227 = vmatpush1.bf16.msra.mxu0 %v9835_v18  ;;  %v6806_v18 = vrot.slane %v6801_v58, %v10428_v5 }
 0x53f   :  { %7228 = vmatprep.subr.bf16.mxu0 %v9840_v46 }
 0x542   :  { %7229 = vmatpush1.bf16.msra.mxu0 %v9838_v47 }
 0x543   :  { %7230 = vmatprep.subr.bf16.mxu0 %v9843_v60 }
 0x546   :  { %7231 = vmatpush1.bf16.msra.mxu0 %v9841_v40 }
 0x547   :  { %7232 = vmatprep.subr.bf16.mxu0 %v9846_v34 }
 0x54a   :  { %7233 = vmatpush1.bf16.msra.mxu0 %v9844_v27 }
 0x54b   :  { %7234 = vmatprep.subr.bf16.mxu0 %v9849_v28 }
 0x54e   :  { %7235 = vmatpush1.bf16.msra.mxu0 %v9847_v14 }
 0x54f   :  { %7236 = vmatprep.subr.bf16.mxu0 %v9852_v61 }
 0x552   :  { %7237 = vmatpush1.bf16.msra.mxu0 %v9850_v15 }
 0x553   :  { %7238 = vmatprep.subr.bf16.mxu0 %v9855_v11 }
 0x556   :  { %7239 = vmatpush1.bf16.msra.mxu0 %v9853_v39 }
 0x557   :  { %7240 = vmatprep.subr.bf16.mxu0 %v9858_v16  ;;  %v9893_v16 = vld [vmem:[#allocation20 + $0x50] sm:$0xff]  }
 0x55a   :  { %7241 = vmatpush1.bf16.msra.mxu0 %v9856_v38  ;;  %v9894_v38 = vld [vmem:[#allocation20 + $0x10] sm:$0xff]  }
 0x55b   :  { %7242 = vmatprep.subr.bf16.mxu0 %v9861_v59  ;;  %v9895_v59 = vld [vmem:[#allocation20 + $0x48] sm:$0xff]  }
 0x55e   :  { %7243 = vmatpush2.bf16.msra.mxu0 %v9859_v10  ;;  %v9896_v10 = vld [vmem:[#allocation20 + $0x8] sm:$0xff]  }
 0x55f   :  { %7244 = vmatprep.subr.bf16.mxu0 %v9864_v17  ;;  %v9897_v17 = vld [vmem:[#allocation20 + $0x40] sm:$0xff]  }
 0x562   :  { %7245 = vmatpush2.bf16.msra.mxu0 %v9862_v54  ;;  %v9898_v54 = vld [vmem:[#allocation20] sm:$0xff]  }
 0x563   :  { %7246 = vmatprep.subr.bf16.mxu0 %v9867_v21  ;;  %v7054_v21 = vld [vmem:[#allocation19] sm:$0x3] }
 0x566   :  { %7247 = vmatpush2.bf16.msra.mxu0 %v9865_v23 }
 0x567   :  { %7248 = vmatprep.subr.bf16.mxu0 %v9870_v37  ;;  %v7063_v37 = vrot.slane %v7054_v21, %v10596_v20 }
 0x56a   :  { %7249 = vmatpush2.bf16.msra.mxu0 %v9868_v44  ;;  %v7059_v44 = vrot.slane %v7054_v21, %v10428_v5 }
 0x56b   :  { %7250 = vmatprep.subr.bf16.mxu0 %v9873_v31 }
 0x56e   :  { %7251 = vmatpush2.bf16.msra.mxu0 %v9871_v45 }
 0x56f   :  { %7252 = vmatprep.subr.bf16.mxu0 %v9876_v42 }
 0x572   :  { %7253 = vmatpush2.bf16.msra.mxu0 %v9874_v22 }
 0x573   :  { %7254 = vmatprep.subr.bf16.mxu0 %v9879_v62 }
 0x576   :  { %7255 = vmatpush2.bf16.msra.mxu0 %v9877_v55 }
 0x577   :  { %7256 = vmatprep.subr.bf16.mxu0 %v9882_v50 }
 0x57a   :  { %7257 = vmatpush2.bf16.msra.mxu0 %v9880_v32 }
 0x5fd   :  { %v6754_v29 = vpop.f32.mrf.mxu0 }
 0x5fe   :  { %v6755_v63 = vadd.f32 %v6754_v29, %v6553_v12 }
 0x5ff   :  { %v6756_v33 = vpop.f32.mrf.mxu0 }
 0x600   :  { %v6757_v30 = vadd.f32 %v6756_v33, %v6557_v53  ;;  %v6763_v6 = vmax.f32 %v6755_v63, 0.0 }
 0x601   :  { %v6758_v35 = vpop.f32.mrf.mxu0 }
 0x602   :  { %v6759_v19 = vadd.f32 %v6758_v35, %v6553_v12  ;;  %v6764_v36 = vmax.f32 %v6757_v30, 0.0 }
 0x603   :  { %v6760_v1 = vpop.f32.mrf.mxu0 }
 0x604   :  { %v6761_v8 = vadd.f32 %v6760_v1, %v6557_v53  ;;  %v6765_v9 = vmax.f32 %v6759_v19, 0.0 }
 0x606   :  { %v6766_v2 = vmax.f32 %v6761_v8, 0.0  ;;  %v6767_v49 = vpack.c.bf16 %v6765_v9, %v6763_v6 }
 0x608   :  { %v6768_v48 = vpack.c.bf16 %v6766_v2, %v6764_v36  ;;  %v8430_v36 = vld [vmem:[#allocation22] ss:$0 sm:$0xff] }
 0x60a   :  { %7005 = vmatprep.mubr.bf16.mxu1 %v6768_v48 }
 0x60b   :  { %7006 = vmatmul.mubr.bf16.vlgmr.msra.gmra.mxu1 %v6767_v49 }
 0x60c   :  { %8448 = vmatpush3.bf16.msra.mxu1 %v9884_v7 }
 0x60d   :  { %8449 = vmatprep.subr.bf16.mxu1 %v9885_v0 }
 0x610   :  { %8450 = vmatpush3.bf16.msra.mxu1 %v9886_v41 }
 0x611   :  { %8451 = vmatprep.subr.bf16.mxu1 %v9887_v26 }
 0x614   :  { %8452 = vmatpush3.bf16.msra.mxu1 %v9888_v43 }
 0x615   :  { %8453 = vmatprep.subr.bf16.mxu1 %v9889_v13 }
 0x618   :  { %8454 = vmatpush3.bf16.msra.mxu1 %v9890_v57 }
 0x619   :  { %8455 = vmatprep.subr.bf16.mxu1 %v9891_v51 }
 0x61c   :  { %8456 = vmatpush3.bf16.msra.mxu1 %v9892_v4 }
 0x61d   :  { %8457 = vmatprep.subr.bf16.mxu1 %v9893_v16 }
 0x620   :  { %8458 = vmatpush3.bf16.msra.mxu1 %v9894_v38 }
 0x621   :  { %8459 = vmatprep.subr.bf16.mxu1 %v9895_v59 }
 0x624   :  { %8460 = vmatpush3.bf16.msra.mxu1 %v9896_v10 }
 0x625   :  { %8461 = vmatprep.subr.bf16.mxu1 %v9897_v17 }
 0x628   :  { %8462 = vmatpush3.bf16.msra.mxu1 %v9898_v54 }
 0x6cb   :  { %v7007_v24 = vpop.f32.mrf.mxu1 }
 0x6cc   :  { %v7008_v40 = vadd.f32 %v7007_v24, %v6806_v18 }
 0x6cd   :  { %v7009_v25 = vpop.f32.mrf.mxu1 }
 0x6ce   :  { %v7010_v47 = vadd.f32 %v7009_v25, %v6810_v56  ;;  %v7016_v15 = vmax.f32 %v7008_v40, 0.0 }
 0x6cf   :  { %v7011_v46 = vpop.f32.mrf.mxu1 }
 0x6d0   :  { %v7012_v60 = vadd.f32 %v7011_v46, %v6806_v18  ;;  %v7017_v14 = vmax.f32 %v7010_v47, 0.0 }
 0x6d1   :  { %v7013_v34 = vpop.f32.mrf.mxu1 }
 0x6d2   :  { %v7014_v27 = vadd.f32 %v7013_v34, %v6810_v56  ;;  %v7018_v28 = vmax.f32 %v7012_v60, 0.0 }
 0x6d4   :  { %v7019_v61 = vmax.f32 %v7014_v27, 0.0  ;;  %v7020_v39 = vpack.c.bf16 %v7018_v28, %v7016_v15 }
 0x6d6   :  { %v7021_v11 = vpack.c.bf16 %v7019_v61, %v7017_v14 }
 0x6d8   :  { %7258 = vmatprep.mubr.bf16.mxu0 %v7021_v11 }
 0x6d9   :  { %7259 = vmatmul.mubr.bf16.vlgmr.msra.gmra.mxu0 %v7020_v39 }
 0x799   :  { %v7260_v23 = vpop.f32.mrf.mxu0 }
 0x79a   :  { %v7261_v53 = vadd.f32 %v7260_v23, %v7059_v44 }
 0x79b   :  { %v7262_v31 = vpop.f32.mrf.mxu0 }
 0x79c   :  { %v7263_v52 = vadd.f32 %v7262_v31, %v7063_v37  ;;  %v7269_v63 = vmax.f32 %v7261_v53, 0.0 }
 0x79d   :  { %v7264_v45 = vpop.f32.mrf.mxu0 }
 0x79e   :  { %v7265_v29 = vadd.f32 %v7264_v45, %v7059_v44  ;;  %v7270_v30 = vmax.f32 %v7263_v52, 0.0 }
 0x79f   :  { %v7266_v12 = vpop.f32.mrf.mxu0 }
 0x7a0   :  { %v7267_v33 = vadd.f32 %v7266_v12, %v7063_v37  ;;  %v7271_v35 = vmax.f32 %v7265_v29, 0.0 }
 0x7a2   :  { %v7272_v19 = vmax.f32 %v7267_v33, 0.0  ;;  %v7273_v8 = vpack.c.bf16 %v7271_v35, %v7269_v63 }
 0x7a4   :  { %v7274_v1 = vpack.c.bf16 %v7272_v19, %v7270_v30 }
 0x7a6   :  { %7442 = vmatprep.mubr.bf16.mxu1 %v7274_v1 }
 0x7a7   :  { %7443 = vmatmul.mubr.bf16.vlgmr.msra.gmra.mxu1 %v7273_v8 }
 0x867   :  { %v8463_v9 = vpop.f32.mrf.mxu1 }
 0x869   :  { %v8464_v20 = vpop.f32.mrf.mxu1 }
 0x86a   :  { %v8465_v2 = vadd.f32 %v8464_v20, %v8463_v9 }
 0x86b   :  { %v8466_v5 = vpop.f32.mrf.mxu1 }
 0x86c   :  { %v7445_v6 = vadd.f32 %v8465_v2, %v8430_v36 }
 0x86d   :  { %v8467_v48 = vpop.f32.mrf.mxu1 }
 0x86e   :  { %v7451_v49 = vmax.f32 %v7445_v6, 0.0  ;;  %v8468_v42 = vadd.f32 %v8467_v48, %v8466_v5 }
 0x870   :  { %7453 = vst [vmem:[#allocation23] sm:$0xff] %v7451_v49  ;;  %v7448_v22 = vadd.f32 %v8468_v42, %v8430_v36 }
 0x872   :  { %v7452_v62 = vmax.f32 %v7448_v22, 0.0 }
 0x874   :  { %7454 = vst [vmem:[#allocation23 + $0x8] sm:$0xff] %v7452_v62 }
 0x875   :  { %10171 = shalt.err (!%p10168_p13)
}
 0x876   :  { %7466 = dma.vmem_to_hbm [thread:$0]  %s7461_s12, 256, %s10703_s13, [#allocation4], %s10200_s18, %s10200_s18, %s10201_s19  }
 0x877   :  { %10194 = dma.done.wait [#allocation4], 256  }
 0x878   :  { %10195 = vsyncadd [#allocation4], 4294967040 }
 0x879   :  { %7470 = vsyncpa [#allocation3], 1 }
 0x87a   :  { %7471 = vsyncpa [#allocation6], 1 }
 0x87b   :  { %7472 = vsyncpa [#allocation9], 1 }
 0x87c   :  { %7473 = vsyncpa [#allocation12], 1 }
 0x87d   :  { %7474 = vsyncpa [#allocation15], 1 }
 0x87e   :  { %7475 = vsyncpa [#allocation18], 1 }
 0x87f   :  { %7476 = vsyncpa [#allocation21], 1 }
 0x880   :  { %7477 = vsyncpa [#allocation4], 1 }

</bundles_post_ra>
